<compile_context>
chip_gen: v7x
topology: tpu7x:2x2x1
jax: 0.10.0
libtpu: 0.0.40
codegen_flags: <defaults>
</compile_context>

<pallas_src>
import jax
import jax.numpy as jnp
from jax.experimental import pallas as pl
from jax.experimental.pallas import tpu as pltpu


# ----------------------------------------------------------------------------
# Pallas kernels
# ----------------------------------------------------------------------------
def _conv_bn_relu_pool_kernel(p_ref, w_ref, b_ref, o_ref):
    # p_ref: (4, TILE_N, 9*Cin) bf16   w_ref: (9*Cin, Cout) bf16
    # b_ref: (1, Cout) f32             o_ref: (TILE_N, Cout) f32
    w = w_ref[...]
    # Max over the 4 pool positions of the raw matmuls, then bias + ReLU once
    # (max(relu(y_i + b)) == relu(max_i(y_i) + b) since the bias is shared).
    acc = jnp.dot(p_ref[0], w, preferred_element_type=jnp.float32)
    for i in range(1, 4):  # static unroll: 2x2 max-pool window
        acc = jnp.maximum(acc, jnp.dot(p_ref[i], w, preferred_element_type=jnp.float32))
    o_ref[...] = jnp.maximum(acc + b_ref[...], 0.0).astype(o_ref.dtype)


def conv_bn_relu_pool(patches, w_mat, bias_row, *, tile_n=512):
    """patches: (4, N, 9*Cin) bf16 -> (N, Cout) f32, tiled over N."""
    four, n, kk = patches.shape
    cout = w_mat.shape[1]
    if n <= tile_n:
        tile, n_pad = n, n                      # single tile (block == full dim)
    else:
        tile = tile_n                           # multiple of 8
        n_pad = pl.cdiv(n, tile) * tile
        if n_pad != n:
            patches = jnp.pad(patches, ((0, 0), (0, n_pad - n), (0, 0)))
    out = pl.pallas_call(
        _conv_bn_relu_pool_kernel,
        out_shape=jax.ShapeDtypeStruct((n_pad, cout), jnp.float32),
        grid=(n_pad // tile,),
        in_specs=[
            pl.BlockSpec((four, tile, kk), lambda i: (0, i, 0)),
            pl.BlockSpec((kk, cout), lambda i: (0, 0)),
            pl.BlockSpec((1, cout), lambda i: (0, 0)),
        ],
        out_specs=pl.BlockSpec((tile, cout), lambda i: (i, 0)),
        compiler_params=pltpu.CompilerParams(dimension_semantics=("parallel",)),
    )(patches, w_mat, bias_row)
    return out[:n] if n_pad != n else out


def _gram_kernel(x_ref, o_ref):
    # x_ref: (1, S, C) -> o_ref: (1, C, C);  G = X^T X / S  (== X_pt X_pt^T / (H*W))
    x = x_ref[0]
    s = x.shape[0]
    g = jax.lax.dot_general(
        x, x, (((0,), (0,)), ((), ())), preferred_element_type=jnp.float32
    )
    o_ref[0] = g * (1.0 / s)


def second_order_pool(feat):
    b, s, c = feat.shape
    return pl.pallas_call(
        _gram_kernel,
        out_shape=jax.ShapeDtypeStruct((b, c, c), jnp.float32),
        grid=(b,),
        in_specs=[pl.BlockSpec((1, s, c), lambda i: (i, 0, 0))],
        out_specs=pl.BlockSpec((1, c, c), lambda i: (i, 0, 0)),
        compiler_params=pltpu.CompilerParams(dimension_semantics=("parallel",)),
    )(feat)


def _linear_kernel(x_ref, w_ref, b_ref, o_ref, acc_ref):
    k = pl.program_id(1)

    @pl.when(k == 0)
    def _():
        acc_ref[...] = jnp.zeros_like(acc_ref)

    acc_ref[...] += jnp.dot(
        x_ref[...].astype(jnp.bfloat16), w_ref[...],
        preferred_element_type=jnp.float32,
    )

    @pl.when(k == pl.num_programs(1) - 1)
    def _():
        o_ref[...] = (acc_ref[...] + b_ref[...]).astype(o_ref.dtype)


def linear(x, w, b, *, kt=1024, nt=512):
    """x: (M, K) f32, w: (K, N) bf16, b: (N,) f32 -> (M, N) f32.

    Grid is (N tiles [parallel], K tiles [arbitrary]) so v7x's two TensorCores
    split the weight stream while K accumulates in a VMEM scratch.
    """
    m, kdim = x.shape
    n = w.shape[1]
    kt = min(kt, kdim)
    if kdim % kt != 0:
        kt = kdim
    if n < nt or n % nt != 0:
        nt = n
    return pl.pallas_call(
        _linear_kernel,
        out_shape=jax.ShapeDtypeStruct((m, n), jnp.float32),
        grid=(n // nt, kdim // kt),
        in_specs=[
            pl.BlockSpec((m, kt), lambda j, k: (0, k)),
            pl.BlockSpec((kt, nt), lambda j, k: (k, j)),
            pl.BlockSpec((1, nt), lambda j, k: (0, j)),
        ],
        out_specs=pl.BlockSpec((m, nt), lambda j, k: (0, j)),
        scratch_shapes=[pltpu.VMEM((m, nt), jnp.float32)],
        compiler_params=pltpu.CompilerParams(
            dimension_semantics=("parallel", "arbitrary")),
    )(x, w, b.reshape(1, n))


# ----------------------------------------------------------------------------
# JAX glue: pool-grouped im2col (bf16), BN folding, parameter setup
# ----------------------------------------------------------------------------
def build_pool_patches(x_nhwc, dtype=jnp.bfloat16):
    """(B,H,W,C) -> patches (4, B*Hp*Wp, 9*C) grouped by 2x2 pool-window position.

    Built directly from stride-2 views of the padded input; no materialized
    transpose of the 9x-expanded tensor.
    """
    b, h, w, c = x_nhwc.shape
    hp, wp = h // 2, w // 2
    xp = jnp.pad(x_nhwc, ((0, 0), (1, 1), (1, 1), (0, 0)))
    groups = []
    for py in range(2):
        for px in range(2):
            views = [
                xp[:, py + dy: py + dy + h - 1: 2, px + dx: px + dx + w - 1: 2, :]
                for dy in range(3) for dx in range(3)
            ]
            g = jnp.concatenate(views, axis=-1)          # (B, Hp, Wp, 9C)
            groups.append(g.reshape(b * hp * wp, 9 * c))
    patches = jnp.stack(groups, axis=0).astype(dtype)    # (4, N, 9C)
    return patches, hp, wp


def fuse_conv_bn(w, bias, gamma, beta, mean, var, eps=1e-5, cout_pad=None):
    """Fold inference BatchNorm into conv. w: (Cout, Cin, 3, 3) (PyTorch layout)."""
    cout = w.shape[0]
    scale = gamma / jnp.sqrt(var + eps)
    w_f = w * scale[:, None, None, None]
    b_f = (bias - mean) * scale + beta
    # -> (ky, kx, cin, cout) -> (9*Cin, Cout), matching patch ordering [(dy,dx), cin]
    w_mat = jnp.transpose(w_f, (2, 3, 1, 0)).reshape(-1, cout)
    b_row = b_f.reshape(1, cout)
    if cout_pad is not None and cout_pad > cout:
        # zero output channels -> lane-dense (128-wide) stores; sliced off in glue.
        w_mat = jnp.pad(w_mat, ((0, 0), (0, cout_pad - cout)))
        b_row = jnp.pad(b_row, ((0, 0), (0, cout_pad - cout)))
    return w_mat.astype(jnp.bfloat16), b_row.astype(jnp.float32)


def init_params(key, num_classes=15):
    ks = jax.random.split(key, 16)

    def conv_bn_block(keys, cin, cout, cout_pad=None):
        kw, kb, kg, kbe, km, kv = keys
        w = 0.05 * jax.random.normal(kw, (cout, cin, 3, 3), jnp.float32)
        bias = 0.01 * jax.random.normal(kb, (cout,), jnp.float32)
        gamma = 1.0 + 0.1 * jax.random.normal(kg, (cout,), jnp.float32)
        beta = 0.1 * jax.random.normal(kbe, (cout,), jnp.float32)
        mean = 0.1 * jax.random.normal(km, (cout,), jnp.float32)
        var = 1.0 + 0.1 * jnp.abs(jax.random.normal(kv, (cout,), jnp.float32))
        return fuse_conv_bn(w, bias, gamma, beta, mean, var, cout_pad=cout_pad)

    w1, b1 = conv_bn_block(ks[0:6], 3, 64, cout_pad=128)   # 64 real + 64 zero cols
    w2, b2 = conv_bn_block(ks[6:12], 64, 128)

    fc1_in = 128 * 128
    fc1_w = 0.01 * jax.random.normal(ks[12], (1024, fc1_in), jnp.float32)   # (out, in)
    fc1_b = 0.01 * jax.random.normal(ks[13], (1024,), jnp.float32)
    fc2_w = 0.01 * jax.random.normal(ks[14], (num_classes, 1024), jnp.float32)
    fc2_b = 0.01 * jax.random.normal(ks[15], (num_classes,), jnp.float32)

    return dict(
        w1=w1, b1=b1, w2=w2, b2=b2, c1=64,
        # stored as (in, out) bf16 for the kernel weight stream
        fc1_w=jnp.transpose(fc1_w).astype(jnp.bfloat16), fc1_b=fc1_b,
        fc2_w=jnp.transpose(fc2_w).astype(jnp.bfloat16), fc2_b=fc2_b,
    )


def forward(x_nchw, params):
    b = x_nchw.shape[0]
    x = jnp.transpose(x_nchw, (0, 2, 3, 1))                   # NCHW -> NHWC

    # layer1: Conv(3->64) + BN + ReLU + MaxPool2d(2)  (output padded to 128 ch)
    p, hp, wp = build_pool_patches(x)
    y = conv_bn_relu_pool(p, params["w1"], params["b1"])       # (B*hp*wp, 128)
    c1_pad = params["w1"].shape[1]
    x = y.reshape(b, hp, wp, c1_pad)

    # layer2: Conv(64->128) + BN + ReLU + MaxPool2d(2); drop the zero pad channels
    cin2 = params["w2"].shape[0] // 9
    p, hp, wp = build_pool_patches(x[..., :cin2])
    y = conv_bn_relu_pool(p, params["w2"], params["b2"])       # (B*hp*wp, 128)
    c2 = params["w2"].shape[1]
    x = y.reshape(b, hp, wp, c2)

    # second-order pooling -> (B, 128, 128) -> flatten
    feat = x.reshape(b, hp * wp, c2)
    g = second_order_pool(feat)
    flat = g.reshape(b, c2 * c2)

    h1 = linear(flat, params["fc1_w"], params["fc1_b"], kt=1024, nt=512)  # fc1
    # dropout: identity at inference
    out = linear(h1, params["fc2_w"], params["fc2_b"], kt=1024, nt=512)   # fc2
    return out


if __name__ == "__main__":
    key = jax.random.PRNGKey(0)
    pkey, xkey = jax.random.split(key)
    params = init_params(pkey, num_classes=15)
    x = jax.random.normal(xkey, (2, 3, 16, 16), jnp.float32)   # NCHW like PyTorch

    out = jax.jit(forward)(x, params)
    out = jax.block_until_ready(out)
    assert out.shape == (2, 15) and out.dtype == jnp.float32
    print("KERNEL_OK")
</pallas_src>

<mosaic_0001>
module attributes {stable_mosaic.version = 11 : i64} {
  func.func @_conv_bn_relu_pool_kernel(%arg0: i32, %arg1: memref<4x128x27xbf16, #tpu.memory_space<vmem>>, %arg2: memref<27x128xbf16, #tpu.memory_space<vmem>>, %arg3: memref<1x128xf32, #tpu.memory_space<vmem>>, %arg4: memref<128x128xf32, #tpu.memory_space<vmem>>) attributes {dimension_semantics = [#tpu.dimension_semantics<parallel>], iteration_bounds = array<i64: 1>, scalar_prefetch = 0 : i64, scratch_operands = 0 : i64, tpu.core_type = #tpu.core_type<tc>, window_params = [{transform_indices = @transform_0, window_bounds = array<i64: 4, 128, 27>}, {pipeline_mode = #tpu.pipeline_mode<synchronous>, transform_indices = @transform_1, window_bounds = array<i64: 27, 128>}, {pipeline_mode = #tpu.pipeline_mode<synchronous>, transform_indices = @transform_2, window_bounds = array<i64: 1, 128>}, {transform_indices = @transform_3, window_bounds = array<i64: 128, 128>}]} {
    %c0 = arith.constant 0 : index
    %c0_0 = arith.constant 0 : index
    %0 = vector.load %arg2[%c0, %c0_0] : memref<27x128xbf16, #tpu.memory_space<vmem>>, vector<27x128xbf16>
    %c0_1 = arith.constant 0 : index
    %c0_2 = arith.constant 0 : index
    %c0_3 = arith.constant 0 : index
    %1 = vector.load %arg1[%c0_1, %c0_2, %c0_3] : memref<4x128x27xbf16, #tpu.memory_space<vmem>>, vector<1x128x27xbf16>
    %2 = vector.shape_cast %1 : vector<1x128x27xbf16> to vector<128x27xbf16>
    %cst = arith.constant dense<0.000000e+00> : vector<128x128xf32>
    %3 = tpu.matmul %2, %0, %cst {dimension_numbers = #tpu.dot_dimension_numbers<[1], [0], [0], [1], [0, 0, 1, 1], [], []>} : vector<128x27xbf16>, vector<27x128xbf16>, vector<128x128xf32> -> vector<128x128xf32>
    %c1 = arith.constant 1 : index
    %c0_4 = arith.constant 0 : index
    %c0_5 = arith.constant 0 : index
    %4 = vector.load %arg1[%c1, %c0_4, %c0_5] : memref<4x128x27xbf16, #tpu.memory_space<vmem>>, vector<1x128x27xbf16>
    %5 = vector.shape_cast %4 : vector<1x128x27xbf16> to vector<128x27xbf16>
    %cst_6 = arith.constant dense<0.000000e+00> : vector<128x128xf32>
    %6 = tpu.matmul %5, %0, %cst_6 {dimension_numbers = #tpu.dot_dimension_numbers<[1], [0], [0], [1], [0, 0, 1, 1], [], []>} : vector<128x27xbf16>, vector<27x128xbf16>, vector<128x128xf32> -> vector<128x128xf32>
    %7 = arith.maximumf %3, %6 : vector<128x128xf32>
    %c2 = arith.constant 2 : index
    %c0_7 = arith.constant 0 : index
    %c0_8 = arith.constant 0 : index
    %8 = vector.load %arg1[%c2, %c0_7, %c0_8] : memref<4x128x27xbf16, #tpu.memory_space<vmem>>, vector<1x128x27xbf16>
    %9 = vector.shape_cast %8 : vector<1x128x27xbf16> to vector<128x27xbf16>
    %cst_9 = arith.constant dense<0.000000e+00> : vector<128x128xf32>
    %10 = tpu.matmul %9, %0, %cst_9 {dimension_numbers = #tpu.dot_dimension_numbers<[1], [0], [0], [1], [0, 0, 1, 1], [], []>} : vector<128x27xbf16>, vector<27x128xbf16>, vector<128x128xf32> -> vector<128x128xf32>
    %11 = arith.maximumf %7, %10 : vector<128x128xf32>
    %c3 = arith.constant 3 : index
    %c0_10 = arith.constant 0 : index
    %c0_11 = arith.constant 0 : index
    %12 = vector.load %arg1[%c3, %c0_10, %c0_11] : memref<4x128x27xbf16, #tpu.memory_space<vmem>>, vector<1x128x27xbf16>
    %13 = vector.shape_cast %12 : vector<1x128x27xbf16> to vector<128x27xbf16>
    %cst_12 = arith.constant dense<0.000000e+00> : vector<128x128xf32>
    %14 = tpu.matmul %13, %0, %cst_12 {dimension_numbers = #tpu.dot_dimension_numbers<[1], [0], [0], [1], [0, 0, 1, 1], [], []>} : vector<128x27xbf16>, vector<27x128xbf16>, vector<128x128xf32> -> vector<128x128xf32>
    %15 = arith.maximumf %11, %14 : vector<128x128xf32>
    %c0_13 = arith.constant 0 : index
    %c0_14 = arith.constant 0 : index
    %16 = vector.load %arg3[%c0_13, %c0_14] : memref<1x128xf32, #tpu.memory_space<vmem>>, vector<1x128xf32>
    %17 = vector.broadcast %16 : vector<1x128xf32> to vector<128x128xf32>
    %18 = arith.addf %15, %17 : vector<128x128xf32>
    %cst_15 = arith.constant 0.000000e+00 : f32
    %19 = vector.broadcast %cst_15 : f32 to vector<128x128xf32>
    %20 = arith.maximumf %18, %19 : vector<128x128xf32>
    %c0_16 = arith.constant 0 : index
    %c0_17 = arith.constant 0 : index
    %21 = vector.load %arg4[%c0_16, %c0_17] : memref<128x128xf32, #tpu.memory_space<vmem>>, vector<128x128xf32>
    tpu.vector_store %arg4[%c0_16, %c0_17], %20 {strides = array<i32>} : memref<128x128xf32, #tpu.memory_space<vmem>>, vector<128x128xf32>,
    return
  }
  func.func @transform_0(%arg0: i32) -> (i32, i32, i32) {
    %c0_i32 = arith.constant 0 : i32
    %c0_i32_0 = arith.constant 0 : i32
    %c0_i32_1 = arith.constant 0 : i32
    return %c0_i32, %arg0, %c0_i32_0 : i32, i32, i32
  }
  func.func @transform_1(%arg0: i32) -> (i32, i32) {
    %c0_i32 = arith.constant 0 : i32
    %c0_i32_0 = arith.constant 0 : i32
    %c0_i32_1 = arith.constant 0 : i32
    return %c0_i32, %c0_i32_0 : i32, i32
  }
  func.func @transform_2(%arg0: i32) -> (i32, i32) {
    %c0_i32 = arith.constant 0 : i32
    %c0_i32_0 = arith.constant 0 : i32
    %c0_i32_1 = arith.constant 0 : i32
    return %c0_i32, %c0_i32_0 : i32, i32
  }
  func.func @transform_3(%arg0: i32) -> (i32, i32) {
    %c0_i32 = arith.constant 0 : i32
    %c0_i32_0 = arith.constant 0 : i32
    return %arg0, %c0_i32 : i32, i32
  }
}

module attributes {stable_mosaic.version = 11 : i64} {
  func.func @_conv_bn_relu_pool_kernel(%arg0: i32, %arg1: memref<4x32x576xbf16, #tpu.memory_space<vmem>>, %arg2: memref<576x128xbf16, #tpu.memory_space<vmem>>, %arg3: memref<1x128xf32, #tpu.memory_space<vmem>>, %arg4: memref<32x128xf32, #tpu.memory_space<vmem>>) attributes {dimension_semantics = [#tpu.dimension_semantics<parallel>], iteration_bounds = array<i64: 1>, scalar_prefetch = 0 : i64, scratch_operands = 0 : i64, tpu.core_type = #tpu.core_type<tc>, window_params = [{transform_indices = @transform_0, window_bounds = array<i64: 4, 32, 576>}, {pipeline_mode = #tpu.pipeline_mode<synchronous>, transform_indices = @transform_1, window_bounds = array<i64: 576, 128>}, {pipeline_mode = #tpu.pipeline_mode<synchronous>, transform_indices = @transform_2, window_bounds = array<i64: 1, 128>}, {transform_indices = @transform_3, window_bounds = array<i64: 32, 128>}]} {
    %c0 = arith.constant 0 : index
    %c0_0 = arith.constant 0 : index
    %0 = vector.load %arg2[%c0, %c0_0] : memref<576x128xbf16, #tpu.memory_space<vmem>>, vector<576x128xbf16>
    %c0_1 = arith.constant 0 : index
    %c0_2 = arith.constant 0 : index
    %c0_3 = arith.constant 0 : index
    %1 = vector.load %arg1[%c0_1, %c0_2, %c0_3] : memref<4x32x576xbf16, #tpu.memory_space<vmem>>, vector<1x32x576xbf16>
    %2 = vector.shape_cast %1 : vector<1x32x576xbf16> to vector<32x576xbf16>
    %cst = arith.constant dense<0.000000e+00> : vector<32x128xf32>
    %3 = tpu.matmul %2, %0, %cst {dimension_numbers = #tpu.dot_dimension_numbers<[1], [0], [0], [1], [0, 0, 1, 1], [], []>} : vector<32x576xbf16>, vector<576x128xbf16>, vector<32x128xf32> -> vector<32x128xf32>
    %c1 = arith.constant 1 : index
    %c0_4 = arith.constant 0 : index
    %c0_5 = arith.constant 0 : index
    %4 = vector.load %arg1[%c1, %c0_4, %c0_5] : memref<4x32x576xbf16, #tpu.memory_space<vmem>>, vector<1x32x576xbf16>
    %5 = vector.shape_cast %4 : vector<1x32x576xbf16> to vector<32x576xbf16>
    %cst_6 = arith.constant dense<0.000000e+00> : vector<32x128xf32>
    %6 = tpu.matmul %5, %0, %cst_6 {dimension_numbers = #tpu.dot_dimension_numbers<[1], [0], [0], [1], [0, 0, 1, 1], [], []>} : vector<32x576xbf16>, vector<576x128xbf16>, vector<32x128xf32> -> vector<32x128xf32>
    %7 = arith.maximumf %3, %6 : vector<32x128xf32>
    %c2 = arith.constant 2 : index
    %c0_7 = arith.constant 0 : index
    %c0_8 = arith.constant 0 : index
    %8 = vector.load %arg1[%c2, %c0_7, %c0_8] : memref<4x32x576xbf16, #tpu.memory_space<vmem>>, vector<1x32x576xbf16>
    %9 = vector.shape_cast %8 : vector<1x32x576xbf16> to vector<32x576xbf16>
    %cst_9 = arith.constant dense<0.000000e+00> : vector<32x128xf32>
    %10 = tpu.matmul %9, %0, %cst_9 {dimension_numbers = #tpu.dot_dimension_numbers<[1], [0], [0], [1], [0, 0, 1, 1], [], []>} : vector<32x576xbf16>, vector<576x128xbf16>, vector<32x128xf32> -> vector<32x128xf32>
    %11 = arith.maximumf %7, %10 : vector<32x128xf32>
    %c3 = arith.constant 3 : index
    %c0_10 = arith.constant 0 : index
    %c0_11 = arith.constant 0 : index
    %12 = vector.load %arg1[%c3, %c0_10, %c0_11] : memref<4x32x576xbf16, #tpu.memory_space<vmem>>, vector<1x32x576xbf16>
    %13 = vector.shape_cast %12 : vector<1x32x576xbf16> to vector<32x576xbf16>
    %cst_12 = arith.constant dense<0.000000e+00> : vector<32x128xf32>
    %14 = tpu.matmul %13, %0, %cst_12 {dimension_numbers = #tpu.dot_dimension_numbers<[1], [0], [0], [1], [0, 0, 1, 1], [], []>} : vector<32x576xbf16>, vector<576x128xbf16>, vector<32x128xf32> -> vector<32x128xf32>
    %15 = arith.maximumf %11, %14 : vector<32x128xf32>
    %c0_13 = arith.constant 0 : index
    %c0_14 = arith.constant 0 : index
    %16 = vector.load %arg3[%c0_13, %c0_14] : memref<1x128xf32, #tpu.memory_space<vmem>>, vector<1x128xf32>
    %17 = vector.broadcast %16 : vector<1x128xf32> to vector<32x128xf32>
    %18 = arith.addf %15, %17 : vector<32x128xf32>
    %cst_15 = arith.constant 0.000000e+00 : f32
    %19 = vector.broadcast %cst_15 : f32 to vector<32x128xf32>
    %20 = arith.maximumf %18, %19 : vector<32x128xf32>
    %c0_16 = arith.constant 0 : index
    %c0_17 = arith.constant 0 : index
    %21 = vector.load %arg4[%c0_16, %c0_17] : memref<32x128xf32, #tpu.memory_space<vmem>>, vector<32x128xf32>
    tpu.vector_store %arg4[%c0_16, %c0_17], %20 {strides = array<i32>} : memref<32x128xf32, #tpu.memory_space<vmem>>, vector<32x128xf32>,
    return
  }
  func.func @transform_0(%arg0: i32) -> (i32, i32, i32) {
    %c0_i32 = arith.constant 0 : i32
    %c0_i32_0 = arith.constant 0 : i32
    %c0_i32_1 = arith.constant 0 : i32
    return %c0_i32, %arg0, %c0_i32_0 : i32, i32, i32
  }
  func.func @transform_1(%arg0: i32) -> (i32, i32) {
    %c0_i32 = arith.constant 0 : i32
    %c0_i32_0 = arith.constant 0 : i32
    %c0_i32_1 = arith.constant 0 : i32
    return %c0_i32, %c0_i32_0 : i32, i32
  }
  func.func @transform_2(%arg0: i32) -> (i32, i32) {
    %c0_i32 = arith.constant 0 : i32
    %c0_i32_0 = arith.constant 0 : i32
    %c0_i32_1 = arith.constant 0 : i32
    return %c0_i32, %c0_i32_0 : i32, i32
  }
  func.func @transform_3(%arg0: i32) -> (i32, i32) {
    %c0_i32 = arith.constant 0 : i32
    %c0_i32_0 = arith.constant 0 : i32
    return %arg0, %c0_i32 : i32, i32
  }
}

module attributes {stable_mosaic.version = 11 : i64} {
  func.func @_gram_kernel(%arg0: i32, %arg1: memref<1x16x128xf32, #tpu.memory_space<vmem>>, %arg2: memref<1x128x128xf32, #tpu.memory_space<vmem>>) attributes {dimension_semantics = [#tpu.dimension_semantics<parallel>], iteration_bounds = array<i64: 2>, scalar_prefetch = 0 : i64, scratch_operands = 0 : i64, tpu.core_type = #tpu.core_type<tc>, window_params = [{transform_indices = @transform_0, window_bounds = array<i64: 1, 16, 128>}, {transform_indices = @transform_1, window_bounds = array<i64: 1, 128, 128>}]} {
    %c0 = arith.constant 0 : index
    %c0_0 = arith.constant 0 : index
    %c0_1 = arith.constant 0 : index
    %0 = vector.load %arg1[%c0, %c0_0, %c0_1] : memref<1x16x128xf32, #tpu.memory_space<vmem>>, vector<1x16x128xf32>
    %1 = vector.shape_cast %0 : vector<1x16x128xf32> to vector<16x128xf32>
    %cst = arith.constant dense<0.000000e+00> : vector<128x128xf32>
    %2 = tpu.matmul %1, %1, %cst {dimension_numbers = #tpu.dot_dimension_numbers<[0], [0], [1], [1], [0, 1, 1, 1], [], []>} : vector<16x128xf32>, vector<16x128xf32>, vector<128x128xf32> -> vector<128x128xf32>
    %cst_2 = arith.constant 6.250000e-02 : f32
    %3 = vector.broadcast %cst_2 : f32 to vector<128x128xf32>
    %4 = arith.mulf %2, %3 : vector<128x128xf32>
    %c0_3 = arith.constant 0 : index
    %c0_4 = arith.constant 0 : index
    %c0_5 = arith.constant 0 : index
    %5 = vector.load %arg2[%c0_3, %c0_4, %c0_5] : memref<1x128x128xf32, #tpu.memory_space<vmem>>, vector<1x128x128xf32>
    %6 = vector.shape_cast %5 : vector<1x128x128xf32> to vector<128x128xf32>
    %7 = vector.shape_cast %4 : vector<128x128xf32> to vector<1x128x128xf32>
    tpu.vector_store %arg2[%c0_3, %c0_4, %c0_5], %7 {strides = array<i32>} : memref<1x128x128xf32, #tpu.memory_space<vmem>>, vector<1x128x128xf32>,
    return
  }
  func.func @transform_0(%arg0: i32) -> (i32, i32, i32) {
    %c0_i32 = arith.constant 0 : i32
    %c0_i32_0 = arith.constant 0 : i32
    %c0_i32_1 = arith.constant 0 : i32
    return %arg0, %c0_i32, %c0_i32_0 : i32, i32, i32
  }
  func.func @transform_1(%arg0: i32) -> (i32, i32, i32) {
    %c0_i32 = arith.constant 0 : i32
    %c0_i32_0 = arith.constant 0 : i32
    %c0_i32_1 = arith.constant 0 : i32
    return %arg0, %c0_i32, %c0_i32_0 : i32, i32, i32
  }
}

module attributes {stable_mosaic.version = 11 : i64} {
  func.func @_linear_kernel(%arg0: i32, %arg1: i32, %arg2: memref<2x1024xf32, #tpu.memory_space<vmem>>, %arg3: memref<1024x512xbf16, #tpu.memory_space<vmem>>, %arg4: memref<1x512xf32, #tpu.memory_space<vmem>>, %arg5: memref<2x512xf32, #tpu.memory_space<vmem>>, %arg6: memref<2x512xf32, #tpu.memory_space<vmem>>) attributes {dimension_semantics = [#tpu.dimension_semantics<parallel>, #tpu.dimension_semantics<arbitrary>], iteration_bounds = array<i64: 2, 16>, scalar_prefetch = 0 : i64, scratch_operands = 1 : i64, tpu.core_type = #tpu.core_type<tc>, window_params = [{transform_indices = @transform_0, window_bounds = array<i64: 2, 1024>}, {transform_indices = @transform_1, window_bounds = array<i64: 1024, 512>}, {transform_indices = @transform_2, window_bounds = array<i64: 1, 512>}, {transform_indices = @transform_3, window_bounds = array<i64: 2, 512>}]} {
    %c0_i32 = arith.constant 0 : i32
    %0 = arith.cmpi eq, %arg1, %c0_i32 : i32
    %1 = arith.extui %0 : i1 to i32
    %c0_i32_0 = arith.constant 0 : i32
    %2 = arith.cmpi ne, %1, %c0_i32_0 : i32
    scf.if %2 {
      %cst_9 = arith.constant 0.000000e+00 : f32
      %13 = vector.broadcast %cst_9 : f32 to vector<2x512xf32>
      %c0_10 = arith.constant 0 : index
      %c0_11 = arith.constant 0 : index
      %14 = vector.load %arg6[%c0_10, %c0_11] : memref<2x512xf32, #tpu.memory_space<vmem>>, vector<2x512xf32>
      tpu.vector_store %arg6[%c0_10, %c0_11], %13 {strides = array<i32>} : memref<2x512xf32, #tpu.memory_space<vmem>>, vector<2x512xf32>,
    } else {
    }
    %c0 = arith.constant 0 : index
    %c0_1 = arith.constant 0 : index
    %3 = vector.load %arg6[%c0, %c0_1] : memref<2x512xf32, #tpu.memory_space<vmem>>, vector<2x512xf32>
    %c0_2 = arith.constant 0 : index
    %c0_3 = arith.constant 0 : index
    %4 = vector.load %arg2[%c0_2, %c0_3] : memref<2x1024xf32, #tpu.memory_space<vmem>>, vector<2x1024xf32>
    %5 = arith.truncf %4 : vector<2x1024xf32> to vector<2x1024xbf16>
    %c0_4 = arith.constant 0 : index
    %c0_5 = arith.constant 0 : index
    %6 = vector.load %arg3[%c0_4, %c0_5] : memref<1024x512xbf16, #tpu.memory_space<vmem>>, vector<1024x512xbf16>
    %cst = arith.constant dense<0.000000e+00> : vector<2x512xf32>
    %7 = tpu.matmul %5, %6, %cst {dimension_numbers = #tpu.dot_dimension_numbers<[1], [0], [0], [1], [0, 0, 1, 1], [], []>} : vector<2x1024xbf16>, vector<1024x512xbf16>, vector<2x512xf32> -> vector<2x512xf32>
    %8 = arith.addf %3, %7 : vector<2x512xf32>
    %c0_6 = arith.constant 0 : index
    %c0_7 = arith.constant 0 : index
    %9 = vector.load %arg6[%c0_6, %c0_7] : memref<2x512xf32, #tpu.memory_space<vmem>>, vector<2x512xf32>
    tpu.vector_store %arg6[%c0_6, %c0_7], %8 {strides = array<i32>} : memref<2x512xf32, #tpu.memory_space<vmem>>, vector<2x512xf32>,
    %c15_i32 = arith.constant 15 : i32
    %10 = arith.cmpi eq, %arg1, %c15_i32 : i32
    %11 = arith.extui %10 : i1 to i32
    %c0_i32_8 = arith.constant 0 : i32
    %12 = arith.cmpi ne, %11, %c0_i32_8 : i32
    scf.if %12 {
      %c0_9 = arith.constant 0 : index
      %c0_10 = arith.constant 0 : index
      %13 = vector.load %arg6[%c0_9, %c0_10] : memref<2x512xf32, #tpu.memory_space<vmem>>, vector<2x512xf32>
      %c0_11 = arith.constant 0 : index
      %c0_12 = arith.constant 0 : index
      %14 = vector.load %arg4[%c0_11, %c0_12] : memref<1x512xf32, #tpu.memory_space<vmem>>, vector<1x512xf32>
      %15 = vector.broadcast %14 : vector<1x512xf32> to vector<2x512xf32>
      %16 = arith.addf %13, %15 : vector<2x512xf32>
      %c0_13 = arith.constant 0 : index
      %c0_14 = arith.constant 0 : index
      %17 = vector.load %arg5[%c0_13, %c0_14] : memref<2x512xf32, #tpu.memory_space<vmem>>, vector<2x512xf32>
      tpu.vector_store %arg5[%c0_13, %c0_14], %16 {strides = array<i32>} : memref<2x512xf32, #tpu.memory_space<vmem>>, vector<2x512xf32>,
    } else {
    }
    return
  }
  func.func @transform_0(%arg0: i32, %arg1: i32) -> (i32, i32) {
    %c0_i32 = arith.constant 0 : i32
    %c0_i32_0 = arith.constant 0 : i32
    return %c0_i32, %arg1 : i32, i32
  }
  func.func @transform_1(%arg0: i32, %arg1: i32) -> (i32, i32) {
    %c0_i32 = arith.constant 0 : i32
    return %arg1, %arg0 : i32, i32
  }
  func.func @transform_2(%arg0: i32, %arg1: i32) -> (i32, i32) {
    %c0_i32 = arith.constant 0 : i32
    %c0_i32_0 = arith.constant 0 : i32
    return %c0_i32, %arg0 : i32, i32
  }
  func.func @transform_3(%arg0: i32, %arg1: i32) -> (i32, i32) {
    %c0_i32 = arith.constant 0 : i32
    %c0_i32_0 = arith.constant 0 : i32
    return %c0_i32, %arg0 : i32, i32
  }
}

module attributes {stable_mosaic.version = 11 : i64} {
  func.func @_linear_kernel(%arg0: i32, %arg1: i32, %arg2: memref<2x1024xf32, #tpu.memory_space<vmem>>, %arg3: memref<1024x15xbf16, #tpu.memory_space<vmem>>, %arg4: memref<1x15xf32, #tpu.memory_space<vmem>>, %arg5: memref<2x15xf32, #tpu.memory_space<vmem>>, %arg6: memref<2x15xf32, #tpu.memory_space<vmem>>) attributes {dimension_semantics = [#tpu.dimension_semantics<parallel>, #tpu.dimension_semantics<arbitrary>], iteration_bounds = array<i64: 1, 1>, scalar_prefetch = 0 : i64, scratch_operands = 1 : i64, tpu.core_type = #tpu.core_type<tc>, window_params = [{transform_indices = @transform_0, window_bounds = array<i64: 2, 1024>}, {transform_indices = @transform_1, window_bounds = array<i64: 1024, 15>}, {transform_indices = @transform_2, window_bounds = array<i64: 1, 15>}, {transform_indices = @transform_3, window_bounds = array<i64: 2, 15>}]} {
    %c0_i32 = arith.constant 0 : i32
    %0 = arith.cmpi eq, %arg1, %c0_i32 : i32
    %1 = arith.extui %0 : i1 to i32
    %c0_i32_0 = arith.constant 0 : i32
    %2 = arith.cmpi ne, %1, %c0_i32_0 : i32
    scf.if %2 {
      %cst_10 = arith.constant 0.000000e+00 : f32
      %13 = vector.broadcast %cst_10 : f32 to vector<2x15xf32>
      %c0_11 = arith.constant 0 : index
      %c0_12 = arith.constant 0 : index
      %14 = vector.load %arg6[%c0_11, %c0_12] : memref<2x15xf32, #tpu.memory_space<vmem>>, vector<2x15xf32>
      tpu.vector_store %arg6[%c0_11, %c0_12], %13 {strides = array<i32>} : memref<2x15xf32, #tpu.memory_space<vmem>>, vector<2x15xf32>,
    } else {
    }
    %c0 = arith.constant 0 : index
    %c0_1 = arith.constant 0 : index
    %3 = vector.load %arg6[%c0, %c0_1] : memref<2x15xf32, #tpu.memory_space<vmem>>, vector<2x15xf32>
    %c0_2 = arith.constant 0 : index
    %c0_3 = arith.constant 0 : index
    %4 = vector.load %arg2[%c0_2, %c0_3] : memref<2x1024xf32, #tpu.memory_space<vmem>>, vector<2x1024xf32>
    %5 = arith.truncf %4 : vector<2x1024xf32> to vector<2x1024xbf16>
    %c0_4 = arith.constant 0 : index
    %c0_5 = arith.constant 0 : index
    %6 = vector.load %arg3[%c0_4, %c0_5] : memref<1024x15xbf16, #tpu.memory_space<vmem>>, vector<1024x15xbf16>
    %cst = arith.constant dense<0.000000e+00> : vector<2x15xf32>
    %7 = tpu.matmul %5, %6, %cst {dimension_numbers = #tpu.dot_dimension_numbers<[1], [0], [0], [1], [0, 0, 1, 1], [], []>} : vector<2x1024xbf16>, vector<1024x15xbf16>, vector<2x15xf32> -> vector<2x15xf32>
    %8 = arith.addf %3, %7 : vector<2x15xf32>
    %c0_6 = arith.constant 0 : index
    %c0_7 = arith.constant 0 : index
    %9 = vector.load %arg6[%c0_6, %c0_7] : memref<2x15xf32, #tpu.memory_space<vmem>>, vector<2x15xf32>
    tpu.vector_store %arg6[%c0_6, %c0_7], %8 {strides = array<i32>} : memref<2x15xf32, #tpu.memory_space<vmem>>, vector<2x15xf32>,
    %c0_i32_8 = arith.constant 0 : i32
    %10 = arith.cmpi eq, %arg1, %c0_i32_8 : i32
    %11 = arith.extui %10 : i1 to i32
    %c0_i32_9 = arith.constant 0 : i32
    %12 = arith.cmpi ne, %11, %c0_i32_9 : i32
    scf.if %12 {
      %c0_10 = arith.constant 0 : index
      %c0_11 = arith.constant 0 : index
      %13 = vector.load %arg6[%c0_10, %c0_11] : memref<2x15xf32, #tpu.memory_space<vmem>>, vector<2x15xf32>
      %c0_12 = arith.constant 0 : index
      %c0_13 = arith.constant 0 : index
      %14 = vector.load %arg4[%c0_12, %c0_13] : memref<1x15xf32, #tpu.memory_space<vmem>>, vector<1x15xf32>
      %15 = vector.broadcast %14 : vector<1x15xf32> to vector<2x15xf32>
      %16 = arith.addf %13, %15 : vector<2x15xf32>
      %c0_14 = arith.constant 0 : index
      %c0_15 = arith.constant 0 : index
      %17 = vector.load %arg5[%c0_14, %c0_15] : memref<2x15xf32, #tpu.memory_space<vmem>>, vector<2x15xf32>
      tpu.vector_store %arg5[%c0_14, %c0_15], %16 {strides = array<i32>} : memref<2x15xf32, #tpu.memory_space<vmem>>, vector<2x15xf32>,
    } else {
    }
    return
  }
  func.func @transform_0(%arg0: i32, %arg1: i32) -> (i32, i32) {
    %c0_i32 = arith.constant 0 : i32
    %c0_i32_0 = arith.constant 0 : i32
    return %c0_i32, %arg1 : i32, i32
  }
  func.func @transform_1(%arg0: i32, %arg1: i32) -> (i32, i32) {
    %c0_i32 = arith.constant 0 : i32
    return %arg1, %arg0 : i32, i32
  }
  func.func @transform_2(%arg0: i32, %arg1: i32) -> (i32, i32) {
    %c0_i32 = arith.constant 0 : i32
    %c0_i32_0 = arith.constant 0 : i32
    return %c0_i32, %arg0 : i32, i32
  }
  func.func @transform_3(%arg0: i32, %arg1: i32) -> (i32, i32) {
    %c0_i32 = arith.constant 0 : i32
    %c0_i32_0 = arith.constant 0 : i32
    return %c0_i32, %arg0 : i32, i32
  }
}

</mosaic_0001>

<bundles_post_ra>
// kernel: forward.5
= control target key start
LH: loop header
LB: loop body
LE: loop exit
PB: predicated region body
PF: predicated region fallthrough
CT: control target
= control target key end

     0   :  { %8 = vsyncpa [#allocation3], 0  ;;  %s1554_s0 = inlined_call_operand.vmem [shape: bf16[4,128,27], index: 0, kind: input, shape index: {}]   ;;  %s1555_s1 = inlined_call_operand.hbm [shape: bf16[27,128], index: 1, kind: input, shape index: {}]   ;;  %s1556_s2 = inlined_call_operand.hbm [shape: f32[1,128], index: 2, kind: input, shape index: {}]   ;;  %s1557_s3 = inlined_call_operand.vmem [shape: f32[128,128], index: 3, kind: output, shape index: {}]  }
   0x1   :  { %9 = vsyncpa [#allocation5], 0  ;;  %s1206_s12 = smov [#allocation2]   ;;  %s1158_s16 = scalar_lea.hbm %s1555_s1, 256 }
   0x2   :  { %s17_s13 = sshll.u32 %s1206_s12, 4  ;;  %p1159_p0 = scmp.ne.s32.totalorder %s1555_s1, %s1158_s16  ;;  %s18_s13 = int_to_ptr.vmem [resolvable:$true] %s17_s13 }
   0x3   :  { %p1162_p1 = scmp.lt.u32.totalorder %s1158_s16, %s1555_s1 }
   0x5   :  { %p1164_p2 = pnand %p1162_p1, %p1159_p0 }
   0x7   :  { %1167 = shalt.err (!%p1164_p2)
}
   0x8   :  { %s1168_s21 = scalar_lea.vmem %s18_s13, 256  ;;  %p1173_p4 = scmp.lt.s32.totalorder %s18_s13, %s18_s13 }
   0x9   :  { %p1169_p3 = scmp.ne.s32.totalorder %s18_s13, %s1168_s21  ;;  %p1174_p5 = scmp.lt.s32.totalorder %s1168_s21, %s1168_s21 }
   0xb   :  { %p1175_p6 = por %p1174_p5, %p1173_p4 }
   0xd   :  { %p1176_p7 = pnand %p1175_p6, %p1169_p3 }
   0xf   :  { %1179 = shalt.err (!%p1176_p7)
}
  0x10   :  { %s1207_s22 = smov 64   ;;  %s1208_s23 = smov 4  }
  0x11   :  { %23 = dma.hbm_to_vmem [thread:$0]  %s1555_s1, 256, %s18_s13, [#allocation3], %s1207_s22, %s1207_s22, %s1208_s23  }
  0x12   :  { %s1209_s26 = smov [#allocation4]   ;;  %s1180_s30 = scalar_lea.hbm %s1556_s2, 16 }
  0x13   :  { %s30_s27 = sshll.u32 %s1209_s26, 4  ;;  %p1181_p8 = scmp.ne.s32.totalorder %s1556_s2, %s1180_s30  ;;  %s31_s27 = int_to_ptr.vmem [resolvable:$true] %s30_s27 }
  0x14   :  { %p1184_p9 = scmp.lt.u32.totalorder %s1180_s30, %s1556_s2 }
  0x16   :  { %p1186_p10 = pnand %p1184_p9, %p1181_p8 }
  0x18   :  { %1189 = shalt.err (!%p1186_p10)
}
  0x19   :  { %s1190_s8 = scalar_lea.vmem %s31_s27, 16  ;;  %s1194_s1 = scalar_lea.vmem %s31_s27, 32 }
  0x1a   :  { %p1191_p11 = scmp.ne.s32.totalorder %s31_s27, %s1190_s8  ;;  %p1195_p12 = scmp.lt.s32.totalorder %s31_s27, %s31_s27 }
  0x1b   :  { %p1196_p13 = scmp.lt.s32.totalorder %s1194_s1, %s1190_s8 }
  0x1d   :  { %p1197_p0 = por %p1196_p13, %p1195_p12 }
  0x1f   :  { %p1198_p1 = pnand %p1197_p0, %p1191_p11 }
  0x21   :  { %1201 = shalt.err (!%p1198_p1)
}
  0x22   :  { %33 = dma.hbm_to_vmem [thread:$0]  %s1556_s2, 16, %s31_s27, [#allocation5]  }
  0x23   :  { %1202 = dma.done.wait [#allocation3], 256  }
  0x24   :  { %1203 = vsyncadd [#allocation3], 4294967040 }
  0x25   :  { %1204 = dma.done.wait [#allocation5], 16  }
  0x26   :  { %1205 = vsyncadd [#allocation5], 4294967280  ;;  %vm137_vm0 = vcmask 1044480   ;;  %vm138_vm1 = vcmask 1045504   ;;  %v1210_v0 = vmov 65535   ;;  %vm112_vm2 = vcmask 220160  }
  0x27   :  { %v139_v1 = vsel %vm137_vm0, 4294967295, %v1210_v0  ;;  %v1124_v2 = vld [vmem:[#allocation2] sm:$0xff]   ;;  %v1125_v4 = vld [vmem:[#allocation2 + $0x8] sm:$0x3f]   ;;  %v1130_v10 = vld [vmem:[%s1554_s0 + $0x10] sm:$0xff]  }
  0x28   :  { %v140_v3 = vsel %vm138_vm1, %v139_v1, 0  ;;  %1039 = vmatprep.subr.bf16.mxu0 %v1124_v2  ;;  %1059 = vmatprep.subr.bf16.mxu1 %v1124_v2  ;;  %v1126_v5 = vld [vmem:[%s1554_s0] sm:$0xff]   ;;  %v1128_v8 = vld [vmem:[%s1554_s0 + $0x8] sm:$0xff]   ;;  %v1131_v11 = vld [vmem:[%s1554_s0 + $0x50] sm:$0xff]  }
  0x29   :  { %1040 = vmatpush3.bf16.msra.mxu0 %v1124_v2  ;;  %1060 = vmatpush3.bf16.msra.mxu1 %v1124_v2  ;;  %v142_v6 = vand.u32 %v1125_v4, %v140_v3  ;;  %v1127_v7 = vld [vmem:[%s1554_s0 + $0x40] sm:$0xff]   ;;  %v1129_v9 = vld [vmem:[%s1554_s0 + $0x48] sm:$0xff]   ;;  %v1132_v12 = vld [vmem:[%s1554_s0 + $0x18] sm:$0xff]  }
  0x2a   :  { %1043 = vmatprep.mubr.msk.bf16.mxu0 %vm112_vm2, %v1126_v5  ;;  %1063 = vmatprep.mubr.msk.bf16.mxu1 %vm112_vm2, %v1127_v7  ;;  %v1133_v13 = vld [vmem:[%s1554_s0 + $0x58] sm:$0xff]   ;;  %v1134_v14 = vld [vmem:[%s1554_s0 + $0x20] sm:$0xff]   ;;  %v1136_v16 = vld [vmem:[%s1554_s0 + $0x28] sm:$0xff]  }
  0x2b   :  { %1041 = vmatprep.subr.bf16.mxu0 %v142_v6  ;;  %1061 = vmatprep.subr.bf16.mxu1 %v142_v6  ;;  %v1135_v15 = vld [vmem:[%s1554_s0 + $0x60] sm:$0xff]   ;;  %v1137_v17 = vld [vmem:[%s1554_s0 + $0x68] sm:$0xff]   ;;  %v1138_v18 = vld [vmem:[%s1554_s0 + $0x30] sm:$0xff]  }
  0x2c   :  { %v1139_v19 = vld [vmem:[%s1554_s0 + $0x70] sm:$0xff]   ;;  %v1140_v20 = vld [vmem:[%s1554_s0 + $0x38] sm:$0xff]   ;;  %v1142_v22 = vld [vmem:[%s1554_s0 + $0x80] sm:$0xff]  }
  0x2d   :  { %1042 = vmatpush3.bf16.msra.mxu0 %v142_v6  ;;  %1062 = vmatpush3.bf16.msra.mxu1 %v142_v6  ;;  %v1141_v21 = vld [vmem:[%s1554_s0 + $0x78] sm:$0xff]   ;;  %v1143_v23 = vld [vmem:[%s1554_s0 + $0xc0] sm:$0xff]   ;;  %v1144_v24 = vld [vmem:[%s1554_s0 + $0x88] sm:$0xff]  }
  0x2e   :  { %1079 = vmatprep.subr.bf16.mxu0 %v1124_v2  ;;  %1099 = vmatprep.subr.bf16.mxu1 %v1124_v2  ;;  %v1145_v25 = vld [vmem:[%s1554_s0 + $0xc8] sm:$0xff]   ;;  %v1146_v26 = vld [vmem:[%s1554_s0 + $0x90] sm:$0xff]   ;;  %v1148_v28 = vld [vmem:[%s1554_s0 + $0x98] sm:$0xff]  }
  0x2f   :  { %v1147_v27 = vld [vmem:[%s1554_s0 + $0xd0] sm:$0xff]   ;;  %v1149_v29 = vld [vmem:[%s1554_s0 + $0xd8] sm:$0xff]   ;;  %v1150_v30 = vld [vmem:[%s1554_s0 + $0xa0] sm:$0xff]  }
  0x30   :  { %1044 = vmatmul.mubr.msk.bf16.vlgmr.msra.gmra.mrb[0].mxu0 %vm112_vm2, %v1128_v8  ;;  %1064 = vmatmul.mubr.msk.bf16.vlgmr.msra.gmra.mrb[0].mxu1 %vm112_vm2, %v1129_v9  ;;  %v1151_v31 = vld [vmem:[%s1554_s0 + $0xe0] sm:$0xff]   ;;  %v1152_v32 = vld [vmem:[%s1554_s0 + $0xa8] sm:$0xff]   ;;  %v1154_v34 = vld [vmem:[%s1554_s0 + $0xb0] sm:$0xff]  }
  0x31   :  { %1080 = vmatpush3.bf16.msra.mxu0 %v1124_v2  ;;  %1100 = vmatpush3.bf16.msra.mxu1 %v1124_v2  ;;  %v1153_v33 = vld [vmem:[%s1554_s0 + $0xe8] sm:$0xff]   ;;  %v1155_v35 = vld [vmem:[%s1554_s0 + $0xf0] sm:$0xff]   ;;  %v1156_v36 = vld [vmem:[%s1554_s0 + $0xb8] sm:$0xff]  }
  0x32   :  { %1047 = vmatprep.mubr.msk.bf16.mxu0 %vm112_vm2, %v1130_v10  ;;  %1067 = vmatprep.mubr.msk.bf16.mxu1 %vm112_vm2, %v1131_v11  ;;  %v1157_v37 = vld [vmem:[%s1554_s0 + $0xf8] sm:$0xff]  }
  0x33   :  { %1081 = vmatprep.subr.bf16.mxu0 %v142_v6  ;;  %1101 = vmatprep.subr.bf16.mxu1 %v142_v6 }
  0x35   :  { %1082 = vmatpush3.bf16.msra.mxu0 %v142_v6  ;;  %1102 = vmatpush3.bf16.msra.mxu1 %v142_v6 }
  0x38   :  { %1048 = vmatmul.mubr.msk.bf16.gmra.mrb[4].mxu0 %vm112_vm2, %v1132_v12  ;;  %1068 = vmatmul.mubr.msk.bf16.gmra.mrb[4].mxu1 %vm112_vm2, %v1133_v13 }
  0x39   :  { %1051 = vmatprep.mubr.msk.bf16.mxu0 %vm112_vm2, %v1134_v14  ;;  %1071 = vmatprep.mubr.msk.bf16.mxu1 %vm112_vm2, %v1135_v15 }
  0x40   :  { %1052 = vmatmul.mubr.msk.bf16.gmra.mrb[8].mxu0 %vm112_vm2, %v1136_v16  ;;  %1072 = vmatmul.mubr.msk.bf16.gmra.mrb[8].mxu1 %vm112_vm2, %v1137_v17 }
  0x41   :  { %1055 = vmatprep.mubr.msk.bf16.mxu0 %vm112_vm2, %v1138_v18  ;;  %1075 = vmatprep.mubr.msk.bf16.mxu1 %vm112_vm2, %v1139_v19 }
  0x48   :  { %1056 = vmatmul.mubr.msk.bf16.gmra.mrb[12].mxu0 %vm112_vm2, %v1140_v20  ;;  %1076 = vmatmul.mubr.msk.bf16.gmra.mrb[12].mxu1 %vm112_vm2, %v1141_v21 }
  0x49   :  { %1083 = vmatprep.mubr.msk.bf16.mxu0 %vm112_vm2, %v1142_v22  ;;  %1103 = vmatprep.mubr.msk.bf16.mxu1 %vm112_vm2, %v1143_v23 }
  0x50   :  { %1084 = vmatmul.mubr.msk.bf16.vlgmr.msra.gmra.mrb[16].mxu0 %vm112_vm2, %v1144_v24  ;;  %1104 = vmatmul.mubr.msk.bf16.vlgmr.msra.gmra.mrb[16].mxu1 %vm112_vm2, %v1145_v25 }
  0x51   :  { %1087 = vmatprep.mubr.msk.bf16.mxu0 %vm112_vm2, %v1146_v26  ;;  %1107 = vmatprep.mubr.msk.bf16.mxu1 %vm112_vm2, %v1147_v27  ;;  %v1455_v27 = vld [vmem:[#allocation4] ss:$0 sm:$0xff] }
  0x58   :  { %1088 = vmatmul.mubr.msk.bf16.gmra.mrb[20].mxu0 %vm112_vm2, %v1148_v28  ;;  %1108 = vmatmul.mubr.msk.bf16.gmra.mrb[20].mxu1 %vm112_vm2, %v1149_v29 }
  0x59   :  { %1091 = vmatprep.mubr.msk.bf16.mxu0 %vm112_vm2, %v1150_v30  ;;  %1111 = vmatprep.mubr.msk.bf16.mxu1 %vm112_vm2, %v1151_v31 }
  0x60   :  { %1092 = vmatmul.mubr.msk.bf16.gmra.mrb[24].mxu0 %vm112_vm2, %v1152_v32  ;;  %1112 = vmatmul.mubr.msk.bf16.gmra.mrb[24].mxu1 %vm112_vm2, %v1153_v33 }
  0x61   :  { %1095 = vmatprep.mubr.msk.bf16.mxu0 %vm112_vm2, %v1154_v34  ;;  %1115 = vmatprep.mubr.msk.bf16.mxu1 %vm112_vm2, %v1155_v35 }
  0x68   :  { %1096 = vmatmul.mubr.msk.bf16.gmra.mrb[28].mxu0 %vm112_vm2, %v1156_v36  ;;  %1116 = vmatmul.mubr.msk.bf16.gmra.mrb[28].mxu1 %vm112_vm2, %v1157_v37 }
 0x103   :  { %v1045_v38 = vpop.f32.mrb[0].mxu0  ;;  %v1065_v39 = vpop.f32.mrb[0].mxu1 }
 0x104   :  { %v421_v40 = vmax.f32 %v1045_v38, %v1065_v39  ;;  %v178_v41 = vpop.f32.mrb[1].mxu0  ;;  %v356_v42 = vpop.f32.mrb[1].mxu1 }
 0x105   :  { %v419_v43 = vmax.f32 %v178_v41, %v356_v42  ;;  %v1046_v44 = vpop.f32.mrb[2].mxu0  ;;  %v1066_v45 = vpop.f32.mrb[2].mxu1 }
 0x106   :  { %v422_v46 = vmax.f32 %v1046_v44, %v1066_v45  ;;  %v181_v47 = vpop.f32.mrb[3].mxu0  ;;  %v359_v48 = vpop.f32.mrb[3].mxu1 }
 0x107   :  { %v420_v49 = vmax.f32 %v181_v47, %v359_v48 }
 0x10b   :  { %v1383_v50 = vpop.f32.mrb[4].mxu0  ;;  %v1385_v51 = vpop.f32.mrb[4].mxu1 }
 0x10c   :  { %v425_v52 = vmax.f32 %v1383_v50, %v1385_v51  ;;  %v1389_v53 = vpop.f32.mrb[5].mxu0  ;;  %v1391_v54 = vpop.f32.mrb[5].mxu1 }
 0x10d   :  { %v423_v55 = vmax.f32 %v1389_v53, %v1391_v54  ;;  %v1395_v56 = vpop.f32.mrb[6].mxu0  ;;  %v1397_v57 = vpop.f32.mrb[6].mxu1 }
 0x10e   :  { %v426_v58 = vmax.f32 %v1395_v56, %v1397_v57  ;;  %v1401_v59 = vpop.f32.mrb[7].mxu0  ;;  %v1403_v60 = vpop.f32.mrb[7].mxu1 }
 0x10f   :  { %v424_v61 = vmax.f32 %v1401_v59, %v1403_v60 }
 0x113   :  { %v1407_v62 = vpop.f32.mrb[8].mxu0  ;;  %v1409_v63 = vpop.f32.mrb[8].mxu1 }
 0x114   :  { %v429_v0 = vmax.f32 %v1407_v62, %v1409_v63  ;;  %v1413_v1 = vpop.f32.mrb[9].mxu0  ;;  %v1415_v2 = vpop.f32.mrb[9].mxu1 }
 0x115   :  { %v427_v3 = vmax.f32 %v1413_v1, %v1415_v2  ;;  %v1419_v4 = vpop.f32.mrb[10].mxu0  ;;  %v1421_v5 = vpop.f32.mrb[10].mxu1 }
 0x116   :  { %v430_v6 = vmax.f32 %v1419_v4, %v1421_v5  ;;  %v1425_v7 = vpop.f32.mrb[11].mxu0  ;;  %v1427_v8 = vpop.f32.mrb[11].mxu1 }
 0x117   :  { %v428_v9 = vmax.f32 %v1425_v7, %v1427_v8 }
 0x11b   :  { %v1431_v10 = vpop.f32.mrb[12].mxu0  ;;  %v1433_v11 = vpop.f32.mrb[12].mxu1 }
 0x11c   :  { %v433_v12 = vmax.f32 %v1431_v10, %v1433_v11  ;;  %v1437_v13 = vpop.f32.mrb[13].mxu0  ;;  %v1439_v14 = vpop.f32.mrb[13].mxu1 }
 0x11d   :  { %v431_v15 = vmax.f32 %v1437_v13, %v1439_v14  ;;  %v1443_v16 = vpop.f32.mrb[14].mxu0  ;;  %v1445_v17 = vpop.f32.mrb[14].mxu1 }
 0x11e   :  { %v434_v18 = vmax.f32 %v1443_v16, %v1445_v17  ;;  %v1449_v19 = vpop.f32.mrb[15].mxu0  ;;  %v1451_v20 = vpop.f32.mrb[15].mxu1 }
 0x11f   :  { %v432_v21 = vmax.f32 %v1449_v19, %v1451_v20 }
 0x123   :  { %v1085_v22 = vpop.f32.mrb[16].mxu0  ;;  %v1105_v23 = vpop.f32.mrb[16].mxu1 }
 0x124   :  { %v615_v24 = vmax.f32 %v421_v40, %v1085_v22  ;;  %v550_v25 = vpop.f32.mrb[17].mxu0  ;;  %v744_v26 = vpop.f32.mrb[17].mxu1 }
 0x125   :  { %v613_v28 = vmax.f32 %v419_v43, %v550_v25  ;;  %v1086_v29 = vpop.f32.mrb[18].mxu0  ;;  %v1106_v30 = vpop.f32.mrb[18].mxu1 }
 0x126   :  { %v809_v31 = vmax.f32 %v615_v24, %v1105_v23  ;;  %v616_v32 = vmax.f32 %v422_v46, %v1086_v29  ;;  %v553_v33 = vpop.f32.mrb[19].mxu0  ;;  %v747_v34 = vpop.f32.mrb[19].mxu1 }
 0x127   :  { %v807_v35 = vmax.f32 %v613_v28, %v744_v26  ;;  %v614_v36 = vmax.f32 %v420_v49, %v553_v33 }
 0x128   :  { %v832_v37 = vadd.f32 %v1455_v27, %v809_v31  ;;  %v810_v38 = vmax.f32 %v616_v32, %v1106_v30 }
 0x129   :  { %v830_v39 = vadd.f32 %v1455_v27, %v807_v35  ;;  %v808_v41 = vmax.f32 %v614_v36, %v747_v34 }
 0x12a   :  { %v848_v40 = vmax.f32 %v832_v37, 0.0  ;;  %v833_v42 = vadd.f32 %v1455_v27, %v810_v38 }
 0x12b   :  { %v846_v44 = vmax.f32 %v830_v39, 0.0  ;;  %v831_v43 = vadd.f32 %v1455_v27, %v808_v41  ;;  %v1089_v45 = vpop.f32.mrb[20].mxu0  ;;  %v1109_v47 = vpop.f32.mrb[20].mxu1 }
 0x12c   :  { %864 = vst [vmem:[%s1557_s3 + $0x10] sm:$0xff] %v848_v40  ;;  %v849_v46 = vmax.f32 %v833_v42, 0.0  ;;  %v619_v48 = vmax.f32 %v425_v52, %v1089_v45  ;;  %v566_v49 = vpop.f32.mrb[21].mxu0  ;;  %v760_v50 = vpop.f32.mrb[21].mxu1 }
 0x12d   :  { %862 = vst [vmem:[%s1557_s3] sm:$0xff] %v846_v44  ;;  %v847_v51 = vmax.f32 %v831_v43, 0.0  ;;  %v617_v22 = vmax.f32 %v423_v55, %v566_v49  ;;  %v1090_v23 = vpop.f32.mrb[22].mxu0  ;;  %v1110_v24 = vpop.f32.mrb[22].mxu1 }
 0x12e   :  { %865 = vst [vmem:[%s1557_s3 + $0x18] sm:$0xff] %v849_v46  ;;  %v813_v25 = vmax.f32 %v619_v48, %v1109_v47  ;;  %v620_v52 = vmax.f32 %v426_v58, %v1090_v23  ;;  %v569_v26 = vpop.f32.mrb[23].mxu0  ;;  %v763_v28 = vpop.f32.mrb[23].mxu1 }
 0x12f   :  { %863 = vst [vmem:[%s1557_s3 + $0x8] sm:$0xff] %v847_v51  ;;  %v811_v29 = vmax.f32 %v617_v22, %v760_v50  ;;  %v618_v53 = vmax.f32 %v424_v61, %v569_v26 }
 0x130   :  { %v836_v54 = vadd.f32 %v1455_v27, %v813_v25  ;;  %v814_v55 = vmax.f32 %v620_v52, %v1110_v24 }
 0x131   :  { %v834_v30 = vadd.f32 %v1455_v27, %v811_v29  ;;  %v812_v31 = vmax.f32 %v618_v53, %v763_v28 }
 0x132   :  { %v852_v32 = vmax.f32 %v836_v54, 0.0  ;;  %v837_v56 = vadd.f32 %v1455_v27, %v814_v55 }
 0x133   :  { %v850_v57 = vmax.f32 %v834_v30, 0.0  ;;  %v835_v58 = vadd.f32 %v1455_v27, %v812_v31  ;;  %v1093_v33 = vpop.f32.mrb[24].mxu0  ;;  %v1113_v34 = vpop.f32.mrb[24].mxu1 }
 0x134   :  { %868 = vst [vmem:[%s1557_s3 + $0x30] sm:$0xff] %v852_v32  ;;  %v853_v59 = vmax.f32 %v837_v56, 0.0  ;;  %v623_v60 = vmax.f32 %v429_v0, %v1093_v33  ;;  %v582_v61 = vpop.f32.mrb[25].mxu0  ;;  %v776_v35 = vpop.f32.mrb[25].mxu1 }
 0x135   :  { %866 = vst [vmem:[%s1557_s3 + $0x20] sm:$0xff] %v850_v57  ;;  %v851_v36 = vmax.f32 %v835_v58, 0.0  ;;  %v621_v37 = vmax.f32 %v427_v3, %v582_v61  ;;  %v1094_v38 = vpop.f32.mrb[26].mxu0  ;;  %v1114_v39 = vpop.f32.mrb[26].mxu1 }
 0x136   :  { %869 = vst [vmem:[%s1557_s3 + $0x38] sm:$0xff] %v853_v59  ;;  %v817_v41 = vmax.f32 %v623_v60, %v1113_v34  ;;  %v624_v62 = vmax.f32 %v430_v6, %v1094_v38  ;;  %v585_v63 = vpop.f32.mrb[27].mxu0  ;;  %v779_v0 = vpop.f32.mrb[27].mxu1 }
 0x137   :  { %867 = vst [vmem:[%s1557_s3 + $0x28] sm:$0xff] %v851_v36  ;;  %v815_v40 = vmax.f32 %v621_v37, %v776_v35  ;;  %v622_v1 = vmax.f32 %v428_v9, %v585_v63 }
 0x138   :  { %v840_v2 = vadd.f32 %v1455_v27, %v817_v41  ;;  %v818_v3 = vmax.f32 %v624_v62, %v1114_v39 }
 0x139   :  { %v838_v42 = vadd.f32 %v1455_v27, %v815_v40  ;;  %v816_v44 = vmax.f32 %v622_v1, %v779_v0 }
 0x13a   :  { %v856_v43 = vmax.f32 %v840_v2, 0.0  ;;  %v841_v4 = vadd.f32 %v1455_v27, %v818_v3 }
 0x13b   :  { %v854_v5 = vmax.f32 %v838_v42, 0.0  ;;  %v839_v6 = vadd.f32 %v1455_v27, %v816_v44  ;;  %v1097_v45 = vpop.f32.mrb[28].mxu0  ;;  %v1117_v47 = vpop.f32.mrb[28].mxu1 }
 0x13c   :  { %872 = vst [vmem:[%s1557_s3 + $0x50] sm:$0xff] %v856_v43  ;;  %v857_v7 = vmax.f32 %v841_v4, 0.0  ;;  %v627_v8 = vmax.f32 %v433_v12, %v1097_v45  ;;  %v598_v9 = vpop.f32.mrb[29].mxu0  ;;  %v792_v46 = vpop.f32.mrb[29].mxu1 }
 0x13d   :  { %870 = vst [vmem:[%s1557_s3 + $0x40] sm:$0xff] %v854_v5  ;;  %v855_v48 = vmax.f32 %v839_v6, 0.0  ;;  %v625_v49 = vmax.f32 %v431_v15, %v598_v9  ;;  %v1098_v50 = vpop.f32.mrb[30].mxu0  ;;  %v1118_v51 = vpop.f32.mrb[30].mxu1 }
 0x13e   :  { %873 = vst [vmem:[%s1557_s3 + $0x58] sm:$0xff] %v857_v7  ;;  %v821_v22 = vmax.f32 %v627_v8, %v1117_v47  ;;  %v628_v10 = vmax.f32 %v434_v18, %v1098_v50  ;;  %v601_v11 = vpop.f32.mrb[31].mxu0  ;;  %v795_v12 = vpop.f32.mrb[31].mxu1 }
 0x13f   :  { %871 = vst [vmem:[%s1557_s3 + $0x48] sm:$0xff] %v855_v48  ;;  %v819_v23 = vmax.f32 %v625_v49, %v792_v46  ;;  %v626_v13 = vmax.f32 %v432_v21, %v601_v11 }
 0x140   :  { %v844_v14 = vadd.f32 %v1455_v27, %v821_v22  ;;  %v822_v15 = vmax.f32 %v628_v10, %v1118_v51 }
 0x141   :  { %v842_v24 = vadd.f32 %v1455_v27, %v819_v23  ;;  %v820_v25 = vmax.f32 %v626_v13, %v795_v12 }
 0x142   :  { %v860_v52 = vmax.f32 %v844_v14, 0.0  ;;  %v845_v16 = vadd.f32 %v1455_v27, %v822_v15 }
 0x143   :  { %v858_v17 = vmax.f32 %v842_v24, 0.0  ;;  %v843_v18 = vadd.f32 %v1455_v27, %v820_v25 }
 0x144   :  { %876 = vst [vmem:[%s1557_s3 + $0x70] sm:$0xff] %v860_v52  ;;  %v861_v26 = vmax.f32 %v845_v16, 0.0 }
 0x145   :  { %874 = vst [vmem:[%s1557_s3 + $0x60] sm:$0xff] %v858_v17  ;;  %v859_v19 = vmax.f32 %v843_v18, 0.0 }
 0x146   :  { %877 = vst [vmem:[%s1557_s3 + $0x78] sm:$0xff] %v861_v26 }
 0x147   :  { %875 = vst [vmem:[%s1557_s3 + $0x68] sm:$0xff] %v859_v19 }
 0x148   :  { %882 = vsyncpa [#allocation3], 1 }
 0x149   :  { %883 = vsyncpa [#allocation5], 1 }

// kernel: forward.7
= control target key start
LH: loop header
LB: loop body
LE: loop exit
PB: predicated region body
PF: predicated region fallthrough
CT: control target
= control target key end

     0   :  { %s540_s6 = smov 0   ;;  %s595_s0 = inlined_call_operand.vmem [shape: f32[2,16,128], index: 0, kind: input, shape index: {}]   ;;  %s596_s1 = inlined_call_operand.vmem [shape: f32[2,128,128], index: 1, kind: output, shape index: {}]  }
   0x1 LB: > { %s432_s7 = sadd.s32 4294967295, %s528_s6   ;;  %p436_p0 = scmp.ge.s32.totalorder %s528_s6, 1  ;;  %s528_s6 = sphi %s540_s6, %s11_s6  }
   0x2   : > { %p87_p1 = scmp.lt.s32.totalorder %s528_s6, 3 }
   0x4   : > { %p88_p2 = pnand %p436_p0, %p87_p1 }
   0x5   : > { %p107_p3 = scmp.lt.s32.totalorder (!%p88_p2), %s432_s7, 1  ;;  %vm151_vm0 = vcmask (!%p88_p2), 130048  }
   0x6   : > { %91 = sbr.rel (%p88_p2) target bundleno = 422 (0x1a6), region = 24 }
   0xd   : > { %s598_s7 = smov (!%p107_p3, %s432_s7), 1 }
   0xe   : > { %s459_s8 = sshll.u32 %s598_s7, 4  ;;  %s460_s12 = sshll.u32 %s598_s7, 7 }
   0xf   : > { %s111_s11 = scalar_lea.vmem %s595_s0, %s459_s8  ;;  %s574_s15 = scalar_lea.vmem %s596_s1, %s460_s12 }
  0x10   : > { %v117_v0 = vld [vmem:[%s111_s11] sm:$0xff]  ;;  %v118_v1 = vld [vmem:[%s111_s11 + $0x8] sm:$0xff] }
  0x11   : > { %119 = vxpose.xlu0.b32.start [1/2] (short) %v117_v0, 128  ;;  %v507_v2 = vpack.c.bf16 %v118_v1, %v117_v0 }
  0x13   : > { %508 = vmatprep.subr.bf16.mxu0 %v507_v2  ;;  %511 = vmatprep.subr.bf16.mxu1 %v507_v2 }
  0x14   : > { %510 = vmatpush3.bf16.msra.mxu0 %v507_v2  ;;  %512 = vmatpush3.bf16.msra.mxu1 %v507_v2 }
  0x15   : > { %120 = vxpose.xlu0.b32.end [2/2] (short) %v118_v1, 128 }
  0x91   : > { %v135_v3 = vpop.trf.xlu0 }
  0x92   : > { %483 = vmatprep.mubr.msk.f32.mxu0 %vm151_vm0, %v135_v3 }
  0x95   : > { %v136_v4 = vpop.trf.xlu0 }
  0x96   : > { %484 = vmatmul.mubr.msk.f32.vlgmr.msra.gmra.mrb[0].mxu0 %vm151_vm0, %v136_v4 }
  0x99   : > { %v137_v5 = vpop.trf.xlu0 }
  0x9a   : > { %486 = vmatprep.mubr.msk.f32.mxu0 %vm151_vm0, %v137_v5 }
  0x9d   : > { %v138_v6 = vpop.trf.xlu0 }
  0x9e   : > { %487 = vmatmul.mubr.msk.f32.gmra.mrb[2].mxu0 %vm151_vm0, %v138_v6 }
  0xa1   : > { %v139_v7 = vpop.trf.xlu0 }
  0xa2   : > { %489 = vmatprep.mubr.msk.f32.mxu0 %vm151_vm0, %v139_v7 }
  0xa5   : > { %v140_v8 = vpop.trf.xlu0 }
  0xa6   : > { %490 = vmatmul.mubr.msk.f32.gmra.mrb[4].mxu0 %vm151_vm0, %v140_v8 }
  0xa9   : > { %v141_v9 = vpop.trf.xlu0 }
  0xaa   : > { %492 = vmatprep.mubr.msk.f32.mxu0 %vm151_vm0, %v141_v9 }
  0xad   : > { %v142_v10 = vpop.trf.xlu0 }
  0xae   : > { %493 = vmatmul.mubr.msk.f32.gmra.mrb[6].mxu0 %vm151_vm0, %v142_v10 }
  0xb1   : > { %v143_v11 = vpop.trf.xlu0 }
  0xb2   : > { %495 = vmatprep.mubr.msk.f32.mxu1 %vm151_vm0, %v143_v11 }
  0xb5   : > { %v144_v12 = vpop.trf.xlu0 }
  0xb6   : > { %496 = vmatmul.mubr.msk.f32.vlgmr.msra.gmra.mrb[0].mxu1 %vm151_vm0, %v144_v12 }
  0xb9   : > { %v145_v13 = vpop.trf.xlu0 }
  0xba   : > { %498 = vmatprep.mubr.msk.f32.mxu1 %vm151_vm0, %v145_v13 }
  0xbd   : > { %v146_v14 = vpop.trf.xlu0 }
  0xbe   : > { %499 = vmatmul.mubr.msk.f32.gmra.mrb[2].mxu1 %vm151_vm0, %v146_v14 }
  0xc1   : > { %v147_v15 = vpop.trf.xlu0 }
  0xc2   : > { %501 = vmatprep.mubr.msk.f32.mxu1 %vm151_vm0, %v147_v15 }
  0xc5   : > { %v148_v16 = vpop.trf.xlu0 }
  0xc6   : > { %502 = vmatmul.mubr.msk.f32.gmra.mrb[4].mxu1 %vm151_vm0, %v148_v16 }
  0xc9   : > { %v149_v17 = vpop.trf.xlu0 }
  0xca   : > { %504 = vmatprep.mubr.msk.f32.mxu1 %vm151_vm0, %v149_v17 }
  0xcd   : > { %v150_v18 = vpop.trf.xlu0 }
  0xce   : > { %505 = vmatmul.mubr.msk.f32.gmra.mrb[6].mxu1 %vm151_vm0, %v150_v18 }
 0x169   : > { %v485_v19 = vpop.f32.mrb[0].mxu0 }
 0x16a   : > { %v346_v20 = vmul.f32 0.0625, %v485_v19  ;;  %v266_v21 = vpop.f32.mrb[1].mxu0 }
 0x16b   : > { %v345_v22 = vmul.f32 0.0625, %v266_v21 }
 0x16c   : > { %362 = vst [vmem:[%s574_s15 + $0x8] sm:$0xff] %v346_v20 }
 0x16d   : > { %361 = vst [vmem:[%s574_s15] sm:$0xff] %v345_v22 }
 0x171   : > { %v488_v23 = vpop.f32.mrb[2].mxu0 }
 0x172   : > { %v348_v24 = vmul.f32 0.0625, %v488_v23  ;;  %v276_v25 = vpop.f32.mrb[3].mxu0 }
 0x173   : > { %v347_v26 = vmul.f32 0.0625, %v276_v25 }
 0x174   : > { %364 = vst [vmem:[%s574_s15 + $0x18] sm:$0xff] %v348_v24 }
 0x175   : > { %363 = vst [vmem:[%s574_s15 + $0x10] sm:$0xff] %v347_v26 }
 0x179   : > { %v491_v27 = vpop.f32.mrb[4].mxu0 }
 0x17a   : > { %v350_v28 = vmul.f32 0.0625, %v491_v27  ;;  %v286_v29 = vpop.f32.mrb[5].mxu0 }
 0x17b   : > { %v349_v30 = vmul.f32 0.0625, %v286_v29 }
 0x17c   : > { %366 = vst [vmem:[%s574_s15 + $0x28] sm:$0xff] %v350_v28 }
 0x17d   : > { %365 = vst [vmem:[%s574_s15 + $0x20] sm:$0xff] %v349_v30 }
 0x181   : > { %v494_v31 = vpop.f32.mrb[6].mxu0 }
 0x182   : > { %v352_v32 = vmul.f32 0.0625, %v494_v31  ;;  %v296_v33 = vpop.f32.mrb[7].mxu0 }
 0x183   : > { %v351_v34 = vmul.f32 0.0625, %v296_v33 }
 0x184   : > { %368 = vst [vmem:[%s574_s15 + $0x38] sm:$0xff] %v352_v32 }
 0x185   : > { %367 = vst [vmem:[%s574_s15 + $0x30] sm:$0xff] %v351_v34 }
 0x189   : > { %v497_v35 = vpop.f32.mrb[0].mxu1 }
 0x18a   : > { %v354_v36 = vmul.f32 0.0625, %v497_v35  ;;  %v306_v37 = vpop.f32.mrb[1].mxu1 }
 0x18b   : > { %v353_v38 = vmul.f32 0.0625, %v306_v37 }
 0x18c   : > { %370 = vst [vmem:[%s574_s15 + $0x48] sm:$0xff] %v354_v36 }
 0x18d   : > { %369 = vst [vmem:[%s574_s15 + $0x40] sm:$0xff] %v353_v38 }
 0x191   : > { %v500_v39 = vpop.f32.mrb[2].mxu1 }
 0x192   : > { %v356_v40 = vmul.f32 0.0625, %v500_v39  ;;  %v316_v41 = vpop.f32.mrb[3].mxu1 }
 0x193   : > { %v355_v42 = vmul.f32 0.0625, %v316_v41 }
 0x194   : > { %372 = vst [vmem:[%s574_s15 + $0x58] sm:$0xff] %v356_v40 }
 0x195   : > { %371 = vst [vmem:[%s574_s15 + $0x50] sm:$0xff] %v355_v42 }
 0x199   : > { %v503_v43 = vpop.f32.mrb[4].mxu1 }
 0x19a   : > { %v358_v44 = vmul.f32 0.0625, %v503_v43  ;;  %v326_v45 = vpop.f32.mrb[5].mxu1 }
 0x19b   : > { %v357_v46 = vmul.f32 0.0625, %v326_v45 }
 0x19c   : > { %374 = vst [vmem:[%s574_s15 + $0x68] sm:$0xff] %v358_v44 }
 0x19d   : > { %373 = vst [vmem:[%s574_s15 + $0x60] sm:$0xff] %v357_v46 }
 0x1a1   : > { %v506_v47 = vpop.f32.mrb[6].mxu1 }
 0x1a2   : > { %v360_v48 = vmul.f32 0.0625, %v506_v47  ;;  %v336_v49 = vpop.f32.mrb[7].mxu1 }
 0x1a3   : > { %v359_v50 = vmul.f32 0.0625, %v336_v49 }
 0x1a4   : > { %376 = vst [vmem:[%s574_s15 + $0x78] sm:$0xff] %v360_v48 }
 0x1a5   : > { %375 = vst [vmem:[%s574_s15 + $0x70] sm:$0xff] %v359_v50 }
 0x1a6 PF: > { %s11_s6 = sadd.s32 1, %s528_s6  }
 0x1a7   : > { %p8_p4 = scmp.ge.s32.totalorder %s11_s6, 4  }
 0x1a9   :  { %10 = sbr.rel (!%p8_p4) target bundleno = 1 (0x1), region = 54 }

// kernel: forward.6
= control target key start
LH: loop header
LB: loop body
LE: loop exit
PB: predicated region body
PF: predicated region fallthrough
CT: control target
= control target key end

     0   :  { %8 = vsyncpa [#allocation3], 0  ;;  %s2223_s0 = inlined_call_operand.vmem [shape: bf16[4,32,576], index: 0, kind: input, shape index: {}]   ;;  %s2224_s1 = inlined_call_operand.hbm [shape: bf16[576,128], index: 1, kind: input, shape index: {}]   ;;  %s2225_s2 = inlined_call_operand.hbm [shape: f32[1,128], index: 2, kind: input, shape index: {}]   ;;  %s2226_s3 = inlined_call_operand.vmem [shape: f32[32,128], index: 3, kind: output, shape index: {}]  }
   0x1   :  { %9 = vsyncpa [#allocation5], 0  ;;  %s1791_s12 = smov [#allocation2]   ;;  %s1743_s16 = scalar_lea.hbm %s2224_s1, 4608 }
   0x2   :  { %s17_s13 = sshll.u32 %s1791_s12, 4  ;;  %p1744_p0 = scmp.ne.s32.totalorder %s2224_s1, %s1743_s16  ;;  %s18_s13 = int_to_ptr.vmem [resolvable:$true] %s17_s13 }
   0x3   :  { %p1747_p1 = scmp.lt.u32.totalorder %s1743_s16, %s2224_s1 }
   0x5   :  { %p1749_p2 = pnand %p1747_p1, %p1744_p0 }
   0x7   :  { %1752 = shalt.err (!%p1749_p2)
}
   0x8   :  { %s1753_s21 = scalar_lea.vmem %s18_s13, 4608  ;;  %p1758_p4 = scmp.lt.s32.totalorder %s18_s13, %s18_s13 }
   0x9   :  { %p1754_p3 = scmp.ne.s32.totalorder %s18_s13, %s1753_s21  ;;  %p1759_p5 = scmp.lt.s32.totalorder %s1753_s21, %s1753_s21 }
   0xb   :  { %p1760_p6 = por %p1759_p5, %p1758_p4 }
   0xd   :  { %p1761_p7 = pnand %p1760_p6, %p1754_p3 }
   0xf   :  { %1764 = shalt.err (!%p1761_p7)
}
  0x10   :  { %s1792_s22 = smov 64   ;;  %s1793_s23 = smov 4  }
  0x11   :  { %23 = dma.hbm_to_vmem [thread:$0]  %s2224_s1, 4608, %s18_s13, [#allocation3], %s1792_s22, %s1792_s22, %s1793_s23  }
  0x12   :  { %s1794_s26 = smov [#allocation4]   ;;  %s1765_s30 = scalar_lea.hbm %s2225_s2, 16 }
  0x13   :  { %s30_s27 = sshll.u32 %s1794_s26, 4  ;;  %p1766_p8 = scmp.ne.s32.totalorder %s2225_s2, %s1765_s30  ;;  %s31_s27 = int_to_ptr.vmem [resolvable:$true] %s30_s27 }
  0x14   :  { %p1769_p9 = scmp.lt.u32.totalorder %s1765_s30, %s2225_s2 }
  0x16   :  { %p1771_p10 = pnand %p1769_p9, %p1766_p8 }
  0x18   :  { %1774 = shalt.err (!%p1771_p10)
}
  0x19   :  { %s1775_s8 = scalar_lea.vmem %s31_s27, 16  ;;  %s1779_s1 = scalar_lea.vmem %s31_s27, 32 }
  0x1a   :  { %p1776_p11 = scmp.ne.s32.totalorder %s31_s27, %s1775_s8  ;;  %p1780_p12 = scmp.lt.s32.totalorder %s31_s27, %s31_s27 }
  0x1b   :  { %p1781_p13 = scmp.lt.s32.totalorder %s1779_s1, %s1775_s8 }
  0x1d   :  { %p1782_p0 = por %p1781_p13, %p1780_p12 }
  0x1f   :  { %p1783_p1 = pnand %p1782_p0, %p1776_p11 }
  0x21   :  { %1786 = shalt.err (!%p1783_p1)
}
  0x22   :  { %33 = dma.hbm_to_vmem [thread:$0]  %s2225_s2, 16, %s31_s27, [#allocation5]  }
  0x23   :  { %1787 = dma.done.wait [#allocation3], 4608  }
  0x24   :  { %1788 = vsyncadd [#allocation3], 4294962688 }
  0x25   :  { %1789 = dma.done.wait [#allocation5], 16  }
  0x26   :  { %1790 = vsyncadd [#allocation5], 4294967280  ;;  %v1839_v0 = vld [vmem:[#allocation2 + $0x40] sm:$0xff]   ;;  %v1850_v4 = vld [vmem:[#allocation2 + $0x48] sm:$0xff]   ;;  %vm391_vm0 = vcmask 523264  }
  0x27   :  { %v1841_v1 = vld [vmem:[#allocation2 + $0xc0] sm:$0xff]   ;;  %1351 = vmatprep.subr.bf16.mxu0 %v1839_v0  ;;  %v1853_v5 = vld [vmem:[#allocation2 + $0xc8] sm:$0xff]   ;;  %v1862_v8 = vld [vmem:[#allocation2 + $0x50] sm:$0xff]  }
  0x28   :  { %v1844_v2 = vld [vmem:[#allocation2] sm:$0xff]   ;;  %1379 = vmatprep.subr.bf16.mxu1 %v1841_v1  ;;  %v1856_v6 = vld [vmem:[#allocation2 + $0x8] sm:$0xff]   ;;  %v1865_v9 = vld [vmem:[#allocation2 + $0xd0] sm:$0xff]  }
  0x29   :  { %v1847_v3 = vld [vmem:[#allocation2 + $0x80] sm:$0xff]   ;;  %1352 = vmatpush3.bf16.msra.mxu0 %v1844_v2  ;;  %v1859_v7 = vld [vmem:[#allocation2 + $0x88] sm:$0xff]   ;;  %v1868_v10 = vld [vmem:[#allocation2 + $0x10] sm:$0xff]  }
  0x2a   :  { %1380 = vmatpush3.bf16.msra.mxu1 %v1847_v3  ;;  %1353 = vmatprep.subr.bf16.mxu0 %v1850_v4  ;;  %v1871_v11 = vld [vmem:[#allocation2 + $0x90] sm:$0xff]   ;;  %v1874_v12 = vld [vmem:[#allocation2 + $0x58] sm:$0xff]   ;;  %v1886_v16 = vld [vmem:[#allocation2 + $0x60] sm:$0xff]  }
  0x2b   :  { %1381 = vmatprep.subr.bf16.mxu1 %v1853_v5  ;;  %v1877_v13 = vld [vmem:[#allocation2 + $0xd8] sm:$0xff]   ;;  %v1889_v17 = vld [vmem:[#allocation2 + $0xe0] sm:$0xff]   ;;  %v1898_v20 = vld [vmem:[#allocation2 + $0x68] sm:$0xff]  }
  0x2c   :  { %v1880_v14 = vld [vmem:[#allocation2 + $0x18] sm:$0xff]   ;;  %v1892_v18 = vld [vmem:[#allocation2 + $0x20] sm:$0xff]   ;;  %v1901_v21 = vld [vmem:[#allocation2 + $0xe8] sm:$0xff]  }
  0x2d   :  { %1354 = vmatpush3.bf16.msra.mxu0 %v1856_v6  ;;  %v1883_v15 = vld [vmem:[#allocation2 + $0x98] sm:$0xff]   ;;  %v1895_v19 = vld [vmem:[#allocation2 + $0xa0] sm:$0xff]   ;;  %v1904_v22 = vld [vmem:[#allocation2 + $0x28] sm:$0xff]  }
  0x2e   :  { %1382 = vmatpush3.bf16.msra.mxu1 %v1859_v7  ;;  %1355 = vmatprep.subr.bf16.mxu0 %v1862_v8  ;;  %v1907_v23 = vld [vmem:[#allocation2 + $0xa8] sm:$0xff]   ;;  %v1910_v24 = vld [vmem:[#allocation2 + $0x70] sm:$0xff]   ;;  %v1922_v28 = vld [vmem:[#allocation2 + $0x78] sm:$0xff]  }
  0x2f   :  { %1383 = vmatprep.subr.bf16.mxu1 %v1865_v9  ;;  %v1913_v25 = vld [vmem:[#allocation2 + $0xf0] sm:$0xff]   ;;  %v1925_v29 = vld [vmem:[#allocation2 + $0xf8] sm:$0xff]   ;;  %v1688_v35 = vld [vmem:[%s2223_s0 + $0xc] ss:$20 sps:$4 sm:$0xff]  }
  0x30   :  { %v1916_v26 = vld [vmem:[#allocation2 + $0x30] sm:$0xff]   ;;  %v1928_v30 = vld [vmem:[#allocation2 + $0x38] sm:$0xff]   ;;  %v1948_v36 = vld [vmem:[#allocation2 + $0x100] sm:$0xff]   ;;  %479 = vmatprep.mubr.bf16.mxu1 %v1688_v35 }
  0x31   :  { %1356 = vmatpush3.bf16.msra.mxu0 %v1868_v10  ;;  %v1919_v27 = vld [vmem:[#allocation2 + $0xb0] sm:$0xff]   ;;  %v1931_v31 = vld [vmem:[#allocation2 + $0xb8] sm:$0xff]   ;;  %v1950_v37 = vld [vmem:[#allocation2 + $0x108] sm:$0xff]  }
  0x32   :  { %1384 = vmatpush3.bf16.msra.mxu1 %v1871_v11  ;;  %1357 = vmatprep.subr.bf16.mxu0 %v1874_v12  ;;  %v1683_v32 = vld [vmem:[%s2223_s0] ss:$20 sps:$4 sm:$0xff]   ;;  %v1685_v33 = vld [vmem:[%s2223_s0 + $0x4] ss:$20 sps:$4 sm:$0xff]   ;;  %v1686_v34 = vld [vmem:[%s2223_s0 + $0x8] ss:$20 sps:$4 sm:$0xff]  }
  0x33   :  { %1385 = vmatprep.subr.bf16.mxu1 %v1877_v13  ;;  %430 = vmatprep.mubr.bf16.mxu0 %v1685_v33  ;;  %v1691_v38 = vld [vmem:[%s2223_s0 + $0x2c] ss:$20 sps:$4 sm:$0xff]   ;;  %v1693_v39 = vld [vmem:[%s2223_s0 + $0x34] ss:$20 sps:$4 sm:$0xff]   ;;  %v1696_v42 = vld [vmem:[%s2223_s0 + $0x30] ss:$20 sps:$4 sm:$0xff]  }
  0x34   :  { %v1695_v40 = vld [vmem:[%s2223_s0 + $0x28] ss:$20 sps:$4 sm:$0xff]   ;;  %v1966_v41 = vld [vmem:[#allocation2 + $0x110] sm:$0xff]   ;;  %v1700_v46 = vld [vmem:[%s2223_s0 + $0x38] ss:$20 sps:$4 sm:$0xff]  }
  0x35   :  { %1358 = vmatpush3.bf16.msra.mxu0 %v1880_v14  ;;  %v1699_v43 = vld [vmem:[%s2223_s0 + $0x10] ss:$20 sps:$4 sm:$0xff]   ;;  %v1978_v44 = vld [vmem:[#allocation2 + $0x118] sm:$0xff]   ;;  %v1703_v45 = vld [vmem:[%s2223_s0 + $0x54] ss:$20 sps:$4 sm:$0xff]  }
  0x36   :  { %1386 = vmatpush3.bf16.msra.mxu1 %v1883_v15  ;;  %1359 = vmatprep.subr.bf16.mxu0 %v1886_v16  ;;  %v1709_v47 = vld [vmem:[%s2223_s0 + $0x5c] ss:$20 sps:$4 sm:$0xff]   ;;  %v1706_v50 = vld [vmem:[%s2223_s0 + $0x78] ss:$20 sps:$4 sm:$0xff]   ;;  %v1710_v51 = vld [vmem:[%s2223_s0 + $0x60] ss:$20 sps:$4 sm:$0xff]  }
  0x37   :  { %1387 = vmatprep.subr.bf16.mxu1 %v1889_v17  ;;  %v1701_v48 = vld [vmem:[%s2223_s0 + $0x50] ss:$20 sps:$4 sm:$0xff]   ;;  %v1707_v52 = vld [vmem:[%s2223_s0 + $0x58] ss:$20 sps:$4 sm:$0xff]   ;;  %v1711_v53 = vld [vmem:[%s2223_s0 + $0x88] ss:$20 sps:$4 sm:$0xff]  }
  0x38   :  { %v1704_v49 = vld [vmem:[%s2223_s0 + $0x7c] ss:$20 sps:$4 sm:$0xff]   ;;  %v1712_v54 = vld [vmem:[%s2223_s0 + $0x84] ss:$20 sps:$4 sm:$0xff]   ;;  %v1720_v55 = vld [vmem:[%s2223_s0 + $0xac] ss:$20 sps:$4 sm:$0xff]  }
  0x39   :  { %1360 = vmatpush3.bf16.msra.mxu0 %v1892_v18  ;;  %v1714_v56 = vld [vmem:[%s2223_s0 + $0x80] ss:$20 sps:$4 sm:$0xff]   ;;  %v1717_v57 = vld [vmem:[%s2223_s0 + $0xa4] ss:$20 sps:$4 sm:$0xff]   ;;  %v1718_v59 = vld [vmem:[%s2223_s0 + $0xa8] ss:$20 sps:$4 sm:$0xff]  }
  0x3a   :  { %1388 = vmatpush3.bf16.msra.mxu1 %v1895_v19  ;;  %1361 = vmatprep.subr.bf16.mxu0 %v1898_v20  ;;  %v1715_v58 = vld [vmem:[%s2223_s0 + $0xa0] ss:$20 sps:$4 sm:$0xff]   ;;  %v1725_v62 = vld [vmem:[%s2223_s0 + $0xc8] ss:$20 sps:$4 sm:$0xff]   ;;  %v1726_v63 = vld [vmem:[%s2223_s0 + $0xd0] ss:$20 sps:$4 sm:$0xff]  }
  0x3b   :  { %1389 = vmatprep.subr.bf16.mxu1 %v1901_v21  ;;  %v1721_v60 = vld [vmem:[%s2223_s0 + $0xcc] ss:$20 sps:$4 sm:$0xff]   ;;  %v1723_v61 = vld [vmem:[%s2223_s0 + $0xd4] ss:$20 sps:$4 sm:$0xff]  }
  0x3d   :  { %1362 = vmatpush3.bf16.msra.mxu0 %v1904_v22 }
  0x3e   :  { %1390 = vmatpush3.bf16.msra.mxu1 %v1907_v23  ;;  %1363 = vmatprep.subr.bf16.mxu0 %v1910_v24 }
  0x3f   :  { %1391 = vmatprep.subr.bf16.mxu1 %v1913_v25 }
  0x41   :  { %1364 = vmatpush3.bf16.msra.mxu0 %v1916_v26 }
  0x42   :  { %1392 = vmatpush3.bf16.msra.mxu1 %v1919_v27  ;;  %1365 = vmatprep.subr.bf16.mxu0 %v1922_v28 }
  0x43   :  { %1393 = vmatprep.subr.bf16.mxu1 %v1925_v29 }
  0x45   :  { %1366 = vmatpush3.bf16.msra.mxu0 %v1928_v30 }
  0x46   :  { %1394 = vmatpush3.bf16.msra.mxu1 %v1931_v31  ;;  %1599 = vmatprep.subr.bf16.mxu0 %v1948_v36 }
  0x47   :  { %1413 = vmatprep.subr.bf16.mxu1 %v1839_v0 }
  0x48   :  { %431 = vmatmul.mubr.bf16.vlgmr.msra.gmra.mrb[0].mxu0 %v1683_v32 }
  0x49   :  { %480 = vmatmul.mubr.bf16.vlgmr.msra.gmra.mrb[0].mxu1 %v1686_v34  ;;  %1600 = vmatpush3.bf16.msra.mxu0 %v1948_v36 }
  0x4a   :  { %1414 = vmatpush3.bf16.msra.mxu1 %v1844_v2  ;;  %1601 = vmatprep.subr.bf16.mxu0 %v1950_v37 }
  0x4b   :  { %1415 = vmatprep.subr.bf16.mxu1 %v1850_v4  ;;  %438 = vmatprep.mubr.bf16.mxu0 %v1691_v38 }
  0x4c   :  { %487 = vmatprep.mubr.bf16.mxu1 %v1693_v39 }
  0x4d   :  { %1602 = vmatpush3.bf16.msra.mxu0 %v1950_v37 }
  0x4e   :  { %1416 = vmatpush3.bf16.msra.mxu1 %v1856_v6  ;;  %1603 = vmatprep.subr.bf16.mxu0 %v1966_v41 }
  0x4f   :  { %1417 = vmatprep.subr.bf16.mxu1 %v1862_v8 }
  0x50   :  { %439 = vmatmul.mubr.bf16.gmra.mrb[4].mxu0 %v1695_v40 }
  0x51   :  { %488 = vmatmul.mubr.bf16.gmra.mrb[4].mxu1 %v1696_v42  ;;  %1607 = vmatprep.mubr.msk.bf16.mxu0 %vm391_vm0, %v1699_v43 }
  0x52   :  { %1604 = vmatpush3.bf16.msra.mxu0 %v1966_v41  ;;  %1418 = vmatpush3.bf16.msra.mxu1 %v1868_v10 }
  0x53   :  { %1605 = vmatprep.subr.bf16.mxu0 %v1978_v44  ;;  %1419 = vmatprep.subr.bf16.mxu1 %v1874_v12 }
  0x54   :  { %646 = vmatprep.mubr.bf16.mxu1 %v1703_v45 }
  0x56   :  { %1606 = vmatpush3.bf16.msra.mxu0 %v1978_v44  ;;  %1420 = vmatpush3.bf16.msra.mxu1 %v1880_v14 }
  0x57   :  { %1421 = vmatprep.subr.bf16.mxu1 %v1886_v16  ;;  %1441 = vmatprep.subr.bf16.mxu0 %v1841_v1 }
  0x59   :  { %1608 = vmatmul.mubr.msk.bf16.vlgmr.msra.gmra.mrb[8].mxu0 %vm391_vm0, %v1700_v46 }
  0x5a   :  { %1422 = vmatpush3.bf16.msra.mxu1 %v1892_v18  ;;  %1442 = vmatpush3.bf16.msra.mxu0 %v1847_v3 }
  0x5b   :  { %1423 = vmatprep.subr.bf16.mxu1 %v1898_v20  ;;  %1443 = vmatprep.subr.bf16.mxu0 %v1853_v5 }
  0x5c   :  { %695 = vmatprep.mubr.bf16.mxu0 %v1709_v47 }
  0x5e   :  { %1424 = vmatpush3.bf16.msra.mxu1 %v1904_v22  ;;  %1444 = vmatpush3.bf16.msra.mxu0 %v1859_v7 }
  0x5f   :  { %1425 = vmatprep.subr.bf16.mxu1 %v1910_v24  ;;  %1445 = vmatprep.subr.bf16.mxu0 %v1865_v9 }
  0x62   :  { %1426 = vmatpush3.bf16.msra.mxu1 %v1916_v26  ;;  %1446 = vmatpush3.bf16.msra.mxu0 %v1871_v11 }
  0x63   :  { %1427 = vmatprep.subr.bf16.mxu1 %v1922_v28  ;;  %1447 = vmatprep.subr.bf16.mxu0 %v1877_v13 }
  0x66   :  { %1428 = vmatpush3.bf16.msra.mxu1 %v1928_v30  ;;  %1448 = vmatpush3.bf16.msra.mxu0 %v1883_v15 }
  0x67   :  { %1449 = vmatprep.subr.bf16.mxu0 %v1889_v17  ;;  %1611 = vmatprep.subr.bf16.mxu1 %v1948_v36 }
  0x69   :  { %647 = vmatmul.mubr.bf16.vlgmr.msra.gmra.mrb[8].mxu1 %v1701_v48 }
  0x6a   :  { %1450 = vmatpush3.bf16.msra.mxu0 %v1895_v19  ;;  %1612 = vmatpush3.bf16.msra.mxu1 %v1948_v36 }
  0x6b   :  { %1451 = vmatprep.subr.bf16.mxu0 %v1901_v21  ;;  %1613 = vmatprep.subr.bf16.mxu1 %v1950_v37 }
  0x6c   :  { %654 = vmatprep.mubr.bf16.mxu1 %v1704_v49 }
  0x6e   :  { %1452 = vmatpush3.bf16.msra.mxu0 %v1907_v23  ;;  %1614 = vmatpush3.bf16.msra.mxu1 %v1950_v37 }
  0x6f   :  { %1453 = vmatprep.subr.bf16.mxu0 %v1913_v25  ;;  %1615 = vmatprep.subr.bf16.mxu1 %v1966_v41 }
  0x71   :  { %655 = vmatmul.mubr.bf16.gmra.mrb[12].mxu1 %v1706_v50 }
  0x72   :  { %1454 = vmatpush3.bf16.msra.mxu0 %v1919_v27  ;;  %1616 = vmatpush3.bf16.msra.mxu1 %v1966_v41 }
  0x73   :  { %1455 = vmatprep.subr.bf16.mxu0 %v1925_v29  ;;  %1617 = vmatprep.subr.bf16.mxu1 %v1978_v44 }
  0x74   :  { %1619 = vmatprep.mubr.msk.bf16.mxu1 %vm391_vm0, %v1710_v51 }
  0x76   :  { %1456 = vmatpush3.bf16.msra.mxu0 %v1931_v31  ;;  %1618 = vmatpush3.bf16.msra.mxu1 %v1978_v44 }
  0x77   :  { %1475 = vmatprep.subr.bf16.mxu0 %v1839_v0  ;;  %1503 = vmatprep.subr.bf16.mxu1 %v1841_v1 }
  0x79   :  { %696 = vmatmul.mubr.bf16.vlgmr.msra.gmra.mrb[12].mxu0 %v1707_v52  ;;  %1620 = vmatmul.mubr.msk.bf16.vlgmr.msra.gmra.mrb[16].mxu1 %vm391_vm0, %v1711_v53 }
  0x7a   :  { %1476 = vmatpush3.bf16.msra.mxu0 %v1844_v2  ;;  %1504 = vmatpush3.bf16.msra.mxu1 %v1847_v3 }
  0x7b   :  { %1477 = vmatprep.subr.bf16.mxu0 %v1850_v4  ;;  %1505 = vmatprep.subr.bf16.mxu1 %v1853_v5 }
  0x7c   :  { %703 = vmatprep.mubr.bf16.mxu0 %v1712_v54  ;;  %915 = vmatprep.mubr.bf16.mxu1 %v1720_v55 }
  0x7e   :  { %1478 = vmatpush3.bf16.msra.mxu0 %v1856_v6  ;;  %1506 = vmatpush3.bf16.msra.mxu1 %v1859_v7 }
  0x7f   :  { %1479 = vmatprep.subr.bf16.mxu0 %v1862_v8  ;;  %1507 = vmatprep.subr.bf16.mxu1 %v1865_v9 }
  0x81   :  { %704 = vmatmul.mubr.bf16.gmra.mrb[16].mxu0 %v1714_v56 }
  0x82   :  { %1480 = vmatpush3.bf16.msra.mxu0 %v1868_v10  ;;  %1508 = vmatpush3.bf16.msra.mxu1 %v1871_v11 }
  0x83   :  { %1481 = vmatprep.subr.bf16.mxu0 %v1874_v12  ;;  %1509 = vmatprep.subr.bf16.mxu1 %v1877_v13 }
  0x84   :  { %866 = vmatprep.mubr.bf16.mxu0 %v1717_v57 }
  0x86   :  { %1482 = vmatpush3.bf16.msra.mxu0 %v1880_v14  ;;  %1510 = vmatpush3.bf16.msra.mxu1 %v1883_v15 }
  0x87   :  { %1483 = vmatprep.subr.bf16.mxu0 %v1886_v16  ;;  %1511 = vmatprep.subr.bf16.mxu1 %v1889_v17 }
  0x8a   :  { %1484 = vmatpush3.bf16.msra.mxu0 %v1892_v18  ;;  %1512 = vmatpush3.bf16.msra.mxu1 %v1895_v19 }
  0x8b   :  { %1485 = vmatprep.subr.bf16.mxu0 %v1898_v20  ;;  %1513 = vmatprep.subr.bf16.mxu1 %v1901_v21 }
  0x8e   :  { %1486 = vmatpush3.bf16.msra.mxu0 %v1904_v22  ;;  %1514 = vmatpush3.bf16.msra.mxu1 %v1907_v23 }
  0x8f   :  { %1487 = vmatprep.subr.bf16.mxu0 %v1910_v24  ;;  %1515 = vmatprep.subr.bf16.mxu1 %v1913_v25 }
  0x92   :  { %1488 = vmatpush3.bf16.msra.mxu0 %v1916_v26  ;;  %1516 = vmatpush3.bf16.msra.mxu1 %v1919_v27 }
  0x93   :  { %1489 = vmatprep.subr.bf16.mxu0 %v1922_v28  ;;  %1517 = vmatprep.subr.bf16.mxu1 %v1925_v29 }
  0x96   :  { %1490 = vmatpush3.bf16.msra.mxu0 %v1928_v30  ;;  %1518 = vmatpush3.bf16.msra.mxu1 %v1931_v31 }
  0x97   :  { %1623 = vmatprep.subr.bf16.mxu0 %v1948_v36  ;;  %1537 = vmatprep.subr.bf16.mxu1 %v1839_v0  ;;  %v1727_v0 = vld [vmem:[%s2223_s0 + $0xb0] ss:$20 sps:$4 sm:$0xff]  }
  0x99   :  { %867 = vmatmul.mubr.bf16.vlgmr.msra.gmra.mrb[20].mxu0 %v1715_v58  ;;  %916 = vmatmul.mubr.bf16.vlgmr.msra.gmra.mrb[20].mxu1 %v1718_v59 }
  0x9a   :  { %1624 = vmatpush3.bf16.msra.mxu0 %v1948_v36  ;;  %1538 = vmatpush3.bf16.msra.mxu1 %v1844_v2  ;;  %v1731_v2 = vld [vmem:[%s2223_s0 + $0xf4] ss:$20 sps:$4 sm:$0xff]  }
  0x9b   :  { %1625 = vmatprep.subr.bf16.mxu0 %v1950_v37  ;;  %874 = vmatprep.mubr.bf16.mxu0 %v1721_v60 }
  0x9c   :  { %923 = vmatprep.mubr.bf16.mxu1 %v1723_v61  ;;  %1539 = vmatprep.subr.bf16.mxu1 %v1850_v4  ;;  %v1728_v4 = vld [vmem:[%s2223_s0 + $0xd8] ss:$20 sps:$4 sm:$0xff]  }
  0x9e   :  { %1626 = vmatpush3.bf16.msra.mxu0 %v1950_v37  ;;  %1540 = vmatpush3.bf16.msra.mxu1 %v1856_v6  ;;  %v1737_v6 = vld [vmem:[%s2223_s0 + $0xfc] ss:$20 sps:$4 sm:$0xff]  }
  0x9f   :  { %1627 = vmatprep.subr.bf16.mxu0 %v1966_v41  ;;  %1541 = vmatprep.subr.bf16.mxu1 %v1862_v8  ;;  %v1735_v8 = vld [vmem:[%s2223_s0 + $0xf8] ss:$20 sps:$4 sm:$0xff]  }
  0xa1   :  { %875 = vmatmul.mubr.bf16.gmra.mrb[24].mxu0 %v1725_v62  ;;  %924 = vmatmul.mubr.bf16.gmra.mrb[24].mxu1 %v1726_v63 }
  0xa2   :  { %1628 = vmatpush3.bf16.msra.mxu0 %v1966_v41  ;;  %1542 = vmatpush3.bf16.msra.mxu1 %v1868_v10  ;;  %v1740_v10 = vld [vmem:[%s2223_s0 + $0x124] ss:$20 sps:$4 sm:$0xff]  }
  0xa3   :  { %1629 = vmatprep.subr.bf16.mxu0 %v1978_v44  ;;  %1631 = vmatprep.mubr.msk.bf16.mxu0 %vm391_vm0, %v1727_v0 }
  0xa4   :  { %1543 = vmatprep.subr.bf16.mxu1 %v1874_v12  ;;  %1086 = vmatprep.mubr.bf16.mxu1 %v1731_v2 }
  0xa6   :  { %1630 = vmatpush3.bf16.msra.mxu0 %v1978_v44  ;;  %1544 = vmatpush3.bf16.msra.mxu1 %v1880_v14 }
  0xa7   :  { %1565 = vmatprep.subr.bf16.mxu0 %v1841_v1  ;;  %1545 = vmatprep.subr.bf16.mxu1 %v1886_v16  ;;  %v1729_v1 = vld [vmem:[%s2223_s0 + $0xf0] ss:$20 sps:$4 sm:$0xff]  }
  0xa9   :  { %1632 = vmatmul.mubr.msk.bf16.vlgmr.msra.gmra.mrb[28].mxu0 %vm391_vm0, %v1728_v4 }
  0xaa   :  { %1566 = vmatpush3.bf16.msra.mxu0 %v1847_v3  ;;  %1546 = vmatpush3.bf16.msra.mxu1 %v1892_v18  ;;  %v1732_v3 = vld [vmem:[%s2223_s0 + $0x11c] ss:$20 sps:$4 sm:$0xff]  }
  0xab   :  { %1567 = vmatprep.subr.bf16.mxu0 %v1853_v5  ;;  %1547 = vmatprep.subr.bf16.mxu1 %v1898_v20  ;;  %v1734_v5 = vld [vmem:[%s2223_s0 + $0x118] ss:$20 sps:$4 sm:$0xff]  }
  0xac   :  { %1135 = vmatprep.mubr.bf16.mxu0 %v1737_v6 }
  0xae   :  { %1568 = vmatpush3.bf16.msra.mxu0 %v1859_v7  ;;  %1548 = vmatpush3.bf16.msra.mxu1 %v1904_v22  ;;  %v1738_v7 = vld [vmem:[%s2223_s0 + $0x100] ss:$20 sps:$4 sm:$0xff]  }
  0xaf   :  { %1569 = vmatprep.subr.bf16.mxu0 %v1865_v9  ;;  %1549 = vmatprep.subr.bf16.mxu1 %v1910_v24  ;;  %v1739_v9 = vld [vmem:[%s2223_s0 + $0x128] ss:$20 sps:$4 sm:$0xff]  }
  0xb2   :  { %1570 = vmatpush3.bf16.msra.mxu0 %v1871_v11  ;;  %1550 = vmatpush3.bf16.msra.mxu1 %v1916_v26  ;;  %v1742_v11 = vld [vmem:[%s2223_s0 + $0x120] ss:$20 sps:$4 sm:$0xff]  }
  0xb3   :  { %1571 = vmatprep.subr.bf16.mxu0 %v1877_v13  ;;  %1551 = vmatprep.subr.bf16.mxu1 %v1922_v28 }
  0xb6   :  { %1572 = vmatpush3.bf16.msra.mxu0 %v1883_v15  ;;  %1552 = vmatpush3.bf16.msra.mxu1 %v1928_v30 }
  0xb7   :  { %1573 = vmatprep.subr.bf16.mxu0 %v1889_v17  ;;  %1635 = vmatprep.subr.bf16.mxu1 %v1948_v36 }
  0xb9   :  { %1087 = vmatmul.mubr.bf16.vlgmr.msra.gmra.mrb[28].mxu1 %v1729_v1 }
  0xba   :  { %1574 = vmatpush3.bf16.msra.mxu0 %v1895_v19  ;;  %1636 = vmatpush3.bf16.msra.mxu1 %v1948_v36 }
  0xbb   :  { %1575 = vmatprep.subr.bf16.mxu0 %v1901_v21  ;;  %1637 = vmatprep.subr.bf16.mxu1 %v1950_v37 }
  0xbc   :  { %1094 = vmatprep.mubr.bf16.mxu1 %v1732_v3 }
  0xbe   :  { %1576 = vmatpush3.bf16.msra.mxu0 %v1907_v23  ;;  %1638 = vmatpush3.bf16.msra.mxu1 %v1950_v37 }
  0xbf   :  { %1577 = vmatprep.subr.bf16.mxu0 %v1913_v25  ;;  %1639 = vmatprep.subr.bf16.mxu1 %v1966_v41 }
  0xc1   :  { %1095 = vmatmul.mubr.bf16.gmra.mrb[32].mxu1 %v1734_v5 }
  0xc2   :  { %1578 = vmatpush3.bf16.msra.mxu0 %v1919_v27  ;;  %1640 = vmatpush3.bf16.msra.mxu1 %v1966_v41 }
  0xc3   :  { %1579 = vmatprep.subr.bf16.mxu0 %v1925_v29  ;;  %1641 = vmatprep.subr.bf16.mxu1 %v1978_v44 }
  0xc4   :  { %1643 = vmatprep.mubr.msk.bf16.mxu1 %vm391_vm0, %v1738_v7 }
  0xc6   :  { %1580 = vmatpush3.bf16.msra.mxu0 %v1931_v31  ;;  %1642 = vmatpush3.bf16.msra.mxu1 %v1978_v44 }
  0xc9   :  { %1136 = vmatmul.mubr.bf16.vlgmr.msra.gmra.mrb[32].mxu0 %v1735_v8  ;;  %1644 = vmatmul.mubr.msk.bf16.vlgmr.msra.gmra.mrb[36].mxu1 %vm391_vm0, %v1739_v9 }
  0xca   :  { %1143 = vmatprep.mubr.bf16.mxu0 %v1740_v10 }
  0xd1   :  { %1144 = vmatmul.mubr.bf16.gmra.mrb[36].mxu0 %v1742_v11 }
 0x11b   :  { %v1367_v12 = vpop.f32.mrb[0].mxu0 }
 0x11c   :  { %v1395_v13 = vpop.f32.mrb[0].mxu1  ;;  %v1368_v14 = vpop.f32.mrb[1].mxu0 }
 0x11d   :  { %v1369_v15 = vadd.f32 %v1368_v14, %v1367_v12  ;;  %v1396_v16 = vpop.f32.mrb[1].mxu1  ;;  %v1370_v17 = vpop.f32.mrb[2].mxu0 }
 0x11e   :  { %v1397_v18 = vadd.f32 %v1396_v16, %v1395_v13  ;;  %v1398_v19 = vpop.f32.mrb[2].mxu1  ;;  %v1371_v20 = vpop.f32.mrb[3].mxu0 }
 0x11f   :  { %v1372_v21 = vadd.f32 %v1371_v20, %v1370_v17  ;;  %v1399_v22 = vpop.f32.mrb[3].mxu1 }
 0x120   :  { %v1400_v23 = vadd.f32 %v1399_v22, %v1398_v19  ;;  %v482_v24 = vadd.f32 %v1397_v18, %v1369_v15 }
 0x122   :  { %v485_v25 = vadd.f32 %v1400_v23, %v1372_v21 }
 0x123   :  { %v1373_v26 = vpop.f32.mrb[4].mxu0 }
 0x124   :  { %v1401_v27 = vpop.f32.mrb[4].mxu1  ;;  %v1374_v28 = vpop.f32.mrb[5].mxu0 }
 0x125   :  { %v1375_v29 = vadd.f32 %v1374_v28, %v1373_v26  ;;  %v1402_v30 = vpop.f32.mrb[5].mxu1  ;;  %v1376_v31 = vpop.f32.mrb[6].mxu0 }
 0x126   :  { %v1403_v32 = vadd.f32 %v1402_v30, %v1401_v27  ;;  %v1404_v33 = vpop.f32.mrb[6].mxu1  ;;  %v1377_v34 = vpop.f32.mrb[7].mxu0 }
 0x127   :  { %v1378_v35 = vadd.f32 %v1377_v34, %v1376_v31  ;;  %v1405_v36 = vpop.f32.mrb[7].mxu1 }
 0x128   :  { %v1406_v37 = vadd.f32 %v1405_v36, %v1404_v33  ;;  %v490_v38 = vadd.f32 %v1403_v32, %v1375_v29 }
 0x12a   :  { %v493_v39 = vadd.f32 %v1406_v37, %v1378_v35 }
 0x12c   :  { %v1609_v40 = vpop.f32.mrb[8].mxu0 }
 0x12d   :  { %v2199_v41 = vadd.f32 %v1609_v40, %v490_v38  ;;  %v530_v42 = vpop.f32.mrb[9].mxu0 }
 0x12e   :  { %v2201_v43 = vadd.f32 %v530_v42, %v482_v24  ;;  %v1610_v44 = vpop.f32.mrb[10].mxu0 }
 0x12f   :  { %v2203_v45 = vadd.f32 %v1610_v44, %v493_v39  ;;  %v533_v46 = vpop.f32.mrb[11].mxu0 }
 0x130   :  { %v2205_v47 = vadd.f32 %v533_v46, %v485_v25 }
 0x13c   :  { %v1429_v48 = vpop.f32.mrb[8].mxu1 }
 0x13d   :  { %v1430_v49 = vpop.f32.mrb[9].mxu1 }
 0x13e   :  { %v1431_v50 = vadd.f32 %v1430_v49, %v1429_v48  ;;  %v1432_v51 = vpop.f32.mrb[10].mxu1 }
 0x13f   :  { %v1433_v52 = vpop.f32.mrb[11].mxu1 }
 0x140   :  { %v1434_v53 = vadd.f32 %v1433_v52, %v1432_v51 }
 0x144   :  { %v1435_v54 = vpop.f32.mrb[12].mxu1 }
 0x145   :  { %v1436_v55 = vpop.f32.mrb[13].mxu1 }
 0x146   :  { %v1437_v56 = vadd.f32 %v1436_v55, %v1435_v54  ;;  %v1438_v57 = vpop.f32.mrb[14].mxu1 }
 0x147   :  { %v1439_v58 = vpop.f32.mrb[15].mxu1 }
 0x148   :  { %v1440_v59 = vadd.f32 %v1439_v58, %v1438_v57 }
 0x14c   :  { %v1457_v60 = vpop.f32.mrb[12].mxu0  ;;  %v1621_v61 = vpop.f32.mrb[16].mxu1 }
 0x14d   :  { %v1458_v62 = vpop.f32.mrb[13].mxu0  ;;  %v746_v63 = vpop.f32.mrb[17].mxu1 }
 0x14e   :  { %v1459_v0 = vadd.f32 %v1458_v62, %v1457_v60  ;;  %v1460_v2 = vpop.f32.mrb[14].mxu0  ;;  %v1622_v4 = vpop.f32.mrb[18].mxu1 }
 0x14f   :  { %v1461_v6 = vpop.f32.mrb[15].mxu0  ;;  %v749_v1 = vpop.f32.mrb[19].mxu1 }
 0x150   :  { %v1462_v3 = vadd.f32 %v1461_v6, %v1460_v2  ;;  %v698_v5 = vadd.f32 %v1459_v0, %v1431_v50 }
 0x152   :  { %v747_v7 = vadd.f32 %v746_v63, %v698_v5  ;;  %v701_v8 = vadd.f32 %v1462_v3, %v1434_v53 }
 0x154   :  { %v761_v9 = vmax.f32 %v2201_v43, %v747_v7  ;;  %v750_v10 = vadd.f32 %v749_v1, %v701_v8  ;;  %v1463_v11 = vpop.f32.mrb[16].mxu0 }
 0x155   :  { %v1464_v12 = vpop.f32.mrb[17].mxu0 }
 0x156   :  { %v762_v13 = vmax.f32 %v2205_v47, %v750_v10  ;;  %v1465_v14 = vadd.f32 %v1464_v12, %v1463_v11  ;;  %v1466_v15 = vpop.f32.mrb[18].mxu0 }
 0x157   :  { %v1467_v16 = vpop.f32.mrb[19].mxu0 }
 0x158   :  { %v706_v17 = vadd.f32 %v1465_v14, %v1437_v56  ;;  %v1468_v18 = vadd.f32 %v1467_v16, %v1466_v15 }
 0x15a   :  { %v755_v19 = vadd.f32 %v1621_v61, %v706_v17  ;;  %v709_v20 = vadd.f32 %v1468_v18, %v1440_v59 }
 0x15c   :  { %v758_v21 = vadd.f32 %v1622_v4, %v709_v20  ;;  %v763_v22 = vmax.f32 %v2199_v41, %v755_v19 }
 0x15e   :  { %v764_v23 = vmax.f32 %v2203_v45, %v758_v21 }
 0x16c   :  { %v1491_v24 = vpop.f32.mrb[20].mxu0  ;;  %v1519_v25 = vpop.f32.mrb[20].mxu1 }
 0x16d   :  { %v1492_v26 = vpop.f32.mrb[21].mxu0  ;;  %v1520_v27 = vpop.f32.mrb[21].mxu1 }
 0x16e   :  { %v1493_v28 = vadd.f32 %v1492_v26, %v1491_v24  ;;  %v1521_v29 = vadd.f32 %v1520_v27, %v1519_v25  ;;  %v1494_v30 = vpop.f32.mrb[22].mxu0  ;;  %v1522_v31 = vpop.f32.mrb[22].mxu1  ;;  %v1350_v25 = vld [vmem:[#allocation4] ss:$0 sm:$0xff] }
 0x16f   :  { %v1495_v32 = vpop.f32.mrb[23].mxu0  ;;  %v1523_v33 = vpop.f32.mrb[23].mxu1 }
 0x170   :  { %v1496_v34 = vadd.f32 %v1495_v32, %v1494_v30  ;;  %v1524_v35 = vadd.f32 %v1523_v33, %v1522_v31  ;;  %v918_v36 = vadd.f32 %v1521_v29, %v1493_v28 }
 0x172   :  { %v921_v37 = vadd.f32 %v1524_v35, %v1496_v34 }
 0x174   :  { %v1497_v38 = vpop.f32.mrb[24].mxu0  ;;  %v1525_v39 = vpop.f32.mrb[24].mxu1 }
 0x175   :  { %v1498_v40 = vpop.f32.mrb[25].mxu0  ;;  %v1526_v41 = vpop.f32.mrb[25].mxu1 }
 0x176   :  { %v1499_v42 = vadd.f32 %v1498_v40, %v1497_v38  ;;  %v1527_v43 = vadd.f32 %v1526_v41, %v1525_v39  ;;  %v1500_v44 = vpop.f32.mrb[26].mxu0  ;;  %v1528_v45 = vpop.f32.mrb[26].mxu1 }
 0x177   :  { %v1501_v46 = vpop.f32.mrb[27].mxu0  ;;  %v1529_v47 = vpop.f32.mrb[27].mxu1 }
 0x178   :  { %v1502_v48 = vadd.f32 %v1501_v46, %v1500_v44  ;;  %v1530_v49 = vadd.f32 %v1529_v47, %v1528_v45  ;;  %v926_v50 = vadd.f32 %v1527_v43, %v1499_v42 }
 0x17a   :  { %v929_v51 = vadd.f32 %v1530_v49, %v1502_v48 }
 0x17c   :  { %v1633_v52 = vpop.f32.mrb[28].mxu0 }
 0x17d   :  { %v975_v53 = vadd.f32 %v1633_v52, %v926_v50  ;;  %v966_v54 = vpop.f32.mrb[29].mxu0 }
 0x17e   :  { %v967_v55 = vadd.f32 %v966_v54, %v918_v36  ;;  %v1634_v56 = vpop.f32.mrb[30].mxu0 }
 0x17f   :  { %v983_v57 = vmax.f32 %v763_v22, %v975_v53  ;;  %v978_v58 = vadd.f32 %v1634_v56, %v929_v51  ;;  %v969_v59 = vpop.f32.mrb[31].mxu0 }
 0x180   :  { %v981_v60 = vmax.f32 %v761_v9, %v967_v55  ;;  %v970_v61 = vadd.f32 %v969_v59, %v921_v37 }
 0x181   :  { %v984_v62 = vmax.f32 %v764_v23, %v978_v58 }
 0x182   :  { %v982_v63 = vmax.f32 %v762_v13, %v970_v61 }
 0x18c   :  { %v1553_v0 = vpop.f32.mrb[28].mxu1 }
 0x18d   :  { %v1554_v2 = vpop.f32.mrb[29].mxu1 }
 0x18e   :  { %v1555_v4 = vadd.f32 %v1554_v2, %v1553_v0  ;;  %v1556_v6 = vpop.f32.mrb[30].mxu1 }
 0x18f   :  { %v1557_v1 = vpop.f32.mrb[31].mxu1 }
 0x190   :  { %v1558_v3 = vadd.f32 %v1557_v1, %v1556_v6 }
 0x194   :  { %v1559_v5 = vpop.f32.mrb[32].mxu1 }
 0x195   :  { %v1560_v7 = vpop.f32.mrb[33].mxu1 }
 0x196   :  { %v1561_v8 = vadd.f32 %v1560_v7, %v1559_v5  ;;  %v1562_v10 = vpop.f32.mrb[34].mxu1 }
 0x197   :  { %v1563_v11 = vpop.f32.mrb[35].mxu1 }
 0x198   :  { %v1564_v12 = vadd.f32 %v1563_v11, %v1562_v10 }
 0x19c   :  { %v1581_v14 = vpop.f32.mrb[32].mxu0  ;;  %v1645_v15 = vpop.f32.mrb[36].mxu1 }
 0x19d   :  { %v1582_v16 = vpop.f32.mrb[33].mxu0  ;;  %v1186_v17 = vpop.f32.mrb[37].mxu1 }
 0x19e   :  { %v1583_v9 = vadd.f32 %v1582_v16, %v1581_v14  ;;  %v1584_v18 = vpop.f32.mrb[34].mxu0  ;;  %v1646_v19 = vpop.f32.mrb[38].mxu1 }
 0x19f   :  { %v1585_v13 = vpop.f32.mrb[35].mxu0  ;;  %v1189_v20 = vpop.f32.mrb[39].mxu1 }
 0x1a0   :  { %v1586_v21 = vadd.f32 %v1585_v13, %v1584_v18  ;;  %v1138_v22 = vadd.f32 %v1583_v9, %v1555_v4 }
 0x1a2   :  { %v1187_v23 = vadd.f32 %v1186_v17, %v1138_v22  ;;  %v1141_v24 = vadd.f32 %v1586_v21, %v1558_v3 }
 0x1a4   :  { %v1201_v26 = vmax.f32 %v981_v60, %v1187_v23  ;;  %v1190_v27 = vadd.f32 %v1189_v20, %v1141_v24  ;;  %v1587_v28 = vpop.f32.mrb[36].mxu0 }
 0x1a5   :  { %v1588_v29 = vpop.f32.mrb[37].mxu0 }
 0x1a6   :  { %v1212_v30 = vadd.f32 %v1350_v25, %v1201_v26  ;;  %v1202_v31 = vmax.f32 %v982_v63, %v1190_v27  ;;  %v1589_v32 = vadd.f32 %v1588_v29, %v1587_v28  ;;  %v1590_v33 = vpop.f32.mrb[38].mxu0 }
 0x1a7   :  { %v1591_v34 = vpop.f32.mrb[39].mxu0 }
 0x1a8   :  { %v1216_v35 = vmax.f32 %v1212_v30, 0.0  ;;  %v1213_v36 = vadd.f32 %v1350_v25, %v1202_v31  ;;  %v1146_v37 = vadd.f32 %v1589_v32, %v1561_v8  ;;  %v1592_v38 = vadd.f32 %v1591_v34, %v1590_v33 }
 0x1aa   :  { %1220 = vst [vmem:[%s2226_s3] sm:$0xff] %v1216_v35  ;;  %v1217_v39 = vmax.f32 %v1213_v36, 0.0  ;;  %v1195_v40 = vadd.f32 %v1645_v15, %v1146_v37  ;;  %v1149_v41 = vadd.f32 %v1592_v38, %v1564_v12 }
 0x1ac   :  { %1221 = vst [vmem:[%s2226_s3 + $0x8] sm:$0xff] %v1217_v39  ;;  %v1203_v42 = vmax.f32 %v983_v57, %v1195_v40  ;;  %v1198_v43 = vadd.f32 %v1646_v19, %v1149_v41 }
 0x1ae   :  { %v1214_v44 = vadd.f32 %v1350_v25, %v1203_v42  ;;  %v1204_v45 = vmax.f32 %v984_v62, %v1198_v43 }
 0x1b0   :  { %v1218_v46 = vmax.f32 %v1214_v44, 0.0  ;;  %v1215_v47 = vadd.f32 %v1350_v25, %v1204_v45 }
 0x1b2   :  { %1222 = vst [vmem:[%s2226_s3 + $0x10] sm:$0xff] %v1218_v46  ;;  %v1219_v48 = vmax.f32 %v1215_v47, 0.0 }
 0x1b4   :  { %1223 = vst [vmem:[%s2226_s3 + $0x18] sm:$0xff] %v1219_v48 }
 0x1b5   :  { %1228 = vsyncpa [#allocation3], 1 }
 0x1b6   :  { %1229 = vsyncpa [#allocation5], 1 }

// kernel: forward.9
= control target key start
LH: loop header
LB: loop body
LE: loop exit
PB: predicated region body
PF: predicated region fallthrough
CT: control target
= control target key end

     0   :  { %v31_v28 = vlaneseq  ;;  %v1025_v36 = vmov 1983009808   ;;  %s1270_s0 = inlined_call_operand.vmem [shape: f32[2,1024], index: 0, kind: input, shape index: {}]   ;;  %s1271_s1 = inlined_call_operand.vmem [shape: bf16[1024,15], index: 1, kind: input, shape index: {}]   ;;  %s1272_s2 = inlined_call_operand.vmem [shape: f32[1,15], index: 2, kind: input, shape index: {}]   ;;  %s1273_s3 = inlined_call_operand.hbm [shape: f32[2,15], index: 3, kind: output, shape index: {}]  }
   0x1   :  { %v935_v0 = vld [vmem:[%s1271_s1 + $0x40] sm:$0xff]   ;;  %v939_v4 = vld [vmem:[%s1271_s1 + $0x48] sm:$0xff]   ;;  %v943_v8 = vld [vmem:[%s1271_s1 + $0x50] sm:$0xff]   ;;  %v29_v37 = vunpack.c.l.s4 %v1025_v36 }
   0x2   :  { %v936_v1 = vld [vmem:[%s1271_s1 + $0xc0] sm:$0xff]   ;;  %844 = vmatprep.subr.bf16.mxu0 %v935_v0  ;;  %v940_v5 = vld [vmem:[%s1271_s1 + $0xc8] sm:$0xff]   ;;  %v944_v9 = vld [vmem:[%s1271_s1 + $0xd0] sm:$0xff]   ;;  %v32_v33 = vshrl.u32 %v31_v28, 7 }
   0x3   :  { %v937_v2 = vld [vmem:[%s1271_s1] sm:$0xff]   ;;  %866 = vmatprep.subr.bf16.mxu1 %v936_v1  ;;  %v941_v6 = vld [vmem:[%s1271_s1 + $0x8] sm:$0xff]   ;;  %v945_v10 = vld [vmem:[%s1271_s1 + $0x10] sm:$0xff]   ;;  %v30_v39 = vunpack.c.0.s8 %v29_v37 }
   0x4   :  { %v938_v3 = vld [vmem:[%s1271_s1 + $0x80] sm:$0xff]   ;;  %845 = vmatpush3.bf16.msra.mxu0 %v937_v2  ;;  %v942_v7 = vld [vmem:[%s1271_s1 + $0x88] sm:$0xff]   ;;  %v946_v11 = vld [vmem:[%s1271_s1 + $0x90] sm:$0xff]  }
   0x5   :  { %867 = vmatpush3.bf16.msra.mxu1 %v938_v3  ;;  %846 = vmatprep.subr.bf16.mxu0 %v939_v4  ;;  %v947_v12 = vld [vmem:[%s1271_s1 + $0x58] sm:$0xff]   ;;  %v951_v16 = vld [vmem:[%s1271_s1 + $0x60] sm:$0xff]   ;;  %v955_v20 = vld [vmem:[%s1271_s1 + $0x68] sm:$0xff]   ;;  %v1153_v41 = vsub.s32 %v30_v39, %v32_v33 }
   0x6   :  { %868 = vmatprep.subr.bf16.mxu1 %v940_v5  ;;  %v948_v13 = vld [vmem:[%s1271_s1 + $0xd8] sm:$0xff]   ;;  %v952_v17 = vld [vmem:[%s1271_s1 + $0xe0] sm:$0xff]   ;;  %v956_v21 = vld [vmem:[%s1271_s1 + $0xe8] sm:$0xff]  }
   0x7   :  { %v949_v14 = vld [vmem:[%s1271_s1 + $0x18] sm:$0xff]   ;;  %v953_v18 = vld [vmem:[%s1271_s1 + $0x20] sm:$0xff]   ;;  %v957_v22 = vld [vmem:[%s1271_s1 + $0x28] sm:$0xff]  }
   0x8   :  { %847 = vmatpush3.bf16.msra.mxu0 %v941_v6  ;;  %v950_v15 = vld [vmem:[%s1271_s1 + $0x98] sm:$0xff]   ;;  %v954_v19 = vld [vmem:[%s1271_s1 + $0xa0] sm:$0xff]   ;;  %v958_v23 = vld [vmem:[%s1271_s1 + $0xa8] sm:$0xff]  }
   0x9   :  { %869 = vmatpush3.bf16.msra.mxu1 %v942_v7  ;;  %848 = vmatprep.subr.bf16.mxu0 %v943_v8  ;;  %v959_v24 = vld [vmem:[%s1271_s1 + $0x70] sm:$0xff]   ;;  %v963_v29 = vld [vmem:[%s1271_s1 + $0x78] sm:$0xff]   ;;  %v23_v34 = vld [vmem:[%s1270_s0] sm:$0xff] }
   0xa   :  { %870 = vmatprep.subr.bf16.mxu1 %v944_v9  ;;  %v960_v25 = vld [vmem:[%s1271_s1 + $0xf0] sm:$0xff]   ;;  %v964_v30 = vld [vmem:[%s1271_s1 + $0xf8] sm:$0xff]   ;;  %v968_v35 = vld [vmem:[%s1271_s1 + $0x140] sm:$0xff]   ;;  %v27_v40 = vcombine.high %v23_v34, %v23_v34  ;;  %v34_v42 = vrot.slane %v23_v34, %v1153_v41 }
   0xb   :  { %v961_v26 = vld [vmem:[%s1271_s1 + $0x30] sm:$0xff]   ;;  %v965_v31 = vld [vmem:[%s1271_s1 + $0x38] sm:$0xff]   ;;  %v969_v38 = vld [vmem:[%s1271_s1 + $0x1c0] sm:$0xff]  }
   0xc   :  { %849 = vmatpush3.bf16.msra.mxu0 %v945_v10  ;;  %v962_v27 = vld [vmem:[%s1271_s1 + $0xb0] sm:$0xff]   ;;  %v966_v32 = vld [vmem:[%s1271_s1 + $0xb8] sm:$0xff]   ;;  %v41_v43 = vrot.slane %v27_v40, %v1153_v41  ;;  %v42_v44 = vcombine.high %v34_v42, %v34_v42  ;;  %v970_v46 = vld [vmem:[%s1271_s1 + $0x100] sm:$0xff]   ;;  %v69_v47 = vpack.c.bf16 %v34_v42, %v34_v42 }
   0xd   :  { %871 = vmatpush3.bf16.msra.mxu1 %v946_v11  ;;  %850 = vmatprep.subr.bf16.mxu0 %v947_v12  ;;  %v971_v49 = vld [vmem:[%s1271_s1 + $0x180] sm:$0xff]   ;;  %v972_v52 = vld [vmem:[%s1271_s1 + $0x148] sm:$0xff]   ;;  %v976_v56 = vld [vmem:[%s1271_s1 + $0x150] sm:$0xff]  }
   0xe   :  { %872 = vmatprep.subr.bf16.mxu1 %v948_v13  ;;  %v43_v45 = vcombine.high %v41_v43, %v41_v43  ;;  %v71_v48 = vpack.c.bf16 %v41_v43, %v41_v43  ;;  %v70_v50 = vpack.c.bf16 %v42_v44, %v42_v44  ;;  %v973_v53 = vld [vmem:[%s1271_s1 + $0x1c8] sm:$0xff]   ;;  %v977_v57 = vld [vmem:[%s1271_s1 + $0x1d0] sm:$0xff]   ;;  %v980_v60 = vld [vmem:[%s1271_s1 + $0x158] sm:$0xff]  }
   0xf   :  { %v974_v54 = vld [vmem:[%s1271_s1 + $0x108] sm:$0xff]   ;;  %v978_v58 = vld [vmem:[%s1271_s1 + $0x110] sm:$0xff]   ;;  %v981_v61 = vld [vmem:[%s1271_s1 + $0x1d8] sm:$0xff]  }
  0x10   :  { %851 = vmatpush3.bf16.msra.mxu0 %v949_v14  ;;  %v72_v51 = vpack.c.bf16 %v43_v45, %v43_v45  ;;  %621 = vmatprep.mubr.bf16.mxu0 %v70_v50  ;;  %v975_v55 = vld [vmem:[%s1271_s1 + $0x188] sm:$0xff]   ;;  %v979_v59 = vld [vmem:[%s1271_s1 + $0x190] sm:$0xff]   ;;  %v982_v62 = vld [vmem:[%s1271_s1 + $0x118] sm:$0xff]  }
  0x11   :  { %873 = vmatpush3.bf16.msra.mxu1 %v950_v15  ;;  %852 = vmatprep.subr.bf16.mxu0 %v951_v16  ;;  %v983_v63 = vld [vmem:[%s1271_s1 + $0x198] sm:$0xff]   ;;  %v984_v0 = vld [vmem:[%s1271_s1 + $0x160] sm:$0xff]   ;;  %v988_v4 = vld [vmem:[%s1271_s1 + $0x168] sm:$0xff]  }
  0x12   :  { %874 = vmatprep.subr.bf16.mxu1 %v952_v17  ;;  %661 = vmatprep.mubr.bf16.mxu1 %v72_v51  ;;  %v985_v1 = vld [vmem:[%s1271_s1 + $0x1e0] sm:$0xff]   ;;  %v989_v5 = vld [vmem:[%s1271_s1 + $0x1e8] sm:$0xff]   ;;  %v992_v8 = vld [vmem:[%s1271_s1 + $0x170] sm:$0xff]  }
  0x13   :  { %v986_v2 = vld [vmem:[%s1271_s1 + $0x120] sm:$0xff]   ;;  %v990_v6 = vld [vmem:[%s1271_s1 + $0x128] sm:$0xff]   ;;  %v993_v9 = vld [vmem:[%s1271_s1 + $0x1f0] sm:$0xff]  }
  0x14   :  { %853 = vmatpush3.bf16.msra.mxu0 %v953_v18  ;;  %v987_v3 = vld [vmem:[%s1271_s1 + $0x1a0] sm:$0xff]   ;;  %v991_v7 = vld [vmem:[%s1271_s1 + $0x1a8] sm:$0xff]  }
  0x15   :  { %875 = vmatpush3.bf16.msra.mxu1 %v954_v19  ;;  %854 = vmatprep.subr.bf16.mxu0 %v955_v20  ;;  %v24_v10 = vld [vmem:[%s1270_s0 + $0x8] sm:$0xff] }
  0x16   :  { %876 = vmatprep.subr.bf16.mxu1 %v956_v21 }
  0x18   :  { %855 = vmatpush3.bf16.msra.mxu0 %v957_v22 }
  0x19   :  { %877 = vmatpush3.bf16.msra.mxu1 %v958_v23  ;;  %856 = vmatprep.subr.bf16.mxu0 %v959_v24 }
  0x1a   :  { %878 = vmatprep.subr.bf16.mxu1 %v960_v25 }
  0x1c   :  { %857 = vmatpush3.bf16.msra.mxu0 %v961_v26 }
  0x1d   :  { %879 = vmatpush3.bf16.msra.mxu1 %v962_v27  ;;  %858 = vmatprep.subr.bf16.mxu0 %v963_v29 }
  0x1e   :  { %880 = vmatprep.subr.bf16.mxu1 %v964_v30 }
  0x20   :  { %859 = vmatpush3.bf16.msra.mxu0 %v965_v31 }
  0x21   :  { %881 = vmatpush3.bf16.msra.mxu1 %v966_v32  ;;  %888 = vmatprep.subr.bf16.mxu0 %v968_v35 }
  0x22   :  { %910 = vmatprep.subr.bf16.mxu1 %v969_v38 }
  0x23   :  { %622 = vmatmul.mubr.bf16.vlgmr.msra.gmra.mrb[0].mxu0 %v69_v47 }
  0x24   :  { %662 = vmatmul.mubr.bf16.vlgmr.msra.gmra.mrb[0].mxu1 %v71_v48  ;;  %889 = vmatpush3.bf16.msra.mxu0 %v970_v46 }
  0x25   :  { %911 = vmatpush3.bf16.msra.mxu1 %v971_v49  ;;  %890 = vmatprep.subr.bf16.mxu0 %v972_v52 }
  0x26   :  { %912 = vmatprep.subr.bf16.mxu1 %v973_v53 }
  0x28   :  { %891 = vmatpush3.bf16.msra.mxu0 %v974_v54 }
  0x29   :  { %913 = vmatpush3.bf16.msra.mxu1 %v975_v55  ;;  %892 = vmatprep.subr.bf16.mxu0 %v976_v56 }
  0x2a   :  { %914 = vmatprep.subr.bf16.mxu1 %v977_v57 }
  0x2c   :  { %893 = vmatpush3.bf16.msra.mxu0 %v978_v58 }
  0x2d   :  { %915 = vmatpush3.bf16.msra.mxu1 %v979_v59  ;;  %894 = vmatprep.subr.bf16.mxu0 %v980_v60 }
  0x2e   :  { %916 = vmatprep.subr.bf16.mxu1 %v981_v61 }
  0x30   :  { %895 = vmatpush3.bf16.msra.mxu0 %v982_v62 }
  0x31   :  { %917 = vmatpush3.bf16.msra.mxu1 %v983_v63  ;;  %896 = vmatprep.subr.bf16.mxu0 %v984_v0 }
  0x32   :  { %918 = vmatprep.subr.bf16.mxu1 %v985_v1 }
  0x34   :  { %897 = vmatpush3.bf16.msra.mxu0 %v986_v2 }
  0x35   :  { %919 = vmatpush3.bf16.msra.mxu1 %v987_v3  ;;  %898 = vmatprep.subr.bf16.mxu0 %v988_v4 }
  0x36   :  { %920 = vmatprep.subr.bf16.mxu1 %v989_v5 }
  0x37   :  { %8 = vsyncpa [#allocation4], 0  ;;  %v51_v11 = vrot.slane %v24_v10, %v1153_v41  ;;  %v44_v12 = vcombine.high %v24_v10, %v24_v10  ;;  %v994_v13 = vld [vmem:[%s1271_s1 + $0x130] sm:$0xff]   ;;  %v996_v17 = vld [vmem:[%s1271_s1 + $0x178] sm:$0xff]   ;;  %vm20_vm0 = vcmask 115712   ;;  %v1026_v26 = vmov 0.0  }
  0x38   :  { %899 = vmatpush3.bf16.msra.mxu0 %v990_v6  ;;  %v995_v14 = vld [vmem:[%s1271_s1 + $0x1b0] sm:$0xff]   ;;  %v997_v18 = vld [vmem:[%s1271_s1 + $0x1f8] sm:$0xff]   ;;  %21 = vst.msk [vmem:[#allocation2] sm:$0x3] %vm20_vm0, %v1026_v26  ;;  %v843_v52 = vld [vmem:[%s1272_s2] ss:$0 sm:$0xff] }
  0x39   :  { %921 = vmatpush3.bf16.msra.mxu1 %v991_v7  ;;  %v59_v15 = vcombine.high %v51_v11, %v51_v11  ;;  %v58_v16 = vrot.slane %v44_v12, %v1153_v41  ;;  %900 = vmatprep.subr.bf16.mxu0 %v992_v8  ;;  %v998_v21 = vld [vmem:[%s1271_s1 + $0x138] sm:$0xff]   ;;  %v73_v24 = vpack.c.bf16 %v51_v11, %v51_v11  ;;  %s1027_s9 = smov [#allocation3]  }
  0x3a   :  { %922 = vmatprep.subr.bf16.mxu1 %v993_v9  ;;  %v999_v22 = vld [vmem:[%s1271_s1 + $0x1b8] sm:$0xff]   ;;  %s771_s10 = sshll.u32 %s1027_s9, 4  ;;  %s772_s10 = int_to_ptr.vmem [resolvable:$true] %s771_s10 }
  0x3b   :  { %v74_v19 = vpack.c.bf16 %v59_v15, %v59_v15  ;;  %v60_v20 = vcombine.high %v58_v16, %v58_v16  ;;  %v75_v25 = vpack.c.bf16 %v58_v16, %v58_v16  ;;  %s1001_s11 = scalar_lea.vmem %s772_s10, 32  ;;  %p1006_p1 = scmp.lt.s32.totalorder %s772_s10, %s772_s10 }
  0x3c   :  { %901 = vmatpush3.bf16.msra.mxu0 %v994_v13  ;;  %p1002_p0 = scmp.ne.s32.totalorder %s772_s10, %s1001_s11  ;;  %p1007_p2 = scmp.lt.s32.totalorder %s1001_s11, %s1001_s11 }
  0x3d   :  { %923 = vmatpush3.bf16.msra.mxu1 %v995_v14  ;;  %v76_v23 = vpack.c.bf16 %v60_v20, %v60_v20  ;;  %902 = vmatprep.subr.bf16.mxu0 %v996_v17 }
  0x3e   :  { %924 = vmatprep.subr.bf16.mxu1 %v997_v18  ;;  %701 = vmatprep.mubr.bf16.mxu0 %v74_v19  ;;  %p1008_p3 = por %p1007_p2, %p1006_p1 }
  0x3f   :  { %741 = vmatprep.mubr.bf16.mxu1 %v76_v23  ;;  %v22_v49 = vld [vmem:[#allocation2] sm:$0x3] }
  0x40   :  { %903 = vmatpush3.bf16.msra.mxu0 %v998_v21  ;;  %p1009_p4 = pnand %p1008_p3, %p1002_p0 }
  0x41   :  { %925 = vmatpush3.bf16.msra.mxu1 %v999_v22 }
  0x43   :  { %702 = vmatmul.mubr.bf16.vlgmr.msra.gmra.mrb[4].mxu0 %v73_v24 }
  0x44   :  { %742 = vmatmul.mubr.bf16.vlgmr.msra.gmra.mrb[4].mxu1 %v75_v25 }
  0xf6   :  { %v860_v27 = vpop.f32.mrb[0].mxu0 }
  0xf7   :  { %v882_v28 = vpop.f32.mrb[0].mxu1  ;;  %v861_v29 = vpop.f32.mrb[1].mxu0 }
  0xf8   :  { %v883_v30 = vpop.f32.mrb[1].mxu1  ;;  %v862_v31 = vadd.f32 %v861_v29, %v860_v27  ;;  %v863_v33 = vpop.f32.mrb[2].mxu0 }
  0xf9   :  { %v884_v32 = vadd.f32 %v883_v30, %v882_v28  ;;  %v885_v34 = vpop.f32.mrb[2].mxu1  ;;  %v864_v35 = vpop.f32.mrb[3].mxu0 }
  0xfa   :  { %v886_v36 = vpop.f32.mrb[3].mxu1 }
  0xfb   :  { %v664_v37 = vadd.f32 %v884_v32, %v862_v31 }
 0x116   :  { %v904_v38 = vpop.f32.mrb[4].mxu0 }
 0x117   :  { %v926_v39 = vpop.f32.mrb[4].mxu1  ;;  %v905_v40 = vpop.f32.mrb[5].mxu0 }
 0x118   :  { %v927_v41 = vpop.f32.mrb[5].mxu1  ;;  %v906_v42 = vadd.f32 %v905_v40, %v904_v38  ;;  %v907_v44 = vpop.f32.mrb[6].mxu0 }
 0x119   :  { %v928_v43 = vadd.f32 %v927_v41, %v926_v39  ;;  %v929_v45 = vpop.f32.mrb[6].mxu1  ;;  %v908_v46 = vpop.f32.mrb[7].mxu0 }
 0x11a   :  { %v930_v47 = vpop.f32.mrb[7].mxu1  ;;  %v704_v48 = vadd.f32 %v906_v42, %v664_v37 }
 0x11c   :  { %v744_v50 = vadd.f32 %v928_v43, %v704_v48 }
 0x11e   :  { %v749_v51 = vadd.f32 %v744_v50, %v22_v49 }
 0x120   :  { %751 = vst.msk [vmem:[#allocation2] sm:$0x3] %vm20_vm0, %v749_v51 }
 0x127   :  { %v755_v53 = vld [vmem:[#allocation2] sm:$0x3] }
 0x128   :  { %v763_v54 = vadd.f32 %v843_v52, %v755_v53 }
 0x12a   :  { %764 = vst.msk [vmem:[#allocation3] sm:$0x3] %vm20_vm0, %v763_v54 }
 0x12b   :  { %1012 = shalt.err (!%p1009_p4)
}
 0x12c   :  { %s1013_s14 = scalar_lea.hbm %s1273_s3, 32 }
 0x12d   :  { %p1014_p5 = scmp.ne.s32.totalorder %s1273_s3, %s1013_s14  ;;  %p1017_p6 = scmp.lt.u32.totalorder %s1013_s14, %s1273_s3 }
 0x12f   :  { %p1019_p7 = pnand %p1017_p6, %p1014_p5 }
 0x131   :  { %1022 = shalt.err (!%p1019_p7)
}
 0x132   :  { %774 = dma.vmem_to_hbm [thread:$0]  %s772_s10, 32, %s1273_s3, [#allocation4]  }
 0x133   :  { %1023 = dma.done.wait [#allocation4], 32  }
 0x134   :  { %1024 = vsyncadd [#allocation4], 4294967264 }
 0x135   :  { %778 = vsyncpa [#allocation4], 1 }

// kernel: forward.8
= control target key start
LH: loop header
LB: loop body
LE: loop exit
PB: predicated region body
PF: predicated region fallthrough
CT: control target
= control target key end

     0   :  { %s3940_s0 = inlined_call_operand.vmem [shape: f32[2,16384], index: 0, kind: input, shape index: {}]   ;;  %s3941_s1 = inlined_call_operand.hbm [shape: bf16[16384,1024], index: 1, kind: input, shape index: {}]   ;;  %s3942_s2 = inlined_call_operand.hbm [shape: f32[1,1024], index: 2, kind: input, shape index: {}]   ;;  %s3943_s3 = inlined_call_operand.vmem [shape: f32[2,1024], index: 3, kind: output, shape index: {}]  }
   0x1   :  { %3949 = sst [smem:[#allocation10_spill]] %s3941_s1 }
   0x2   :  { %8 = vsyncpa [#allocation4], 0 }
   0x3   :  { %10 = vsyncpa [#allocation4 + $0x1], 0 }
   0x4   :  { %11 = vsyncpa [#allocation6], 0 }
   0x5   :  { %13 = vsyncpa [#allocation6 + $0x1], 0  ;;  %s3359_s12 = smov 0   ;;  %s3361_s13 = smov 0  }
   0x6   :  { %s3363_s14 = smov 0   ;;  %s3365_s15 = smov 0  }
   0x7   :  { %s3367_s16 = smov 0   ;;  %s3369_s17 = smov 0  }
   0x8   :  { %s3371_s18 = smov 0   ;;  %s3373_s19 = smov 0  }
   0x9   :  { %s3375_s20 = smov 0   ;;  %s3377_s21 = smov 0  }
   0xa   :  { %s3379_s22 = smov 0  }
   0xb LB: > { %s28_s23 = sadd.s32 1, %s3322_s20  ;;  %s66_s24 = sadd.s32 1, %s3310_s17  ;;  %s3330_s22 = sphi %s3379_s22, %s19_s22   ;;  %s3326_s21 = sphi %s3377_s21, %s3975_s21   ;;  %s3322_s20 = sphi %s3375_s20, %s3974_s20   ;;  %s3318_s19 = sphi %s3373_s19, %s3973_s19   ;;  %s3314_s18 = sphi %s3371_s18, %s3972_s18   ;;  %s3310_s17 = sphi %s3369_s17, %s3971_s17   ;;  %s3306_s16 = sphi %s3367_s16, %s3970_s16   ;;  %s3302_s15 = sphi %s3365_s15, %s3969_s15   ;;  %s3298_s14 = sphi %s3363_s14, %s3968_s14   ;;  %s3294_s13 = sphi %s3361_s13, %s3967_s13   ;;  %s3290_s12 = sphi %s3359_s12, %s3966_s12  }
   0xc   : > { %p3416_p0 = scmp.ge.s32.totalorder %s28_s23, 16  ;;  %p73_p1 = scmp.ne.s32.totalorder %s3310_s17, %s3306_s16 }
   0xd   : > { %p3945_p2 = scmp.eq.s32.totalorder %s3330_s22, 0  ;;  %p3944_p4 = scmp.lt.s32.totalorder %s3330_s22, 32 }
   0xe   : > { %s3977_s23 = smov (%p3416_p0, %s28_s23), 0  ;;  %s164_s27 = sand.u32 1, %s3310_s17  }
   0xf   : > { %p75_p3 = por %p3945_p2, %p73_p1  ;;  %s61_s26 = ssub.s32 %s3322_s20, %s3977_s23 }
  0x10   : > { %s2384_s28 = sshll.u32 %s164_s27, 11  ;;  %s2386_s29 = sshll.u32 %s3326_s21, 2 }
  0x11   : > { %s2659_s30 = sshll.u32 %s3322_s20, 10  ;;  %s168_s4 = scalar_lea.vmem [#allocation3], %s2384_s28 }
  0x12   : > { %s178_s5 = sshll.u32 %s168_s4, 4  ;;  %s175_s6 = sadd.s32 %s2659_s30, %s2386_s29  ;;  %s3435_s5 = int_to_ptr.vmem [resolvable:$true] %s178_s5 }
  0x13   : > { %s2388_s7 = sshll.u32 %s175_s6, 6  ;;  %p3439_p5 = pnand %p3944_p4, %p75_p3 }
  0x14   : > { %s3952_s1 = sld [smem:[#allocation10_spill]]  ;;  %s3449_s28 = scalar_lea.sflag [#allocation4], %s164_s27 }
  0x15   : > { %p3178_p8 = pneg %p3439_p5 }
  0x1a   : > { %s3446_s11 = scalar_lea.hbm %s3952_s1, %s2388_s7  ;;  %s3181_s6 = scalar_lea.hbm %s3952_s1, 1048576 }
  0x1b   : > { %s3176_s29 = scalar_lea.hbm %s3446_s11, 32768  ;;  %p3182_p11 = scmp.lt.u32.totalorder %s3446_s11, %s3952_s1 }
  0x1c   : > { %p3177_p7 = scmp.ne.s32.totalorder %s3446_s11, %s3176_s29  ;;  %p3183_p12 = scmp.lt.u32.totalorder %s3181_s6, %s3176_s29 }
  0x1d   : > { %p3185_p1 = scmp.lt.u32.totalorder %s3176_s29, %s3446_s11 }
  0x1e   : > { %p3179_p9 = pnand %p3178_p8, %p3177_p7  ;;  %p3184_p13 = por %p3183_p12, %p3182_p11 }
  0x20   : > { %p3180_p10 = pneg %p3179_p9  ;;  %p3186_p3 = por %p3185_p1, %p3184_p13 }
  0x22   : > { %p3187_p4 = pnand %p3186_p3, %p3180_p10 }
  0x24   : > { %3190 = shalt.err (!%p3187_p4)
}
  0x25   : > { %s3191_s27 = scalar_lea.vmem %s3435_s5, 32768  ;;  %s3332_s10 = smov [#allocation3]  }
  0x26   : > { %p3192_p7 = scmp.ne.s32.totalorder %s3435_s5, %s3191_s27  ;;  %s3196_s30 = sshll.u32 %s3332_s10, 4  ;;  %s3197_s30 = int_to_ptr.vmem [resolvable:$false] %s3196_s30 }
  0x27   : > { %s3198_s4 = scalar_lea.vmem %s3197_s30, 65536  ;;  %p3199_p6 = scmp.lt.s32.totalorder %s3435_s5, %s3197_s30 }
  0x28   : > { %p3194_p9 = pnand %p3192_p7, %p3178_p8  ;;  %p3200_p11 = scmp.lt.s32.totalorder %s3198_s4, %s3191_s27 }
  0x2a   : > { %p3195_p2 = pneg %p3194_p9  ;;  %p3201_p12 = por %p3200_p11, %p3199_p6 }
  0x2c   : > { %p3202_p13 = pnand %p3201_p12, %p3195_p2 }
  0x2e   : > { %3205 = shalt.err (!%p3202_p13)
}
  0x2f   : > { %s3333_s29 = smov 512   ;;  %s3334_s6 = smov 256  }
  0x30   : > { %s3335_s7 = smov 16   ;;  %p205_p2 = scmp.lt.s32.totalorder %s3330_s22, 33 }
  0x31   : > { %2692 = dma.hbm_to_vmem [thread:$0]  (!%p3439_p5), %s3446_s11, 32768, %s3435_s5, %s3449_s28, %s3333_s29, %s3334_s6, %s3335_s7  }
  0x32   : > { %p3953_p4 = scmp.ge.s32.totalorder %s3330_s22, 1  ;;  %s2380_s27 = sadd.s32 4294967295, %s3330_s22  }
  0x33   : > { %s31_s10 = sadd.s32 1, %s3326_s21  ;;  %p79_p8 = scmp.ne.s32.totalorder %s3306_s16, %s3302_s15 }
  0x34   : > { %p3480_p6 = pnand %p3953_p4, %p205_p2  ;;  %s3979_s10 = smov (!%p3416_p0, %s31_s10), %s3326_s21 }
  0x35   : > { %p3491_p10 = scmp.eq.s32.totalorder %s2380_s27, 0  ;;  %p33_p5 = scmp.ge.s32.totalorder %s3979_s10, 2 }
  0x36   : > { %s92_s5 = sadd.s32 1, %s3298_s14  ;;  %p99_p3 = scmp.ne.s32.totalorder %s3298_s14, %s3294_s13 }
  0x37   : > { %p3498_p1 = por %p3491_p10, %p79_p8  ;;  %s3981_s10 = smov (%p33_p5, %s3979_s10), 0 }
  0x38   : > { %3957 = sst [smem:[#allocation9_spill]] %s3981_s10  ;;  %p3958_p0 = scmp.eq.s32.totalorder %s3330_s22, 0 }
  0x39   : > { %s3956_s11 = scalar_select %p3498_p1, 1, 0 }
  0x3a   : > { %p3508_p7 = por %p99_p3, %p3958_p0  ;;  %p105_p9 = scmp.ne.s32.totalorder %s3294_s13, %s3290_s12 }
  0x3b   : > { %s62_s25 = ssub.s32 %s3326_s21, %s3981_s10  ;;  %s188_s28 = sand.u32 1, %s3298_s14  }
  0x3c   : > { %s63_s30 = sor.u32 %s62_s25, %s61_s26  ;;  %p90_p11 = scmp.eq.s32.totalorder %s62_s25, 0 }
  0x3d   : > { %p64_p12 = scmp.eq.s32.totalorder %s63_s30, 0  ;;  %p3522_p13 = por %p105_p9, %p3491_p10 }
  0x3e   : > { %s3527_s29 = scalar_select %p90_p11, %s3298_s14, %s92_s5  }
  0x3f   : > { %s3960_s4 = scalar_select %p3522_p13, 1, 0 }
  0x40   : > { %s3532_s6 = scalar_select %p64_p12, %s3310_s17, %s66_s24  }
  0x41   : > { %s2389_s7 = sshll.u32 %s188_s28, 2  ;;  %s2660_s27 = sshll.u32 %s3326_s21, 6 }
  0x42   : > { %s3538_s10 = scalar_lea.hbm %s3942_s2, %s2660_s27  ;;  %s192_s26 = scalar_lea.vmem [#allocation5], %s2389_s7 }
  0x43   : > { %s200_s8 = sshll.u32 %s192_s26, 4  ;;  %p3961_p2 = scmp.lt.s32.totalorder %s3330_s22, 32  ;;  %s3540_s8 = int_to_ptr.vmem [resolvable:$true] %s200_s8 }
  0x44   : > { %s189_s5 = scalar_lea.sflag [#allocation6], %s188_s28  ;;  %s3206_s1 = scalar_lea.hbm %s3538_s10, 64 }
  0x45   : > { %p3546_p4 = pnand %p3961_p2, %p3508_p7  ;;  %p3207_p8 = scmp.ne.s32.totalorder %s3538_s10, %s3206_s1 }
  0x46   : > { %s3211_s15 = scalar_lea.hbm %s3942_s2, 128  ;;  %p3212_p0 = scmp.lt.u32.totalorder %s3538_s10, %s3942_s2 }
  0x47   : > { %p3208_p10 = pneg %p3546_p4  ;;  %p3213_p7 = scmp.lt.u32.totalorder %s3211_s15, %s3206_s1 }
  0x48   : > { %p3215_p11 = scmp.lt.u32.totalorder %s3206_s1, %s3538_s10 }
  0x49   : > { %p3209_p5 = pnand %p3208_p10, %p3207_p8  ;;  %p3214_p9 = por %p3213_p7, %p3212_p0 }
  0x4b   : > { %p3210_p3 = pneg %p3209_p5  ;;  %p3216_p12 = por %p3215_p11, %p3214_p9 }
  0x4d   : > { %p3217_p2 = pnand %p3216_p12, %p3210_p3 }
  0x4f   : > { %3220 = shalt.err (!%p3217_p2)
}
  0x50   : > { %s3221_s28 = scalar_lea.vmem %s3540_s8, 64  ;;  %s3336_s12 = smov [#allocation5]  }
  0x51   : > { %p3222_p8 = scmp.ne.s32.totalorder %s3540_s8, %s3221_s28  ;;  %s3226_s26 = sshll.u32 %s3336_s12, 4  ;;  %s3227_s26 = int_to_ptr.vmem [resolvable:$false] %s3226_s26 }
  0x52   : > { %s3228_s25 = scalar_lea.vmem %s3227_s26, 128  ;;  %p3229_p1 = scmp.lt.s32.totalorder %s3540_s8, %s3227_s26 }
  0x53   : > { %p3224_p5 = pnand %p3222_p8, %p3208_p10  ;;  %p3230_p0 = scmp.lt.s32.totalorder %s3228_s25, %s3221_s28 }
  0x55   : > { %p3225_p13 = pneg %p3224_p5  ;;  %p3231_p7 = por %p3230_p0, %p3229_p1 }
  0x57   : > { %p3232_p9 = pnand %p3231_p7, %p3225_p13 }
  0x59   : > { %3235 = shalt.err (!%p3232_p9)
}
  0x5a   : > { %2695 = dma.hbm_to_vmem [thread:$0]  (!%p3546_p4), %s3538_s10, 64, %s3540_s8, %s189_s5  }
  0x5b   : > { %209 = sbr.rel (%p3480_p6) target bundleno = 605 (0x25d), region = 32  ;;  %s211_s1 = sand.u32 (!%p3480_p6), 1, %s3306_s16  }
  0x5c   : > { %s2393_s30 = sshll.u32 (!%p3480_p6), %s211_s1, 11  ;;  %s212_s15 = scalar_lea.sflag (!%p3480_p6), [#allocation4], %s211_s1 }
  0x5d   : > { %s3578_s7 = scalar_lea.vmem (!%p3480_p6), [#allocation3], %s2393_s30  ;;  %p3963_p10 = scmp.ne.s32.totalorder (!%p3480_p6), %s3956_s11, 0 }
  0x62   : > { %3281 = dma.done.wait (%p3963_p10), %s212_s15, 32768  }
  0x63   : > { %3283 = vsyncadd (%p3963_p10), %s212_s15, 4294934528  ;;  %s220_s24 = sand.u32 1, %s3294_s13   ;;  %p3964_p6 = scmp.ne.s32.totalorder %s3960_s4, 0 }
  0x64   : > { %s3585_s27 = sshll.u32 %s220_s24, 2  ;;  %s221_s9 = scalar_lea.sflag [#allocation6], %s220_s24 }
  0x65   : > { %s224_s10 = scalar_lea.vmem [#allocation5], %s3585_s27 }
  0x66   : > { %3285 = dma.done.wait (%p3964_p6), %s221_s9, 64  }
  0x67   : > { %3287 = vsyncadd (%p3964_p6), %s221_s9, 4294967232  ;;  %s2395_s8 = sshll.u32 %s3314_s18, 3  ;;  %s2397_s5 = sshll.u32 %s3318_s19, 2 }
  0x68   : > { %p258_p1 = scmp.lt.s32.totalorder %s2395_s8, 127  ;;  %p267_p13 = scmp.lt.s32.totalorder %s2397_s5, 7 }
  0x69   : > { %p2399_p4 = scmp.ne.s32.totalorder %s3314_s18, 0 }
  0x6a   : > { %s3983_s8 = smov (!%p258_p1, %s2395_s8), 127  ;;  %s3985_s5 = smov (!%p267_p13, %s2397_s5), 7 }
  0x6b   : > { %s2396_s11 = sshll.u32 %s3983_s8, 1  ;;  %s2398_s25 = sshll.u32 %s3985_s5, 1  ;;  %v3337_v0 = vmov (!%p2399_p4), 0.0  }
  0x6c   : > { %s3597_s26 = scalar_lea.vmem %s3940_s0, %s2396_s11  ;;  %s3602_s4 = scalar_lea.vmem %s3943_s3, %s2398_s25  ;;  %276 = vst [vmem:[#allocation2] sm:$0xff] (!%p2399_p4), %v3337_v0 }
  0x6d   : > { %275 = sbr.rel (%p2399_p4) target bundleno = 116 (0x74), region = 44 }
  0x74 PF: > { %v2790_v1 = vld [vmem:[%s3578_s7 + $0x4] ss:$16 sps:$4 sm:$0xff]   ;;  %v2792_v2 = vld [vmem:[%s3578_s7 + $0xc] ss:$16 sps:$4 sm:$0xff]   ;;  %v2794_v3 = vld [vmem:[%s3578_s7] ss:$16 sps:$4 sm:$0xff]   ;;  %v286_v39 = vlaneseq }
  0x75   : > { %1868 = vmatprep.subr.bf16.mxu0 %v2790_v1  ;;  %v2795_v4 = vld [vmem:[%s3578_s7 + $0x8] ss:$16 sps:$4 sm:$0xff]   ;;  %2032 = vmatprep.subr.bf16.mxu1 %v2792_v2  ;;  %v2796_v5 = vld [vmem:[%s3578_s7 + $0x24] ss:$16 sps:$4 sm:$0xff]   ;;  %v2798_v6 = vld [vmem:[%s3578_s7 + $0x2c] ss:$16 sps:$4 sm:$0xff]  }
  0x76   : > { %1869 = vmatpush1.bf16.msra.mxu0 %v2794_v3  ;;  %2033 = vmatpush1.bf16.msra.mxu1 %v2795_v4  ;;  %v2800_v7 = vld [vmem:[%s3578_s7 + $0x20] ss:$16 sps:$4 sm:$0xff]   ;;  %v2801_v8 = vld [vmem:[%s3578_s7 + $0x28] ss:$16 sps:$4 sm:$0xff]   ;;  %v2802_v9 = vld [vmem:[%s3578_s7 + $0x44] ss:$16 sps:$4 sm:$0xff]  }
  0x77   : > { %1870 = vmatprep.subr.bf16.mxu0 %v2796_v5  ;;  %2034 = vmatprep.subr.bf16.mxu1 %v2798_v6  ;;  %v2804_v10 = vld [vmem:[%s3578_s7 + $0x4c] ss:$16 sps:$4 sm:$0xff]   ;;  %v2806_v11 = vld [vmem:[%s3578_s7 + $0x40] ss:$16 sps:$4 sm:$0xff]   ;;  %v2807_v12 = vld [vmem:[%s3578_s7 + $0x48] ss:$16 sps:$4 sm:$0xff]  }
  0x78   : > { %v2808_v13 = vld [vmem:[%s3578_s7 + $0x64] ss:$16 sps:$4 sm:$0xff]   ;;  %v2810_v14 = vld [vmem:[%s3578_s7 + $0x6c] ss:$16 sps:$4 sm:$0xff]   ;;  %v2812_v15 = vld [vmem:[%s3578_s7 + $0x60] ss:$16 sps:$4 sm:$0xff]  }
  0x79   : > { %v2813_v16 = vld [vmem:[%s3578_s7 + $0x68] ss:$16 sps:$4 sm:$0xff]   ;;  %v2814_v17 = vld [vmem:[%s3578_s7 + $0x84] ss:$16 sps:$4 sm:$0xff]   ;;  %v2816_v18 = vld [vmem:[%s3578_s7 + $0x8c] ss:$16 sps:$4 sm:$0xff]  }
  0x7a   : > { %1871 = vmatpush1.bf16.msra.mxu0 %v2800_v7  ;;  %2035 = vmatpush1.bf16.msra.mxu1 %v2801_v8  ;;  %v2818_v19 = vld [vmem:[%s3578_s7 + $0x80] ss:$16 sps:$4 sm:$0xff]   ;;  %v2819_v20 = vld [vmem:[%s3578_s7 + $0x88] ss:$16 sps:$4 sm:$0xff]   ;;  %v2820_v21 = vld [vmem:[%s3578_s7 + $0xa4] ss:$16 sps:$4 sm:$0xff]  }
  0x7b   : > { %1872 = vmatprep.subr.bf16.mxu0 %v2802_v9  ;;  %2036 = vmatprep.subr.bf16.mxu1 %v2804_v10  ;;  %v2822_v22 = vld [vmem:[%s3578_s7 + $0xac] ss:$16 sps:$4 sm:$0xff]   ;;  %v2824_v23 = vld [vmem:[%s3578_s7 + $0xa0] ss:$16 sps:$4 sm:$0xff]   ;;  %v2825_v24 = vld [vmem:[%s3578_s7 + $0xa8] ss:$16 sps:$4 sm:$0xff]  }
  0x7c   : > { %v2826_v25 = vld [vmem:[%s3578_s7 + $0xc4] ss:$16 sps:$4 sm:$0xff]   ;;  %v2828_v26 = vld [vmem:[%s3578_s7 + $0xcc] ss:$16 sps:$4 sm:$0xff]   ;;  %v2830_v27 = vld [vmem:[%s3578_s7 + $0xc0] ss:$16 sps:$4 sm:$0xff]  }
  0x7d   : > { %v2831_v28 = vld [vmem:[%s3578_s7 + $0xc8] ss:$16 sps:$4 sm:$0xff]   ;;  %v2832_v29 = vld [vmem:[%s3578_s7 + $0xe4] ss:$16 sps:$4 sm:$0xff]   ;;  %v2834_v30 = vld [vmem:[%s3578_s7 + $0xec] ss:$16 sps:$4 sm:$0xff]  }
  0x7e   : > { %1873 = vmatpush1.bf16.msra.mxu0 %v2806_v11  ;;  %2037 = vmatpush1.bf16.msra.mxu1 %v2807_v12  ;;  %v2836_v31 = vld [vmem:[%s3578_s7 + $0xe0] ss:$16 sps:$4 sm:$0xff]   ;;  %v2837_v32 = vld [vmem:[%s3578_s7 + $0xe8] ss:$16 sps:$4 sm:$0xff]   ;;  %v2838_v33 = vld [vmem:[%s3578_s7 + $0x104] ss:$16 sps:$4 sm:$0xff]  }
  0x7f   : > { %1874 = vmatprep.subr.bf16.mxu0 %v2808_v13  ;;  %2038 = vmatprep.subr.bf16.mxu1 %v2810_v14  ;;  %v2840_v34 = vld [vmem:[%s3578_s7 + $0x10c] ss:$16 sps:$4 sm:$0xff]   ;;  %v2842_v35 = vld [vmem:[%s3578_s7 + $0x100] ss:$16 sps:$4 sm:$0xff]   ;;  %v2843_v36 = vld [vmem:[%s3578_s7 + $0x108] ss:$16 sps:$4 sm:$0xff]  }
  0x80   : > { %v3338_v37 = vmov 1983009808   ;;  %v2844_v40 = vld [vmem:[%s3578_s7 + $0x124] ss:$16 sps:$4 sm:$0xff]   ;;  %v2846_v41 = vld [vmem:[%s3578_s7 + $0x12c] ss:$16 sps:$4 sm:$0xff]  }
  0x81   : > { %v284_v38 = vunpack.c.l.s4 %v3338_v37  ;;  %v2848_v42 = vld [vmem:[%s3578_s7 + $0x120] ss:$16 sps:$4 sm:$0xff]   ;;  %v3644_v44 = vshrl.u32 %v286_v39, 7  ;;  %v2849_v45 = vld [vmem:[%s3578_s7 + $0x128] ss:$16 sps:$4 sm:$0xff]   ;;  %p2656_p3 = scmp.ne.s32.totalorder %s3314_s18, 15 }
  0x82   : > { %1875 = vmatpush1.bf16.msra.mxu0 %v2812_v15  ;;  %2039 = vmatpush1.bf16.msra.mxu1 %v2813_v16  ;;  %v2850_v46 = vld [vmem:[%s3578_s7 + $0x144] ss:$16 sps:$4 sm:$0xff]   ;;  %v2852_v47 = vld [vmem:[%s3578_s7 + $0x14c] ss:$16 sps:$4 sm:$0xff]   ;;  %v2854_v48 = vld [vmem:[%s3578_s7 + $0x140] ss:$16 sps:$4 sm:$0xff]  }
  0x83   : > { %1876 = vmatprep.subr.bf16.mxu0 %v2814_v17  ;;  %2040 = vmatprep.subr.bf16.mxu1 %v2816_v18  ;;  %v285_v43 = vunpack.c.0.s8 %v284_v38  ;;  %v2855_v49 = vld [vmem:[%s3578_s7 + $0x148] ss:$16 sps:$4 sm:$0xff]   ;;  %v2856_v51 = vld [vmem:[%s3578_s7 + $0x164] ss:$16 sps:$4 sm:$0xff]   ;;  %v2858_v52 = vld [vmem:[%s3578_s7 + $0x16c] ss:$16 sps:$4 sm:$0xff]  }
  0x84   : > { %v278_v53 = vld [vmem:[%s3597_s26] sm:$0xff]  ;;  %v2860_v54 = vld [vmem:[%s3578_s7 + $0x160] ss:$16 sps:$4 sm:$0xff]   ;;  %v2862_v57 = vld [vmem:[%s3578_s7 + $0x184] ss:$16 sps:$4 sm:$0xff]  }
  0x85   : > { %v3652_v50 = vsub.s32 %v285_v43, %v3644_v44  ;;  %v2861_v56 = vld [vmem:[%s3578_s7 + $0x168] ss:$16 sps:$4 sm:$0xff]   ;;  %v2864_v58 = vld [vmem:[%s3578_s7 + $0x18c] ss:$16 sps:$4 sm:$0xff]   ;;  %v2866_v60 = vld [vmem:[%s3578_s7 + $0x180] ss:$16 sps:$4 sm:$0xff]   ;;  %v282_v5 = vcombine.high %v278_v53, %v278_v53 }
  0x86   : > { %1877 = vmatpush1.bf16.msra.mxu0 %v2818_v19  ;;  %2041 = vmatpush1.bf16.msra.mxu1 %v2819_v20  ;;  %v2867_v62 = vld [vmem:[%s3578_s7 + $0x188] ss:$16 sps:$4 sm:$0xff]   ;;  %v2868_v63 = vld [vmem:[%s3578_s7 + $0x1a4] ss:$16 sps:$4 sm:$0xff]   ;;  %v2870_v0 = vld [vmem:[%s3578_s7 + $0x1ac] ss:$16 sps:$4 sm:$0xff]  }
  0x87   : > { %1878 = vmatprep.subr.bf16.mxu0 %v2820_v21  ;;  %2042 = vmatprep.subr.bf16.mxu1 %v2822_v22  ;;  %v289_v55 = vrot.slane %v278_v53, %v3652_v50  ;;  %v2872_v1 = vld [vmem:[%s3578_s7 + $0x1a0] ss:$16 sps:$4 sm:$0xff]   ;;  %v2873_v2 = vld [vmem:[%s3578_s7 + $0x1a8] ss:$16 sps:$4 sm:$0xff]   ;;  %v2874_v3 = vld [vmem:[%s3578_s7 + $0x1c4] ss:$16 sps:$4 sm:$0xff]   ;;  %v3675_v10 = vrot.slane %v282_v5, %v3652_v50 }
  0x88   : > { %v2876_v4 = vld [vmem:[%s3578_s7 + $0x1cc] ss:$16 sps:$4 sm:$0xff]   ;;  %v2878_v6 = vld [vmem:[%s3578_s7 + $0x1c0] ss:$16 sps:$4 sm:$0xff]   ;;  %v2879_v7 = vld [vmem:[%s3578_s7 + $0x1c8] ss:$16 sps:$4 sm:$0xff]  }
  0x89   : > { %v297_v59 = vcombine.high %v289_v55, %v289_v55  ;;  %v2880_v8 = vld [vmem:[%s3578_s7 + $0x1e4] ss:$16 sps:$4 sm:$0xff]   ;;  %v2882_v9 = vld [vmem:[%s3578_s7 + $0x1ec] ss:$16 sps:$4 sm:$0xff]   ;;  %v2884_v11 = vld [vmem:[%s3578_s7 + $0x1e0] ss:$16 sps:$4 sm:$0xff]   ;;  %v298_v15 = vcombine.high %v3675_v10, %v3675_v10  ;;  %v324_v17 = vpack.c.bf16 %v289_v55, %v289_v55 }
  0x8a   : > { %1879 = vmatpush1.bf16.msra.mxu0 %v2824_v23  ;;  %2043 = vmatpush1.bf16.msra.mxu1 %v2825_v24  ;;  %v2885_v12 = vld [vmem:[%s3578_s7 + $0x1e8] ss:$16 sps:$4 sm:$0xff]   ;;  %v2889_v13 = vld [vmem:[%s3578_s7 + $0x204] ss:$16 sps:$4 sm:$0xff]   ;;  %v2892_v14 = vld [vmem:[%s3578_s7 + $0x20c] ss:$16 sps:$4 sm:$0xff]  }
  0x8b   : > { %1880 = vmatprep.subr.bf16.mxu0 %v2826_v25  ;;  %2044 = vmatprep.subr.bf16.mxu1 %v2828_v26  ;;  %v325_v61 = vpack.c.bf16 %v297_v59, %v297_v59  ;;  %v2887_v16 = vld [vmem:[%s3578_s7 + $0x200] ss:$16 sps:$4 sm:$0xff]   ;;  %v2890_v18 = vld [vmem:[%s3578_s7 + $0x208] ss:$16 sps:$4 sm:$0xff]   ;;  %v2895_v19 = vld [vmem:[%s3578_s7 + $0x224] ss:$16 sps:$4 sm:$0xff]   ;;  %v327_v21 = vpack.c.bf16 %v298_v15, %v298_v15 }
  0x8c   : > { %v2898_v20 = vld [vmem:[%s3578_s7 + $0x22c] ss:$16 sps:$4 sm:$0xff]   ;;  %v2893_v22 = vld [vmem:[%s3578_s7 + $0x220] ss:$16 sps:$4 sm:$0xff]   ;;  %v2896_v23 = vld [vmem:[%s3578_s7 + $0x228] ss:$16 sps:$4 sm:$0xff]  }
  0x8d   : > { %1900 = vmatprep.mubr.bf16.mxu0 %v325_v61  ;;  %2064 = vmatprep.mubr.bf16.mxu1 %v325_v61  ;;  %v2901_v24 = vld [vmem:[%s3578_s7 + $0x244] ss:$16 sps:$4 sm:$0xff]   ;;  %v2904_v25 = vld [vmem:[%s3578_s7 + $0x24c] ss:$16 sps:$4 sm:$0xff]   ;;  %v2899_v26 = vld [vmem:[%s3578_s7 + $0x240] ss:$16 sps:$4 sm:$0xff]  }
  0x8e   : > { %1881 = vmatpush1.bf16.msra.mxu0 %v2830_v27  ;;  %2045 = vmatpush1.bf16.msra.mxu1 %v2831_v28  ;;  %v2902_v27 = vld [vmem:[%s3578_s7 + $0x248] ss:$16 sps:$4 sm:$0xff]   ;;  %v2907_v28 = vld [vmem:[%s3578_s7 + $0x264] ss:$16 sps:$4 sm:$0xff]   ;;  %v2922_v37 = vld [vmem:[%s3578_s7 + $0x2ac] ss:$16 sps:$4 sm:$0xff]  }
  0x8f   : > { %1882 = vmatprep.subr.bf16.mxu0 %v2832_v29  ;;  %2046 = vmatprep.subr.bf16.mxu1 %v2834_v30  ;;  %v2910_v29 = vld [vmem:[%s3578_s7 + $0x26c] ss:$16 sps:$4 sm:$0xff]   ;;  %v2905_v30 = vld [vmem:[%s3578_s7 + $0x260] ss:$16 sps:$4 sm:$0xff]   ;;  %v2920_v39 = vld [vmem:[%s3578_s7 + $0x2a8] ss:$16 sps:$4 sm:$0xff]  }
  0x90   : > { %v2917_v38 = vld [vmem:[%s3578_s7 + $0x2a0] ss:$16 sps:$4 sm:$0xff]   ;;  %v2926_v43 = vld [vmem:[%s3578_s7 + $0x2c8] ss:$16 sps:$4 sm:$0xff]   ;;  %v2946_v55 = vld [vmem:[%s3578_s7 + $0x32c] ss:$16 sps:$4 sm:$0xff]  }
  0x91   : > { %v2938_v53 = vld [vmem:[%s3578_s7 + $0x308] ss:$16 sps:$4 sm:$0xff]   ;;  %v2952_v59 = vld [vmem:[%s3578_s7 + $0x34c] ss:$16 sps:$4 sm:$0xff]   ;;  %v2979_v15 = vld [vmem:[%s3578_s7 + $0x3e4] ss:$16 sps:$4 sm:$0xff]  }
  0x92   : > { %1883 = vmatpush1.bf16.msra.mxu0 %v2836_v31  ;;  %2047 = vmatpush1.bf16.msra.mxu1 %v2837_v32  ;;  %v2908_v31 = vld [vmem:[%s3578_s7 + $0x268] ss:$16 sps:$4 sm:$0xff]   ;;  %v2913_v32 = vld [vmem:[%s3578_s7 + $0x284] ss:$16 sps:$4 sm:$0xff]  }
  0x93   : > { %1884 = vmatprep.subr.bf16.mxu0 %v2838_v33  ;;  %2048 = vmatprep.subr.bf16.mxu1 %v2840_v34  ;;  %v2916_v33 = vld [vmem:[%s3578_s7 + $0x28c] ss:$16 sps:$4 sm:$0xff]   ;;  %v2911_v34 = vld [vmem:[%s3578_s7 + $0x280] ss:$16 sps:$4 sm:$0xff]   ;;  %v2950_v61 = vld [vmem:[%s3578_s7 + $0x348] ss:$16 sps:$4 sm:$0xff]  }
  0x94   : > { %v2962_v5 = vld [vmem:[%s3578_s7 + $0x388] ss:$16 sps:$4 sm:$0xff]  }
  0x96   : > { %1885 = vmatpush1.bf16.msra.mxu0 %v2842_v35  ;;  %2049 = vmatpush1.bf16.msra.mxu1 %v2843_v36  ;;  %v2914_v35 = vld [vmem:[%s3578_s7 + $0x288] ss:$16 sps:$4 sm:$0xff]   ;;  %v2919_v36 = vld [vmem:[%s3578_s7 + $0x2a4] ss:$16 sps:$4 sm:$0xff]  }
  0x97   : > { %1886 = vmatprep.subr.bf16.mxu0 %v2844_v40  ;;  %2050 = vmatprep.subr.bf16.mxu1 %v2846_v41  ;;  %v2925_v40 = vld [vmem:[%s3578_s7 + $0x2c4] ss:$16 sps:$4 sm:$0xff]   ;;  %v2928_v41 = vld [vmem:[%s3578_s7 + $0x2cc] ss:$16 sps:$4 sm:$0xff]  }
  0x9a   : > { %1887 = vmatpush1.bf16.msra.mxu0 %v2848_v42  ;;  %2051 = vmatpush1.bf16.msra.mxu1 %v2849_v45  ;;  %v2923_v42 = vld [vmem:[%s3578_s7 + $0x2c0] ss:$16 sps:$4 sm:$0xff]   ;;  %v2931_v45 = vld [vmem:[%s3578_s7 + $0x2e4] ss:$16 sps:$4 sm:$0xff]  }
  0x9b   : > { %1888 = vmatprep.subr.bf16.mxu0 %v2850_v46  ;;  %2052 = vmatprep.subr.bf16.mxu1 %v2852_v47  ;;  %v2934_v46 = vld [vmem:[%s3578_s7 + $0x2ec] ss:$16 sps:$4 sm:$0xff]   ;;  %v2929_v47 = vld [vmem:[%s3578_s7 + $0x2e0] ss:$16 sps:$4 sm:$0xff]  }
  0x9e   : > { %1889 = vmatpush1.bf16.msra.mxu0 %v2854_v48  ;;  %2053 = vmatpush1.bf16.msra.mxu1 %v2855_v49  ;;  %v2932_v48 = vld [vmem:[%s3578_s7 + $0x2e8] ss:$16 sps:$4 sm:$0xff]   ;;  %v2937_v49 = vld [vmem:[%s3578_s7 + $0x304] ss:$16 sps:$4 sm:$0xff]  }
  0x9f   : > { %1890 = vmatprep.subr.bf16.mxu0 %v2856_v51  ;;  %2054 = vmatprep.subr.bf16.mxu1 %v2858_v52  ;;  %v2940_v51 = vld [vmem:[%s3578_s7 + $0x30c] ss:$16 sps:$4 sm:$0xff]   ;;  %v2935_v52 = vld [vmem:[%s3578_s7 + $0x300] ss:$16 sps:$4 sm:$0xff]  }
  0xa2   : > { %1891 = vmatpush1.bf16.msra.mxu0 %v2860_v54  ;;  %2055 = vmatpush1.bf16.msra.mxu1 %v2861_v56  ;;  %v2943_v54 = vld [vmem:[%s3578_s7 + $0x324] ss:$16 sps:$4 sm:$0xff]   ;;  %v2941_v56 = vld [vmem:[%s3578_s7 + $0x320] ss:$16 sps:$4 sm:$0xff]  }
  0xa3   : > { %1892 = vmatprep.subr.bf16.mxu0 %v2862_v57  ;;  %2056 = vmatprep.subr.bf16.mxu1 %v2864_v58  ;;  %v2944_v57 = vld [vmem:[%s3578_s7 + $0x328] ss:$16 sps:$4 sm:$0xff]   ;;  %v2949_v58 = vld [vmem:[%s3578_s7 + $0x344] ss:$16 sps:$4 sm:$0xff]  }
  0xa6   : > { %1893 = vmatpush1.bf16.msra.mxu0 %v2866_v60  ;;  %2057 = vmatpush1.bf16.msra.mxu1 %v2867_v62  ;;  %v2947_v60 = vld [vmem:[%s3578_s7 + $0x340] ss:$16 sps:$4 sm:$0xff]   ;;  %v2955_v62 = vld [vmem:[%s3578_s7 + $0x364] ss:$16 sps:$4 sm:$0xff]  }
  0xa7   : > { %1894 = vmatprep.subr.bf16.mxu0 %v2868_v63  ;;  %2058 = vmatprep.subr.bf16.mxu1 %v2870_v0  ;;  %v2958_v63 = vld [vmem:[%s3578_s7 + $0x36c] ss:$16 sps:$4 sm:$0xff]   ;;  %v2953_v0 = vld [vmem:[%s3578_s7 + $0x360] ss:$16 sps:$4 sm:$0xff]  }
  0xaa   : > { %1895 = vmatpush1.bf16.msra.mxu0 %v2872_v1  ;;  %2059 = vmatpush1.bf16.msra.mxu1 %v2873_v2  ;;  %v2956_v1 = vld [vmem:[%s3578_s7 + $0x368] ss:$16 sps:$4 sm:$0xff]   ;;  %v2961_v2 = vld [vmem:[%s3578_s7 + $0x384] ss:$16 sps:$4 sm:$0xff]  }
  0xab   : > { %1896 = vmatprep.subr.bf16.mxu0 %v2874_v3  ;;  %2060 = vmatprep.subr.bf16.mxu1 %v2876_v4  ;;  %v2964_v3 = vld [vmem:[%s3578_s7 + $0x38c] ss:$16 sps:$4 sm:$0xff]   ;;  %v2959_v4 = vld [vmem:[%s3578_s7 + $0x380] ss:$16 sps:$4 sm:$0xff]  }
  0xae   : > { %1897 = vmatpush1.bf16.msra.mxu0 %v2878_v6  ;;  %2061 = vmatpush1.bf16.msra.mxu1 %v2879_v7  ;;  %v2967_v6 = vld [vmem:[%s3578_s7 + $0x3a4] ss:$16 sps:$4 sm:$0xff]   ;;  %v2970_v7 = vld [vmem:[%s3578_s7 + $0x3ac] ss:$16 sps:$4 sm:$0xff]  }
  0xaf   : > { %1898 = vmatprep.subr.bf16.mxu0 %v2880_v8  ;;  %2062 = vmatprep.subr.bf16.mxu1 %v2882_v9  ;;  %v2965_v8 = vld [vmem:[%s3578_s7 + $0x3a0] ss:$16 sps:$4 sm:$0xff]   ;;  %v2968_v9 = vld [vmem:[%s3578_s7 + $0x3a8] ss:$16 sps:$4 sm:$0xff]  }
  0xb2   : > { %1899 = vmatpush1.bf16.msra.mxu0 %v2884_v11  ;;  %2063 = vmatpush1.bf16.msra.mxu1 %v2885_v12  ;;  %v2973_v11 = vld [vmem:[%s3578_s7 + $0x3c4] ss:$16 sps:$4 sm:$0xff]   ;;  %v2976_v12 = vld [vmem:[%s3578_s7 + $0x3cc] ss:$16 sps:$4 sm:$0xff]  }
  0xb3   : > { %1909 = vmatprep.subr.bf16.mxu0 %v2889_v13  ;;  %2073 = vmatprep.subr.bf16.mxu1 %v2892_v14  ;;  %v2971_v13 = vld [vmem:[%s3578_s7 + $0x3c0] ss:$16 sps:$4 sm:$0xff]   ;;  %v2974_v14 = vld [vmem:[%s3578_s7 + $0x3c8] ss:$16 sps:$4 sm:$0xff]  }
  0xb5   : > { %1901 = vmatmul.mubr.bf16.vlgmr.msra.gmra.mrb[0].mxu0 %v324_v17  ;;  %2065 = vmatmul.mubr.bf16.vlgmr.msra.gmra.mrb[0].mxu1 %v324_v17  ;;  %v2977_v17 = vld [vmem:[%s3578_s7 + $0x3e0] ss:$16 sps:$4 sm:$0xff]  }
  0xb6   : > { %1910 = vmatpush1.bf16.msra.mxu0 %v2887_v16  ;;  %2074 = vmatpush1.bf16.msra.mxu1 %v2890_v18  ;;  %v2982_v16 = vld [vmem:[%s3578_s7 + $0x3ec] ss:$16 sps:$4 sm:$0xff]   ;;  %v2980_v18 = vld [vmem:[%s3578_s7 + $0x3e8] ss:$16 sps:$4 sm:$0xff]  }
  0xb7   : > { %1911 = vmatprep.subr.bf16.mxu0 %v2895_v19  ;;  %2075 = vmatprep.subr.bf16.mxu1 %v2898_v20  ;;  %v2985_v19 = vld [vmem:[%s3578_s7 + $0x404] ss:$16 sps:$4 sm:$0xff]   ;;  %v2988_v20 = vld [vmem:[%s3578_s7 + $0x40c] ss:$16 sps:$4 sm:$0xff]  }
  0xb8   : > { %1941 = vmatprep.mubr.bf16.mxu0 %v327_v21  ;;  %2105 = vmatprep.mubr.bf16.mxu1 %v327_v21  ;;  %v2983_v21 = vld [vmem:[%s3578_s7 + $0x400] ss:$16 sps:$4 sm:$0xff]  }
  0xba   : > { %1912 = vmatpush1.bf16.msra.mxu0 %v2893_v22  ;;  %2076 = vmatpush1.bf16.msra.mxu1 %v2896_v23  ;;  %v326_v22 = vpack.c.bf16 %v3675_v10, %v3675_v10  ;;  %v2986_v23 = vld [vmem:[%s3578_s7 + $0x408] ss:$16 sps:$4 sm:$0xff]  }
  0xbb   : > { %1913 = vmatprep.subr.bf16.mxu0 %v2901_v24  ;;  %2077 = vmatprep.subr.bf16.mxu1 %v2904_v25  ;;  %v3752_v24 = vld [vmem:[%s3597_s26 + $0x8] sm:$0xff] }
  0xbc   : > { %v2991_v25 = vld [vmem:[%s3578_s7 + $0x424] ss:$16 sps:$4 sm:$0xff]  }
  0xbe   : > { %1914 = vmatpush1.bf16.msra.mxu0 %v2899_v26  ;;  %2078 = vmatpush1.bf16.msra.mxu1 %v2902_v27  ;;  %v2994_v26 = vld [vmem:[%s3578_s7 + $0x42c] ss:$16 sps:$4 sm:$0xff]   ;;  %v3758_v27 = vrot.slane %v3752_v24, %v3652_v50 }
  0xbf   : > { %1915 = vmatprep.subr.bf16.mxu0 %v2907_v28  ;;  %2079 = vmatprep.subr.bf16.mxu1 %v2910_v29  ;;  %v2989_v28 = vld [vmem:[%s3578_s7 + $0x420] ss:$16 sps:$4 sm:$0xff]   ;;  %v2992_v29 = vld [vmem:[%s3578_s7 + $0x428] ss:$16 sps:$4 sm:$0xff]  }
  0xc0   : > { %v314_v10 = vcombine.high %v3758_v27, %v3758_v27 }
  0xc2   : > { %1916 = vmatpush1.bf16.msra.mxu0 %v2905_v30  ;;  %2080 = vmatpush1.bf16.msra.mxu1 %v2908_v31  ;;  %v2997_v30 = vld [vmem:[%s3578_s7 + $0x444] ss:$16 sps:$4 sm:$0xff]   ;;  %v3000_v31 = vld [vmem:[%s3578_s7 + $0x44c] ss:$16 sps:$4 sm:$0xff]  }
  0xc3   : > { %1917 = vmatprep.subr.bf16.mxu0 %v2913_v32  ;;  %2081 = vmatprep.subr.bf16.mxu1 %v2916_v33  ;;  %v329_v32 = vpack.c.bf16 %v314_v10, %v314_v10  ;;  %v2995_v33 = vld [vmem:[%s3578_s7 + $0x440] ss:$16 sps:$4 sm:$0xff]   ;;  %v3076_v10 = vld [vmem:[%s3578_s7 + $0x5e8] ss:$16 sps:$4 sm:$0xff]  }
  0xc6   : > { %1918 = vmatpush1.bf16.msra.mxu0 %v2911_v34  ;;  %2082 = vmatpush1.bf16.msra.mxu1 %v2914_v35  ;;  %v2998_v34 = vld [vmem:[%s3578_s7 + $0x448] ss:$16 sps:$4 sm:$0xff]   ;;  %v3003_v35 = vld [vmem:[%s3578_s7 + $0x464] ss:$16 sps:$4 sm:$0xff]  }
  0xc7   : > { %1919 = vmatprep.subr.bf16.mxu0 %v2919_v36  ;;  %2083 = vmatprep.subr.bf16.mxu1 %v2922_v37  ;;  %v3006_v36 = vld [vmem:[%s3578_s7 + $0x46c] ss:$16 sps:$4 sm:$0xff]   ;;  %v3001_v37 = vld [vmem:[%s3578_s7 + $0x460] ss:$16 sps:$4 sm:$0xff]  }
  0xca   : > { %1920 = vmatpush1.bf16.msra.mxu0 %v2917_v38  ;;  %2084 = vmatpush1.bf16.msra.mxu1 %v2920_v39  ;;  %v3004_v38 = vld [vmem:[%s3578_s7 + $0x468] ss:$16 sps:$4 sm:$0xff]   ;;  %v3009_v39 = vld [vmem:[%s3578_s7 + $0x484] ss:$16 sps:$4 sm:$0xff]  }
  0xcb   : > { %1921 = vmatprep.subr.bf16.mxu0 %v2925_v40  ;;  %2085 = vmatprep.subr.bf16.mxu1 %v2928_v41  ;;  %v3012_v40 = vld [vmem:[%s3578_s7 + $0x48c] ss:$16 sps:$4 sm:$0xff]   ;;  %v3007_v41 = vld [vmem:[%s3578_s7 + $0x480] ss:$16 sps:$4 sm:$0xff]  }
  0xce   : > { %1922 = vmatpush1.bf16.msra.mxu0 %v2923_v42  ;;  %2086 = vmatpush1.bf16.msra.mxu1 %v2926_v43  ;;  %v3010_v42 = vld [vmem:[%s3578_s7 + $0x488] ss:$16 sps:$4 sm:$0xff]   ;;  %v3015_v43 = vld [vmem:[%s3578_s7 + $0x4a4] ss:$16 sps:$4 sm:$0xff]  }
  0xcf   : > { %1923 = vmatprep.subr.bf16.mxu0 %v2931_v45  ;;  %2087 = vmatprep.subr.bf16.mxu1 %v2934_v46  ;;  %v3018_v45 = vld [vmem:[%s3578_s7 + $0x4ac] ss:$16 sps:$4 sm:$0xff]   ;;  %v3013_v46 = vld [vmem:[%s3578_s7 + $0x4a0] ss:$16 sps:$4 sm:$0xff]  }
  0xd2   : > { %1924 = vmatpush1.bf16.msra.mxu0 %v2929_v47  ;;  %2088 = vmatpush1.bf16.msra.mxu1 %v2932_v48  ;;  %v3016_v47 = vld [vmem:[%s3578_s7 + $0x4a8] ss:$16 sps:$4 sm:$0xff]   ;;  %v3021_v48 = vld [vmem:[%s3578_s7 + $0x4c4] ss:$16 sps:$4 sm:$0xff]  }
  0xd3   : > { %1925 = vmatprep.subr.bf16.mxu0 %v2937_v49  ;;  %2089 = vmatprep.subr.bf16.mxu1 %v2940_v51  ;;  %v3024_v49 = vld [vmem:[%s3578_s7 + $0x4cc] ss:$16 sps:$4 sm:$0xff]   ;;  %v3019_v51 = vld [vmem:[%s3578_s7 + $0x4c0] ss:$16 sps:$4 sm:$0xff]  }
  0xd6   : > { %1926 = vmatpush1.bf16.msra.mxu0 %v2935_v52  ;;  %2090 = vmatpush1.bf16.msra.mxu1 %v2938_v53  ;;  %v3022_v52 = vld [vmem:[%s3578_s7 + $0x4c8] ss:$16 sps:$4 sm:$0xff]   ;;  %v3027_v53 = vld [vmem:[%s3578_s7 + $0x4e4] ss:$16 sps:$4 sm:$0xff]  }
  0xd7   : > { %1927 = vmatprep.subr.bf16.mxu0 %v2943_v54  ;;  %2091 = vmatprep.subr.bf16.mxu1 %v2946_v55  ;;  %v3030_v54 = vld [vmem:[%s3578_s7 + $0x4ec] ss:$16 sps:$4 sm:$0xff]   ;;  %v3025_v55 = vld [vmem:[%s3578_s7 + $0x4e0] ss:$16 sps:$4 sm:$0xff]  }
  0xda   : > { %1928 = vmatpush1.bf16.msra.mxu0 %v2941_v56  ;;  %2092 = vmatpush1.bf16.msra.mxu1 %v2944_v57  ;;  %v3028_v56 = vld [vmem:[%s3578_s7 + $0x4e8] ss:$16 sps:$4 sm:$0xff]   ;;  %v3033_v57 = vld [vmem:[%s3578_s7 + $0x504] ss:$16 sps:$4 sm:$0xff]  }
  0xdb   : > { %1929 = vmatprep.subr.bf16.mxu0 %v2949_v58  ;;  %2093 = vmatprep.subr.bf16.mxu1 %v2952_v59  ;;  %v3036_v58 = vld [vmem:[%s3578_s7 + $0x50c] ss:$16 sps:$4 sm:$0xff]   ;;  %v3031_v59 = vld [vmem:[%s3578_s7 + $0x500] ss:$16 sps:$4 sm:$0xff]  }
  0xde   : > { %1930 = vmatpush1.bf16.msra.mxu0 %v2947_v60  ;;  %2094 = vmatpush1.bf16.msra.mxu1 %v2950_v61  ;;  %v3034_v60 = vld [vmem:[%s3578_s7 + $0x508] ss:$16 sps:$4 sm:$0xff]   ;;  %v3039_v61 = vld [vmem:[%s3578_s7 + $0x524] ss:$16 sps:$4 sm:$0xff]  }
  0xdf   : > { %1931 = vmatprep.subr.bf16.mxu0 %v2955_v62  ;;  %2095 = vmatprep.subr.bf16.mxu1 %v2958_v63  ;;  %v3042_v62 = vld [vmem:[%s3578_s7 + $0x52c] ss:$16 sps:$4 sm:$0xff]   ;;  %v3037_v63 = vld [vmem:[%s3578_s7 + $0x520] ss:$16 sps:$4 sm:$0xff]  }
  0xe2   : > { %1932 = vmatpush1.bf16.msra.mxu0 %v2953_v0  ;;  %2096 = vmatpush1.bf16.msra.mxu1 %v2956_v1  ;;  %v3040_v0 = vld [vmem:[%s3578_s7 + $0x528] ss:$16 sps:$4 sm:$0xff]   ;;  %v3045_v1 = vld [vmem:[%s3578_s7 + $0x544] ss:$16 sps:$4 sm:$0xff]  }
  0xe3   : > { %1933 = vmatprep.subr.bf16.mxu0 %v2961_v2  ;;  %2097 = vmatprep.subr.bf16.mxu1 %v2964_v3  ;;  %v3048_v2 = vld [vmem:[%s3578_s7 + $0x54c] ss:$16 sps:$4 sm:$0xff]   ;;  %v3043_v3 = vld [vmem:[%s3578_s7 + $0x540] ss:$16 sps:$4 sm:$0xff]  }
  0xe6   : > { %1934 = vmatpush1.bf16.msra.mxu0 %v2959_v4  ;;  %2098 = vmatpush1.bf16.msra.mxu1 %v2962_v5  ;;  %v3046_v4 = vld [vmem:[%s3578_s7 + $0x548] ss:$16 sps:$4 sm:$0xff]   ;;  %v3051_v5 = vld [vmem:[%s3578_s7 + $0x564] ss:$16 sps:$4 sm:$0xff]  }
  0xe7   : > { %1935 = vmatprep.subr.bf16.mxu0 %v2967_v6  ;;  %2099 = vmatprep.subr.bf16.mxu1 %v2970_v7  ;;  %v3054_v6 = vld [vmem:[%s3578_s7 + $0x56c] ss:$16 sps:$4 sm:$0xff]   ;;  %v3049_v7 = vld [vmem:[%s3578_s7 + $0x560] ss:$16 sps:$4 sm:$0xff]  }
  0xea   : > { %1936 = vmatpush1.bf16.msra.mxu0 %v2965_v8  ;;  %2100 = vmatpush1.bf16.msra.mxu1 %v2968_v9  ;;  %v3052_v8 = vld [vmem:[%s3578_s7 + $0x568] ss:$16 sps:$4 sm:$0xff]   ;;  %v3057_v9 = vld [vmem:[%s3578_s7 + $0x584] ss:$16 sps:$4 sm:$0xff]  }
  0xeb   : > { %1937 = vmatprep.subr.bf16.mxu0 %v2973_v11  ;;  %2101 = vmatprep.subr.bf16.mxu1 %v2976_v12  ;;  %v3060_v11 = vld [vmem:[%s3578_s7 + $0x58c] ss:$16 sps:$4 sm:$0xff]   ;;  %v3055_v12 = vld [vmem:[%s3578_s7 + $0x580] ss:$16 sps:$4 sm:$0xff]  }
  0xee   : > { %1938 = vmatpush1.bf16.msra.mxu0 %v2971_v13  ;;  %2102 = vmatpush1.bf16.msra.mxu1 %v2974_v14  ;;  %v3058_v13 = vld [vmem:[%s3578_s7 + $0x588] ss:$16 sps:$4 sm:$0xff]   ;;  %v3063_v14 = vld [vmem:[%s3578_s7 + $0x5a4] ss:$16 sps:$4 sm:$0xff]  }
  0xef   : > { %1939 = vmatprep.subr.bf16.mxu0 %v2979_v15  ;;  %2103 = vmatprep.subr.bf16.mxu1 %v2982_v16  ;;  %v3066_v15 = vld [vmem:[%s3578_s7 + $0x5ac] ss:$16 sps:$4 sm:$0xff]   ;;  %v3061_v16 = vld [vmem:[%s3578_s7 + $0x5a0] ss:$16 sps:$4 sm:$0xff]  }
  0xf2   : > { %1940 = vmatpush1.bf16.msra.mxu0 %v2977_v17  ;;  %2104 = vmatpush1.bf16.msra.mxu1 %v2980_v18  ;;  %v3064_v17 = vld [vmem:[%s3578_s7 + $0x5a8] ss:$16 sps:$4 sm:$0xff]   ;;  %v3069_v18 = vld [vmem:[%s3578_s7 + $0x5c4] ss:$16 sps:$4 sm:$0xff]  }
  0xf3   : > { %1950 = vmatprep.subr.bf16.mxu0 %v2985_v19  ;;  %2114 = vmatprep.subr.bf16.mxu1 %v2988_v20  ;;  %v3072_v19 = vld [vmem:[%s3578_s7 + $0x5cc] ss:$16 sps:$4 sm:$0xff]   ;;  %v299_v20 = vcombine.high %v3752_v24, %v3752_v24  ;;  %v3073_v24 = vld [vmem:[%s3578_s7 + $0x5e0] ss:$16 sps:$4 sm:$0xff]  }
  0xf5   : > { %1942 = vmatmul.mubr.bf16.vlgmr.msra.gmra.mrb[0].mxu0 %v326_v22  ;;  %2106 = vmatmul.mubr.bf16.vlgmr.msra.gmra.mrb[0].mxu1 %v326_v22  ;;  %v3070_v22 = vld [vmem:[%s3578_s7 + $0x5c8] ss:$16 sps:$4 sm:$0xff]  }
  0xf6   : > { %1951 = vmatpush1.bf16.msra.mxu0 %v2983_v21  ;;  %2115 = vmatpush1.bf16.msra.mxu1 %v2986_v23  ;;  %v3067_v21 = vld [vmem:[%s3578_s7 + $0x5c0] ss:$16 sps:$4 sm:$0xff]   ;;  %v3075_v23 = vld [vmem:[%s3578_s7 + $0x5e4] ss:$16 sps:$4 sm:$0xff]  }
  0xf7   : > { %1952 = vmatprep.subr.bf16.mxu0 %v2991_v25  ;;  %2116 = vmatprep.subr.bf16.mxu1 %v2994_v26  ;;  %v3078_v25 = vld [vmem:[%s3578_s7 + $0x5ec] ss:$16 sps:$4 sm:$0xff]   ;;  %v3821_v26 = vrot.slane %v299_v20, %v3652_v50  ;;  %v3154_v20 = vld [vmem:[%s3578_s7 + $0x788] ss:$16 sps:$4 sm:$0xff]  }
  0xf8   : > { %1982 = vmatprep.mubr.bf16.mxu0 %v329_v32  ;;  %2146 = vmatprep.mubr.bf16.mxu1 %v329_v32  ;;  %v3079_v32 = vld [vmem:[%s3578_s7 + $0x600] ss:$16 sps:$4 sm:$0xff]  }
  0xfa   : > { %1953 = vmatpush1.bf16.msra.mxu0 %v2989_v28  ;;  %2117 = vmatpush1.bf16.msra.mxu1 %v2992_v29  ;;  %v3081_v28 = vld [vmem:[%s3578_s7 + $0x604] ss:$16 sps:$4 sm:$0xff]   ;;  %v3084_v29 = vld [vmem:[%s3578_s7 + $0x60c] ss:$16 sps:$4 sm:$0xff]  }
  0xfb   : > { %1954 = vmatprep.subr.bf16.mxu0 %v2997_v30  ;;  %2118 = vmatprep.subr.bf16.mxu1 %v3000_v31  ;;  %v315_v30 = vcombine.high %v3821_v26, %v3821_v26  ;;  %v328_v31 = vpack.c.bf16 %v3758_v27, %v3758_v27  ;;  %v3085_v27 = vld [vmem:[%s3578_s7 + $0x620] ss:$16 sps:$4 sm:$0xff]  }
  0xfe   : > { %1955 = vmatpush1.bf16.msra.mxu0 %v2995_v33  ;;  %2119 = vmatpush1.bf16.msra.mxu1 %v2998_v34  ;;  %v3082_v33 = vld [vmem:[%s3578_s7 + $0x608] ss:$16 sps:$4 sm:$0xff]   ;;  %v3087_v34 = vld [vmem:[%s3578_s7 + $0x624] ss:$16 sps:$4 sm:$0xff]  }
  0xff   : > { %1956 = vmatprep.subr.bf16.mxu0 %v3003_v35  ;;  %2120 = vmatprep.subr.bf16.mxu1 %v3006_v36  ;;  %v3090_v35 = vld [vmem:[%s3578_s7 + $0x62c] ss:$16 sps:$4 sm:$0xff]   ;;  %v331_v36 = vpack.c.bf16 %v315_v30, %v315_v30  ;;  %v3171_v30 = vld [vmem:[%s3578_s7 + $0x7e4] ss:$16 sps:$4 sm:$0xff]  }
 0x102   : > { %1957 = vmatpush1.bf16.msra.mxu0 %v3001_v37  ;;  %2121 = vmatpush1.bf16.msra.mxu1 %v3004_v38  ;;  %v3088_v37 = vld [vmem:[%s3578_s7 + $0x628] ss:$16 sps:$4 sm:$0xff]   ;;  %v3093_v38 = vld [vmem:[%s3578_s7 + $0x644] ss:$16 sps:$4 sm:$0xff]  }
 0x103   : > { %1958 = vmatprep.subr.bf16.mxu0 %v3009_v39  ;;  %2122 = vmatprep.subr.bf16.mxu1 %v3012_v40  ;;  %v3096_v39 = vld [vmem:[%s3578_s7 + $0x64c] ss:$16 sps:$4 sm:$0xff]   ;;  %v3091_v40 = vld [vmem:[%s3578_s7 + $0x640] ss:$16 sps:$4 sm:$0xff]  }
 0x106   : > { %1959 = vmatpush1.bf16.msra.mxu0 %v3007_v41  ;;  %2123 = vmatpush1.bf16.msra.mxu1 %v3010_v42  ;;  %v3094_v41 = vld [vmem:[%s3578_s7 + $0x648] ss:$16 sps:$4 sm:$0xff]   ;;  %v3099_v42 = vld [vmem:[%s3578_s7 + $0x664] ss:$16 sps:$4 sm:$0xff]  }
 0x107   : > { %1960 = vmatprep.subr.bf16.mxu0 %v3015_v43  ;;  %2124 = vmatprep.subr.bf16.mxu1 %v3018_v45  ;;  %v3102_v43 = vld [vmem:[%s3578_s7 + $0x66c] ss:$16 sps:$4 sm:$0xff]   ;;  %v3097_v45 = vld [vmem:[%s3578_s7 + $0x660] ss:$16 sps:$4 sm:$0xff]  }
 0x10a   : > { %1961 = vmatpush1.bf16.msra.mxu0 %v3013_v46  ;;  %2125 = vmatpush1.bf16.msra.mxu1 %v3016_v47  ;;  %v3100_v46 = vld [vmem:[%s3578_s7 + $0x668] ss:$16 sps:$4 sm:$0xff]   ;;  %v3105_v47 = vld [vmem:[%s3578_s7 + $0x684] ss:$16 sps:$4 sm:$0xff]  }
 0x10b   : > { %1962 = vmatprep.subr.bf16.mxu0 %v3021_v48  ;;  %2126 = vmatprep.subr.bf16.mxu1 %v3024_v49  ;;  %v3108_v48 = vld [vmem:[%s3578_s7 + $0x68c] ss:$16 sps:$4 sm:$0xff]   ;;  %v3103_v49 = vld [vmem:[%s3578_s7 + $0x680] ss:$16 sps:$4 sm:$0xff]  }
 0x10e   : > { %1963 = vmatpush1.bf16.msra.mxu0 %v3019_v51  ;;  %2127 = vmatpush1.bf16.msra.mxu1 %v3022_v52  ;;  %v3106_v51 = vld [vmem:[%s3578_s7 + $0x688] ss:$16 sps:$4 sm:$0xff]   ;;  %v3111_v52 = vld [vmem:[%s3578_s7 + $0x6a4] ss:$16 sps:$4 sm:$0xff]  }
 0x10f   : > { %1964 = vmatprep.subr.bf16.mxu0 %v3027_v53  ;;  %2128 = vmatprep.subr.bf16.mxu1 %v3030_v54  ;;  %v3114_v53 = vld [vmem:[%s3578_s7 + $0x6ac] ss:$16 sps:$4 sm:$0xff]   ;;  %v3109_v54 = vld [vmem:[%s3578_s7 + $0x6a0] ss:$16 sps:$4 sm:$0xff]  }
 0x112   : > { %1965 = vmatpush1.bf16.msra.mxu0 %v3025_v55  ;;  %2129 = vmatpush1.bf16.msra.mxu1 %v3028_v56  ;;  %v3112_v55 = vld [vmem:[%s3578_s7 + $0x6a8] ss:$16 sps:$4 sm:$0xff]   ;;  %v3117_v56 = vld [vmem:[%s3578_s7 + $0x6c4] ss:$16 sps:$4 sm:$0xff]  }
 0x113   : > { %1966 = vmatprep.subr.bf16.mxu0 %v3033_v57  ;;  %2130 = vmatprep.subr.bf16.mxu1 %v3036_v58  ;;  %v3120_v57 = vld [vmem:[%s3578_s7 + $0x6cc] ss:$16 sps:$4 sm:$0xff]   ;;  %v3115_v58 = vld [vmem:[%s3578_s7 + $0x6c0] ss:$16 sps:$4 sm:$0xff]  }
 0x116   : > { %1967 = vmatpush1.bf16.msra.mxu0 %v3031_v59  ;;  %2131 = vmatpush1.bf16.msra.mxu1 %v3034_v60  ;;  %v3118_v59 = vld [vmem:[%s3578_s7 + $0x6c8] ss:$16 sps:$4 sm:$0xff]   ;;  %v3123_v60 = vld [vmem:[%s3578_s7 + $0x6e4] ss:$16 sps:$4 sm:$0xff]  }
 0x117   : > { %1968 = vmatprep.subr.bf16.mxu0 %v3039_v61  ;;  %2132 = vmatprep.subr.bf16.mxu1 %v3042_v62  ;;  %v3126_v61 = vld [vmem:[%s3578_s7 + $0x6ec] ss:$16 sps:$4 sm:$0xff]   ;;  %v3121_v62 = vld [vmem:[%s3578_s7 + $0x6e0] ss:$16 sps:$4 sm:$0xff]  }
 0x11a   : > { %1969 = vmatpush1.bf16.msra.mxu0 %v3037_v63  ;;  %2133 = vmatpush1.bf16.msra.mxu1 %v3040_v0  ;;  %v3124_v63 = vld [vmem:[%s3578_s7 + $0x6e8] ss:$16 sps:$4 sm:$0xff]   ;;  %v3129_v0 = vld [vmem:[%s3578_s7 + $0x704] ss:$16 sps:$4 sm:$0xff]  }
 0x11b   : > { %1970 = vmatprep.subr.bf16.mxu0 %v3045_v1  ;;  %2134 = vmatprep.subr.bf16.mxu1 %v3048_v2  ;;  %v3132_v1 = vld [vmem:[%s3578_s7 + $0x70c] ss:$16 sps:$4 sm:$0xff]   ;;  %v3127_v2 = vld [vmem:[%s3578_s7 + $0x700] ss:$16 sps:$4 sm:$0xff]  }
 0x11e   : > { %1971 = vmatpush1.bf16.msra.mxu0 %v3043_v3  ;;  %2135 = vmatpush1.bf16.msra.mxu1 %v3046_v4  ;;  %v3130_v3 = vld [vmem:[%s3578_s7 + $0x708] ss:$16 sps:$4 sm:$0xff]   ;;  %v3135_v4 = vld [vmem:[%s3578_s7 + $0x724] ss:$16 sps:$4 sm:$0xff]  }
 0x11f   : > { %1972 = vmatprep.subr.bf16.mxu0 %v3051_v5  ;;  %2136 = vmatprep.subr.bf16.mxu1 %v3054_v6  ;;  %v3138_v5 = vld [vmem:[%s3578_s7 + $0x72c] ss:$16 sps:$4 sm:$0xff]   ;;  %v3133_v6 = vld [vmem:[%s3578_s7 + $0x720] ss:$16 sps:$4 sm:$0xff]  }
 0x122   : > { %1973 = vmatpush1.bf16.msra.mxu0 %v3049_v7  ;;  %2137 = vmatpush1.bf16.msra.mxu1 %v3052_v8  ;;  %v3136_v7 = vld [vmem:[%s3578_s7 + $0x728] ss:$16 sps:$4 sm:$0xff]   ;;  %v3141_v8 = vld [vmem:[%s3578_s7 + $0x744] ss:$16 sps:$4 sm:$0xff]  }
 0x123   : > { %1974 = vmatprep.subr.bf16.mxu0 %v3057_v9  ;;  %2138 = vmatprep.subr.bf16.mxu1 %v3060_v11  ;;  %v3144_v9 = vld [vmem:[%s3578_s7 + $0x74c] ss:$16 sps:$4 sm:$0xff]   ;;  %v3139_v11 = vld [vmem:[%s3578_s7 + $0x740] ss:$16 sps:$4 sm:$0xff]  }
 0x126   : > { %1975 = vmatpush1.bf16.msra.mxu0 %v3055_v12  ;;  %2139 = vmatpush1.bf16.msra.mxu1 %v3058_v13  ;;  %v3142_v12 = vld [vmem:[%s3578_s7 + $0x748] ss:$16 sps:$4 sm:$0xff]   ;;  %v3147_v13 = vld [vmem:[%s3578_s7 + $0x764] ss:$16 sps:$4 sm:$0xff]  }
 0x127   : > { %1976 = vmatprep.subr.bf16.mxu0 %v3063_v14  ;;  %2140 = vmatprep.subr.bf16.mxu1 %v3066_v15  ;;  %v3150_v14 = vld [vmem:[%s3578_s7 + $0x76c] ss:$16 sps:$4 sm:$0xff]   ;;  %v3145_v15 = vld [vmem:[%s3578_s7 + $0x760] ss:$16 sps:$4 sm:$0xff]  }
 0x12a   : > { %1977 = vmatpush1.bf16.msra.mxu0 %v3061_v16  ;;  %2141 = vmatpush1.bf16.msra.mxu1 %v3064_v17  ;;  %v3148_v16 = vld [vmem:[%s3578_s7 + $0x768] ss:$16 sps:$4 sm:$0xff]   ;;  %v3153_v17 = vld [vmem:[%s3578_s7 + $0x784] ss:$16 sps:$4 sm:$0xff]  }
 0x12b   : > { %1978 = vmatprep.subr.bf16.mxu0 %v3069_v18  ;;  %2142 = vmatprep.subr.bf16.mxu1 %v3072_v19  ;;  %v3156_v18 = vld [vmem:[%s3578_s7 + $0x78c] ss:$16 sps:$4 sm:$0xff]   ;;  %v3151_v19 = vld [vmem:[%s3578_s7 + $0x780] ss:$16 sps:$4 sm:$0xff]  }
 0x12e   : > { %1979 = vmatpush1.bf16.msra.mxu0 %v3067_v21  ;;  %2143 = vmatpush1.bf16.msra.mxu1 %v3070_v22  ;;  %v3159_v21 = vld [vmem:[%s3578_s7 + $0x7a4] ss:$16 sps:$4 sm:$0xff]   ;;  %v3162_v22 = vld [vmem:[%s3578_s7 + $0x7ac] ss:$16 sps:$4 sm:$0xff]  }
 0x12f   : > { %1980 = vmatprep.subr.bf16.mxu0 %v3075_v23  ;;  %2144 = vmatprep.subr.bf16.mxu1 %v3078_v25  ;;  %v3157_v23 = vld [vmem:[%s3578_s7 + $0x7a0] ss:$16 sps:$4 sm:$0xff]   ;;  %v3160_v25 = vld [vmem:[%s3578_s7 + $0x7a8] ss:$16 sps:$4 sm:$0xff]  }
 0x132   : > { %1981 = vmatpush1.bf16.msra.mxu0 %v3073_v24  ;;  %2145 = vmatpush1.bf16.msra.mxu1 %v3076_v10  ;;  %v3165_v24 = vld [vmem:[%s3578_s7 + $0x7c4] ss:$16 sps:$4 sm:$0xff]   ;;  %v3168_v10 = vld [vmem:[%s3578_s7 + $0x7cc] ss:$16 sps:$4 sm:$0xff]  }
 0x133   : > { %1991 = vmatprep.subr.bf16.mxu0 %v3081_v28  ;;  %2155 = vmatprep.subr.bf16.mxu1 %v3084_v29  ;;  %v3163_v28 = vld [vmem:[%s3578_s7 + $0x7c0] ss:$16 sps:$4 sm:$0xff]   ;;  %v3166_v29 = vld [vmem:[%s3578_s7 + $0x7c8] ss:$16 sps:$4 sm:$0xff]  }
 0x135   : > { %1983 = vmatmul.mubr.bf16.vlgmr.msra.gmra.mrb[0].mxu0 %v328_v31  ;;  %2147 = vmatmul.mubr.bf16.vlgmr.msra.gmra.mrb[0].mxu1 %v328_v31  ;;  %v3174_v31 = vld [vmem:[%s3578_s7 + $0x7ec] ss:$16 sps:$4 sm:$0xff]  }
 0x136   : > { %1992 = vmatpush1.bf16.msra.mxu0 %v3079_v32  ;;  %2156 = vmatpush1.bf16.msra.mxu1 %v3082_v33  ;;  %v3169_v32 = vld [vmem:[%s3578_s7 + $0x7e0] ss:$16 sps:$4 sm:$0xff]   ;;  %v3172_v33 = vld [vmem:[%s3578_s7 + $0x7e8] ss:$16 sps:$4 sm:$0xff]  }
 0x137   : > { %1993 = vmatprep.subr.bf16.mxu0 %v3087_v34  ;;  %2157 = vmatprep.subr.bf16.mxu1 %v3090_v35  ;;  %v330_v34 = vpack.c.bf16 %v3821_v26, %v3821_v26 }
 0x138   : > { %2023 = vmatprep.mubr.bf16.mxu0 %v331_v36  ;;  %2187 = vmatprep.mubr.bf16.mxu1 %v331_v36 }
 0x13a   : > { %1994 = vmatpush1.bf16.msra.mxu0 %v3085_v27  ;;  %2158 = vmatpush1.bf16.msra.mxu1 %v3088_v37 }
 0x13b   : > { %1995 = vmatprep.subr.bf16.mxu0 %v3093_v38  ;;  %2159 = vmatprep.subr.bf16.mxu1 %v3096_v39 }
 0x13e   : > { %1996 = vmatpush1.bf16.msra.mxu0 %v3091_v40  ;;  %2160 = vmatpush1.bf16.msra.mxu1 %v3094_v41 }
 0x13f   : > { %1997 = vmatprep.subr.bf16.mxu0 %v3099_v42  ;;  %2161 = vmatprep.subr.bf16.mxu1 %v3102_v43 }
 0x142   : > { %1998 = vmatpush1.bf16.msra.mxu0 %v3097_v45  ;;  %2162 = vmatpush1.bf16.msra.mxu1 %v3100_v46 }
 0x143   : > { %1999 = vmatprep.subr.bf16.mxu0 %v3105_v47  ;;  %2163 = vmatprep.subr.bf16.mxu1 %v3108_v48  ;;  %v277_v47 = vld [vmem:[#allocation2] sm:$0xff] }
 0x146   : > { %2000 = vmatpush1.bf16.msra.mxu0 %v3103_v49  ;;  %2164 = vmatpush1.bf16.msra.mxu1 %v3106_v51  ;;  %v2225_v49 = vld [vmem:[%s224_s10] sm:$0xf] (!%p2656_p3)  ;;  %v2229_v51 = vsub.s32 (!%p2656_p3), 0, %v3644_v44 }
 0x147   : > { %2001 = vmatprep.subr.bf16.mxu0 %v3111_v52  ;;  %2165 = vmatprep.subr.bf16.mxu1 %v3114_v53  ;;  %v2233_v52 = vsub.s32 (!%p2656_p3), 1, %v3644_v44  ;;  %v2237_v53 = vsub.s32 (!%p2656_p3), 2, %v3644_v44 }
 0x14a   : > { %2002 = vmatpush1.bf16.msra.mxu0 %v3109_v54  ;;  %2166 = vmatpush1.bf16.msra.mxu1 %v3112_v55  ;;  %v2241_v54 = vsub.s32 (!%p2656_p3), 3, %v3644_v44  ;;  %v2230_v55 = vrot.slane (!%p2656_p3), %v2225_v49, %v2229_v51 }
 0x14b   : > { %2003 = vmatprep.subr.bf16.mxu0 %v3117_v56  ;;  %2167 = vmatprep.subr.bf16.mxu1 %v3120_v57  ;;  %v2234_v56 = vrot.slane (!%p2656_p3), %v2225_v49, %v2233_v52  ;;  %v2238_v57 = vrot.slane (!%p2656_p3), %v2225_v49, %v2237_v53 }
 0x14e   : > { %2004 = vmatpush1.bf16.msra.mxu0 %v3115_v58  ;;  %2168 = vmatpush1.bf16.msra.mxu1 %v3118_v59  ;;  %v2242_v58 = vrot.slane (!%p2656_p3), %v2225_v49, %v2241_v54  ;;  %v2243_v59 = vcombine.low (!%p2656_p3), %v2230_v55, %v2234_v56 }
 0x14f   : > { %2005 = vmatprep.subr.bf16.mxu0 %v3123_v60  ;;  %2169 = vmatprep.subr.bf16.mxu1 %v3126_v61 }
 0x150   : > { %v2244_v60 = vcombine.low (!%p2656_p3), %v2238_v57, %v2242_v58  ;;  %v2251_v61 = vrot.slane (!%p2656_p3), %v2243_v59, %v3652_v50 }
 0x152   : > { %2006 = vmatpush1.bf16.msra.mxu0 %v3121_v62  ;;  %2170 = vmatpush1.bf16.msra.mxu1 %v3124_v63  ;;  %v2258_v62 = vrot.slane (!%p2656_p3), %v2244_v60, %v3652_v50 }
 0x153   : > { %2007 = vmatprep.subr.bf16.mxu0 %v3129_v0  ;;  %2171 = vmatprep.subr.bf16.mxu1 %v3132_v1 }
 0x154   : > { %v2259_v0 = vcombine.low (!%p2656_p3), %v2251_v61, %v2258_v62 }
 0x156   : > { %2008 = vmatpush1.bf16.msra.mxu0 %v3127_v2  ;;  %2172 = vmatpush1.bf16.msra.mxu1 %v3130_v3 }
 0x157   : > { %2009 = vmatprep.subr.bf16.mxu0 %v3135_v4  ;;  %2173 = vmatprep.subr.bf16.mxu1 %v3138_v5 }
 0x15a   : > { %2010 = vmatpush1.bf16.msra.mxu0 %v3133_v6  ;;  %2174 = vmatpush1.bf16.msra.mxu1 %v3136_v7 }
 0x15b   : > { %2011 = vmatprep.subr.bf16.mxu0 %v3141_v8  ;;  %2175 = vmatprep.subr.bf16.mxu1 %v3144_v9 }
 0x15e   : > { %2012 = vmatpush1.bf16.msra.mxu0 %v3139_v11  ;;  %2176 = vmatpush1.bf16.msra.mxu1 %v3142_v12 }
 0x15f   : > { %2013 = vmatprep.subr.bf16.mxu0 %v3147_v13  ;;  %2177 = vmatprep.subr.bf16.mxu1 %v3150_v14 }
 0x162   : > { %2014 = vmatpush1.bf16.msra.mxu0 %v3145_v15  ;;  %2178 = vmatpush1.bf16.msra.mxu1 %v3148_v16 }
 0x163   : > { %2015 = vmatprep.subr.bf16.mxu0 %v3153_v17  ;;  %2179 = vmatprep.subr.bf16.mxu1 %v3156_v18 }
 0x166   : > { %2016 = vmatpush1.bf16.msra.mxu0 %v3151_v19  ;;  %2180 = vmatpush1.bf16.msra.mxu1 %v3154_v20 }
 0x167   : > { %2017 = vmatprep.subr.bf16.mxu0 %v3159_v21  ;;  %2181 = vmatprep.subr.bf16.mxu1 %v3162_v22 }
 0x16a   : > { %2018 = vmatpush1.bf16.msra.mxu0 %v3157_v23  ;;  %2182 = vmatpush1.bf16.msra.mxu1 %v3160_v25 }
 0x16b   : > { %2019 = vmatprep.subr.bf16.mxu0 %v3165_v24  ;;  %2183 = vmatprep.subr.bf16.mxu1 %v3168_v10 }
 0x16e   : > { %2020 = vmatpush1.bf16.msra.mxu0 %v3163_v28  ;;  %2184 = vmatpush1.bf16.msra.mxu1 %v3166_v29 }
 0x16f   : > { %2021 = vmatprep.subr.bf16.mxu0 %v3171_v30  ;;  %2185 = vmatprep.subr.bf16.mxu1 %v3174_v31 }
 0x172   : > { %2022 = vmatpush1.bf16.msra.mxu0 %v3169_v32  ;;  %2186 = vmatpush1.bf16.msra.mxu1 %v3172_v33 }
 0x175   : > { %2024 = vmatmul.mubr.bf16.vlgmr.msra.gmra.mrb[0].mxu0 %v330_v34  ;;  %2188 = vmatmul.mubr.bf16.vlgmr.msra.gmra.mrb[0].mxu1 %v330_v34 }
 0x248   : > { %v2025_v35 = vpop.f32.mrb[0].mxu0  ;;  %v2189_v36 = vpop.f32.mrb[0].mxu1 }
 0x249   : > { %v2027_v27 = vpop.f32.mrb[1].mxu0  ;;  %v2191_v37 = vpop.f32.mrb[1].mxu1 }
 0x24a   : > { %v2200_v38 = vcombine.low %v2025_v35, %v2027_v27  ;;  %v2201_v39 = vcombine.low %v2189_v36, %v2191_v37  ;;  %v2029_v40 = vpop.f32.mrb[2].mxu0  ;;  %v2193_v41 = vpop.f32.mrb[2].mxu1 }
 0x24b   : > { %v2030_v42 = vpop.f32.mrb[3].mxu0  ;;  %v2194_v43 = vpop.f32.mrb[3].mxu1 }
 0x24c   : > { %v2208_v45 = vrot.slane %v2200_v38, %v3652_v50  ;;  %v2215_v46 = vrot.slane %v2201_v39, %v3652_v50  ;;  %2223 = sbr.rel (%p2656_p3) target bundleno = 605 (0x25d), region = 48 }
 0x24e   : > { %v2216_v26 = vcombine.low %v2208_v45, %v2215_v46 }
 0x250   : > { %v2218_v48 = vadd.f32 %v2216_v26, %v277_v47 }
 0x252   : > { %2219 = vst [vmem:[#allocation2] sm:$0xff] %v2218_v48 }
 0x259   : > { %v2224_v63 = vld [vmem:[#allocation2] sm:$0xff] }
 0x25a   : > { %v2261_v1 = vadd.f32 %v2259_v0, %v2224_v63 }
 0x25c   : > { %2262 = vst [vmem:[%s3602_s4] sm:$0xff] %v2261_v1 }
 0x25d PF: > { %s19_s22 = sadd.s32 1, %s3330_s22   ;;  %s3965_s7 = sld [smem:[#allocation9_spill]] }
 0x25e   : > { %p16_p11 = scmp.ge.s32.totalorder %s19_s22, 34   ;;  %s3966_s12 = smov %s3294_s13 }
 0x25f   : > { %s3967_s13 = smov %s3298_s14  ;;  %s3968_s14 = smov %s3527_s29 }
 0x260   : > { %s3969_s15 = smov %s3306_s16  ;;  %s3970_s16 = smov %s3310_s17 }
 0x261   : > { %s3971_s17 = smov %s3532_s6  ;;  %s3972_s18 = smov %s3322_s20 }
 0x262   : > { %s3973_s19 = smov %s3326_s21  ;;  %s3974_s20 = smov %s3977_s23 }
 0x263   : > { %s3975_s21 = smov %s3965_s7  ;;  %18 = sbr.rel (!%p16_p11) target bundleno = 11 (0xb), region = 96 }
 0x26a   :  { %2285 = vsyncpa [#allocation4], 1 }
 0x26b   :  { %2287 = vsyncpa [#allocation4 + $0x1], 1 }
 0x26c   :  { %2288 = vsyncpa [#allocation6], 1 }
 0x26d   :  { %2290 = vsyncpa [#allocation6 + $0x1], 1 }

</bundles_post_ra>
